<compile_context>
chip_gen: v6e
topology: v6e:2x2x1
jax: 0.10.0
libtpu: 0.0.40
codegen_flags: <defaults>
</compile_context>

<pallas_src>
import functools
import math

import jax
import jax.numpy as jnp
from jax.experimental import pallas as pl
from jax.experimental.pallas import tpu as pltpu


def _sinusoidal_pe(max_len: int, d_model: int) -> jnp.ndarray:
    """Standard transformer sinusoidal positional encoding, shape (max_len, d_model)."""
    pos = jnp.arange(max_len, dtype=jnp.float32)[:, None]
    div = jnp.exp(
        jnp.arange(0, d_model, 2, dtype=jnp.float32) * (-math.log(10000.0) / d_model)
    )
    pe = jnp.zeros((max_len, d_model), dtype=jnp.float32)
    pe = pe.at[:, 0::2].set(jnp.sin(pos * div))
    pe = pe.at[:, 1::2].set(jnp.cos(pos * div))
    return pe


def _embed_kernel(tok_ref, hi_ref, lo_ref, pe_ref, out_ref, *, num_j: int, vchunk: int):
    # tok_ref: (T, 1)   int32 token ids for this tile of flattened (B*S) rows
    # hi_ref : (Vp, D)  bf16 hi part of the pre-scaled, vocab-padded table (VMEM-resident)
    # lo_ref : (Vp, D)  bf16 lo (residual) part of the table (VMEM-resident)
    # pe_ref : (Spe, D) f32 positional-encoding rows (VMEM-resident)
    # out_ref: (T, D)   f32 output tile
    T, D = out_ref.shape
    Vp = hi_ref.shape[0]
    num_chunks = Vp // vchunk

    # Initialize the output tile with its positional-encoding rows.
    if num_j == 1:
        out_ref[...] = pe_ref[...]
    else:
        j = jax.lax.rem(pl.program_id(0), num_j)
        start = pl.multiple_of(j * T, T)
        out_ref[...] = pe_ref[pl.ds(start, T), :]

    tok = tok_ref[...]  # (T, 1) int32

    # Hoisted lane iota (re-used by every vocab chunk).
    lane = jax.lax.broadcasted_iota(jnp.int32, (T, vchunk), 1)

    def body(c, carry):
        v0 = pl.multiple_of(c * vchunk, vchunk)
        # One-hot slab built directly in bf16 (exact in bf16).
        onehot = ((tok - v0) == lane).astype(jnp.bfloat16)          # (T, vchunk)
        hi = hi_ref[pl.ds(v0, vchunk), :]                           # (vchunk, D) bf16
        lo = lo_ref[pl.ds(v0, vchunk), :]                           # (vchunk, D) bf16
        # Two single-pass bf16 MXU matmuls, accumulated in f32.
        acc = jnp.dot(onehot, hi, preferred_element_type=jnp.float32)
        acc = acc + jnp.dot(onehot, lo, preferred_element_type=jnp.float32)
        out_ref[...] += acc
        return carry

    jax.lax.fori_loop(0, num_chunks, body, 0, unroll=True)


def _choose_tile_rows(B: int, S: int, target: int) -> int:
    """Pick T (rows of the flattened (B*S, D) output) — multiple of 8, divides B*S,
    and tiles never straddle a partial batch row (T | S, or S | T with (T//S) | B)."""
    total = B * S
    if total <= target:
        return total
    if S >= target:
        t = target
        while S % t != 0:
            t -= 8
        return t
    k = target // S
    while k > 1 and B % k != 0:
        k -= 1
    return k * S


def music_embedding_forward(tokens: jnp.ndarray,
                            emb_table: jnp.ndarray,
                            pe_table: jnp.ndarray,
                            *,
                            tile_rows: int = 256,
                            vchunk: int = 256) -> jnp.ndarray:
    """
    Args:
      tokens:    [B, S] int32 token ids
      emb_table: [V, D] float32 embedding weights
      pe_table:  [max_len, D] float32 sinusoidal positional encodings (max_len >= S)
    Returns:
      [B, S, D] float32 embeddings (scaled + positionally encoded, eval-mode dropout)
    """
    B, S = tokens.shape
    V, D = emb_table.shape
    assert D % 128 == 0, "d_model must be a multiple of 128 for lane-dense tiles"
    assert S % 8 == 0, "seq_len must be a multiple of 8"
    assert pe_table.shape[0] >= S and pe_table.shape[1] == D

    total = B * S
    T = _choose_tile_rows(B, S, tile_rows)
    assert T % 8 == 0 and total % T == 0
    num_tiles = total // T
    num_j = S // T if T <= S else 1          # PE tiles per sequence (1 if a tile spans rows)

    scale = math.sqrt(float(D))

    # bf16 hi/lo split of the pre-scaled, vocab-padded table -> two single-pass MXU matmuls.
    # Padding the vocab to a multiple of `vchunk` also makes out-of-range ids hit zero rows.
    Vp = ((V + vchunk - 1) // vchunk) * vchunk
    table = jnp.pad(emb_table.astype(jnp.float32) * scale, ((0, Vp - V), (0, 0)))
    table_hi = table.astype(jnp.bfloat16)
    table_lo = (table - table_hi.astype(jnp.float32)).astype(jnp.bfloat16)

    # Positional-encoding slab (VMEM-resident). If a tile spans T//S whole batch rows,
    # pre-tile PE so every grid step uses the same (T, D) slab.
    pe = pe_table.astype(jnp.float32)[:S]
    pe_in = jnp.tile(pe, (T // S, 1)) if T > S else pe

    tok_flat = tokens.astype(jnp.int32).reshape(total, 1)

    grid_spec = pltpu.PrefetchScalarGridSpec(
        num_scalar_prefetch=0,
        grid=(num_tiles,),  # single flattened parallel axis -> balanced v7x megacore split
        in_specs=[
            pl.BlockSpec((T, 1), lambda i: (i, 0)),          # token rows for this tile
            pl.BlockSpec((Vp, D), lambda i: (0, 0)),          # resident table (hi)
            pl.BlockSpec((Vp, D), lambda i: (0, 0)),          # resident table (lo)
            pl.BlockSpec(pe_in.shape, lambda i: (0, 0)),      # resident PE rows
        ],
        out_specs=pl.BlockSpec((T, D), lambda i: (i, 0)),
    )

    # Explicit VMEM budget: resident tables + PE (x2 pipeline buffers) + per-step tiles
    # + headroom; keeps the design deliberate on v5e's 16 MiB default scoped VMEM.
    resident_bytes = 2 * (Vp * D * 2) * 2 + pe_in.size * 4 * 2
    per_step_bytes = (T * D * 4 + T * 4) * 2
    vmem_limit = int(min(max(2 * (resident_bytes + per_step_bytes), 16 << 20), 64 << 20))

    cost = pl.CostEstimate(
        flops=2 * 2 * total * Vp * D,                         # two bf16 matmuls per element
        transcendentals=0,
        bytes_accessed=total * D * 4 + total * 4 + 2 * Vp * D * 2 + pe_in.size * 4,
    )

    out_flat = pl.pallas_call(
        functools.partial(_embed_kernel, num_j=num_j, vchunk=vchunk),
        out_shape=jax.ShapeDtypeStruct((total, D), jnp.float32),
        grid_spec=grid_spec,
        compiler_params=pltpu.CompilerParams(
            dimension_semantics=("parallel",),
            vmem_limit_bytes=vmem_limit,
        ),
        cost_estimate=cost,
    )(tok_flat, table_hi, table_lo, pe_in)

    return out_flat.reshape(B, S, D)


if __name__ == "__main__":
    # Small but module-faithful shapes (module defaults: vocab=774, d_model=512).
    VOCAB = 774
    D_MODEL = 512
    MAX_LEN = 128
    B, S = 2, 64

    key = jax.random.PRNGKey(0)
    k_emb, k_tok = jax.random.split(key)

    # nn.init.normal_(weight, mean=0.0, std=0.02)
    emb_table = 0.02 * jax.random.normal(k_emb, (VOCAB, D_MODEL), dtype=jnp.float32)
    pe_table = _sinusoidal_pe(MAX_LEN, D_MODEL)
    tokens = jax.random.randint(k_tok, (B, S), 0, VOCAB, dtype=jnp.int32)

    out = music_embedding_forward(tokens, emb_table, pe_table)
    out = jax.block_until_ready(out)

    # Pure-JAX reference check.
    ref = emb_table[tokens] * math.sqrt(D_MODEL) + pe_table[:S][None, :, :]
    assert out.shape == (B, S, D_MODEL)
    assert jnp.allclose(out, ref, atol=1e-4, rtol=1e-4), "mismatch vs reference"

    print("KERNEL_OK")
</pallas_src>

<mosaic_0001>
module attributes {stable_mosaic.version = 11 : i64} {
  func.func @_embed_kernel(%arg0: i32, %arg1: memref<128x1xi32, #tpu.memory_space<vmem>>, %arg2: memref<1024x512xbf16, #tpu.memory_space<vmem>>, %arg3: memref<1024x512xbf16, #tpu.memory_space<vmem>>, %arg4: memref<128x512xf32, #tpu.memory_space<vmem>>, %arg5: memref<128x512xf32, #tpu.memory_space<vmem>>) attributes {dimension_semantics = [#tpu.dimension_semantics<parallel>], iteration_bounds = array<i64: 1>, scalar_prefetch = 0 : i64, scratch_operands = 0 : i64, tpu.core_type = #tpu.core_type<tc>, window_params = [{transform_indices = @transform_0, window_bounds = array<i64: 128, 1>}, {pipeline_mode = #tpu.pipeline_mode<synchronous>, transform_indices = @transform_1, window_bounds = array<i64: 1024, 512>}, {pipeline_mode = #tpu.pipeline_mode<synchronous>, transform_indices = @transform_2, window_bounds = array<i64: 1024, 512>}, {pipeline_mode = #tpu.pipeline_mode<synchronous>, transform_indices = @transform_3, window_bounds = array<i64: 128, 512>}, {transform_indices = @transform_4, window_bounds = array<i64: 128, 512>}]} {
    %c0 = arith.constant 0 : index
    %c0_0 = arith.constant 0 : index
    %0 = vector.load %arg4[%c0, %c0_0] : memref<128x512xf32, #tpu.memory_space<vmem>>, vector<128x512xf32>
    %c0_1 = arith.constant 0 : index
    %c0_2 = arith.constant 0 : index
    %1 = vector.load %arg5[%c0_1, %c0_2] : memref<128x512xf32, #tpu.memory_space<vmem>>, vector<128x512xf32>
    tpu.vector_store %arg5[%c0_1, %c0_2], %0 {strides = array<i32>} : memref<128x512xf32, #tpu.memory_space<vmem>>, vector<128x512xf32>,
    %c0_3 = arith.constant 0 : index
    %c0_4 = arith.constant 0 : index
    %2 = vector.load %arg1[%c0_3, %c0_4] : memref<128x1xi32, #tpu.memory_space<vmem>>, vector<128x1xi32>
    %3 = tpu.iota {dimensions = array<i32: 1>} : vector<128x256xi32>
    %c0_i32 = arith.constant 0 : i32
    %c256_i32 = arith.constant 256 : i32
    %4 = arith.muli %c0_i32, %c256_i32 : i32
    %5 = tpu.assume_multiple %4, 256 : i32
    %6 = vector.broadcast %5 : i32 to vector<128x1xi32>
    %7 = arith.subi %2, %6 : vector<128x1xi32>
    %8 = vector.broadcast %7 : vector<128x1xi32> to vector<128x256xi32>
    %9 = arith.cmpi eq, %8, %3 : vector<128x256xi32>
    %10 = arith.extui %9 : vector<128x256xi1> to vector<128x256xi32>
    %11 = arith.sitofp %10 : vector<128x256xi32> to vector<128x256xf32>
    %12 = arith.truncf %11 : vector<128x256xf32> to vector<128x256xbf16>
    %13 = arith.index_cast %5 : i32 to index
    %c0_5 = arith.constant 0 : index
    %14 = vector.load %arg2[%13, %c0_5] : memref<1024x512xbf16, #tpu.memory_space<vmem>>, vector<256x512xbf16>
    %15 = arith.index_cast %5 : i32 to index
    %c0_6 = arith.constant 0 : index
    %16 = vector.load %arg3[%15, %c0_6] : memref<1024x512xbf16, #tpu.memory_space<vmem>>, vector<256x512xbf16>
    %cst = arith.constant dense<0.000000e+00> : vector<128x512xf32>
    %17 = tpu.matmul %12, %14, %cst {dimension_numbers = #tpu.dot_dimension_numbers<[1], [0], [0], [1], [0, 0, 1, 1], [], []>} : vector<128x256xbf16>, vector<256x512xbf16>, vector<128x512xf32> -> vector<128x512xf32>
    %cst_7 = arith.constant dense<0.000000e+00> : vector<128x512xf32>
    %18 = tpu.matmul %12, %16, %cst_7 {dimension_numbers = #tpu.dot_dimension_numbers<[1], [0], [0], [1], [0, 0, 1, 1], [], []>} : vector<128x256xbf16>, vector<256x512xbf16>, vector<128x512xf32> -> vector<128x512xf32>
    %19 = arith.addf %17, %18 : vector<128x512xf32>
    %c0_8 = arith.constant 0 : index
    %c0_9 = arith.constant 0 : index
    %20 = vector.load %arg5[%c0_8, %c0_9] : memref<128x512xf32, #tpu.memory_space<vmem>>, vector<128x512xf32>
    %21 = arith.addf %20, %19 : vector<128x512xf32>
    %c0_10 = arith.constant 0 : index
    %c0_11 = arith.constant 0 : index
    %22 = vector.load %arg5[%c0_10, %c0_11] : memref<128x512xf32, #tpu.memory_space<vmem>>, vector<128x512xf32>
    tpu.vector_store %arg5[%c0_10, %c0_11], %21 {strides = array<i32>} : memref<128x512xf32, #tpu.memory_space<vmem>>, vector<128x512xf32>,
    %c1_i32 = arith.constant 1 : i32
    %c256_i32_12 = arith.constant 256 : i32
    %23 = arith.muli %c1_i32, %c256_i32_12 : i32
    %24 = tpu.assume_multiple %23, 256 : i32
    %25 = vector.broadcast %24 : i32 to vector<128x1xi32>
    %26 = arith.subi %2, %25 : vector<128x1xi32>
    %27 = vector.broadcast %26 : vector<128x1xi32> to vector<128x256xi32>
    %28 = arith.cmpi eq, %27, %3 : vector<128x256xi32>
    %29 = arith.extui %28 : vector<128x256xi1> to vector<128x256xi32>
    %30 = arith.sitofp %29 : vector<128x256xi32> to vector<128x256xf32>
    %31 = arith.truncf %30 : vector<128x256xf32> to vector<128x256xbf16>
    %32 = arith.index_cast %24 : i32 to index
    %c0_13 = arith.constant 0 : index
    %33 = vector.load %arg2[%32, %c0_13] : memref<1024x512xbf16, #tpu.memory_space<vmem>>, vector<256x512xbf16>
    %34 = arith.index_cast %24 : i32 to index
    %c0_14 = arith.constant 0 : index
    %35 = vector.load %arg3[%34, %c0_14] : memref<1024x512xbf16, #tpu.memory_space<vmem>>, vector<256x512xbf16>
    %cst_15 = arith.constant dense<0.000000e+00> : vector<128x512xf32>
    %36 = tpu.matmul %31, %33, %cst_15 {dimension_numbers = #tpu.dot_dimension_numbers<[1], [0], [0], [1], [0, 0, 1, 1], [], []>} : vector<128x256xbf16>, vector<256x512xbf16>, vector<128x512xf32> -> vector<128x512xf32>
    %cst_16 = arith.constant dense<0.000000e+00> : vector<128x512xf32>
    %37 = tpu.matmul %31, %35, %cst_16 {dimension_numbers = #tpu.dot_dimension_numbers<[1], [0], [0], [1], [0, 0, 1, 1], [], []>} : vector<128x256xbf16>, vector<256x512xbf16>, vector<128x512xf32> -> vector<128x512xf32>
    %38 = arith.addf %36, %37 : vector<128x512xf32>
    %c0_17 = arith.constant 0 : index
    %c0_18 = arith.constant 0 : index
    %39 = vector.load %arg5[%c0_17, %c0_18] : memref<128x512xf32, #tpu.memory_space<vmem>>, vector<128x512xf32>
    %40 = arith.addf %39, %38 : vector<128x512xf32>
    %c0_19 = arith.constant 0 : index
    %c0_20 = arith.constant 0 : index
    %41 = vector.load %arg5[%c0_19, %c0_20] : memref<128x512xf32, #tpu.memory_space<vmem>>, vector<128x512xf32>
    tpu.vector_store %arg5[%c0_19, %c0_20], %40 {strides = array<i32>} : memref<128x512xf32, #tpu.memory_space<vmem>>, vector<128x512xf32>,
    %c2_i32 = arith.constant 2 : i32
    %c256_i32_21 = arith.constant 256 : i32
    %42 = arith.muli %c2_i32, %c256_i32_21 : i32
    %43 = tpu.assume_multiple %42, 256 : i32
    %44 = vector.broadcast %43 : i32 to vector<128x1xi32>
    %45 = arith.subi %2, %44 : vector<128x1xi32>
    %46 = vector.broadcast %45 : vector<128x1xi32> to vector<128x256xi32>
    %47 = arith.cmpi eq, %46, %3 : vector<128x256xi32>
    %48 = arith.extui %47 : vector<128x256xi1> to vector<128x256xi32>
    %49 = arith.sitofp %48 : vector<128x256xi32> to vector<128x256xf32>
    %50 = arith.truncf %49 : vector<128x256xf32> to vector<128x256xbf16>
    %51 = arith.index_cast %43 : i32 to index
    %c0_22 = arith.constant 0 : index
    %52 = vector.load %arg2[%51, %c0_22] : memref<1024x512xbf16, #tpu.memory_space<vmem>>, vector<256x512xbf16>
    %53 = arith.index_cast %43 : i32 to index
    %c0_23 = arith.constant 0 : index
    %54 = vector.load %arg3[%53, %c0_23] : memref<1024x512xbf16, #tpu.memory_space<vmem>>, vector<256x512xbf16>
    %cst_24 = arith.constant dense<0.000000e+00> : vector<128x512xf32>
    %55 = tpu.matmul %50, %52, %cst_24 {dimension_numbers = #tpu.dot_dimension_numbers<[1], [0], [0], [1], [0, 0, 1, 1], [], []>} : vector<128x256xbf16>, vector<256x512xbf16>, vector<128x512xf32> -> vector<128x512xf32>
    %cst_25 = arith.constant dense<0.000000e+00> : vector<128x512xf32>
    %56 = tpu.matmul %50, %54, %cst_25 {dimension_numbers = #tpu.dot_dimension_numbers<[1], [0], [0], [1], [0, 0, 1, 1], [], []>} : vector<128x256xbf16>, vector<256x512xbf16>, vector<128x512xf32> -> vector<128x512xf32>
    %57 = arith.addf %55, %56 : vector<128x512xf32>
    %c0_26 = arith.constant 0 : index
    %c0_27 = arith.constant 0 : index
    %58 = vector.load %arg5[%c0_26, %c0_27] : memref<128x512xf32, #tpu.memory_space<vmem>>, vector<128x512xf32>
    %59 = arith.addf %58, %57 : vector<128x512xf32>
    %c0_28 = arith.constant 0 : index
    %c0_29 = arith.constant 0 : index
    %60 = vector.load %arg5[%c0_28, %c0_29] : memref<128x512xf32, #tpu.memory_space<vmem>>, vector<128x512xf32>
    tpu.vector_store %arg5[%c0_28, %c0_29], %59 {strides = array<i32>} : memref<128x512xf32, #tpu.memory_space<vmem>>, vector<128x512xf32>,
    %c3_i32 = arith.constant 3 : i32
    %c256_i32_30 = arith.constant 256 : i32
    %61 = arith.muli %c3_i32, %c256_i32_30 : i32
    %62 = tpu.assume_multiple %61, 256 : i32
    %63 = vector.broadcast %62 : i32 to vector<128x1xi32>
    %64 = arith.subi %2, %63 : vector<128x1xi32>
    %65 = vector.broadcast %64 : vector<128x1xi32> to vector<128x256xi32>
    %66 = arith.cmpi eq, %65, %3 : vector<128x256xi32>
    %67 = arith.extui %66 : vector<128x256xi1> to vector<128x256xi32>
    %68 = arith.sitofp %67 : vector<128x256xi32> to vector<128x256xf32>
    %69 = arith.truncf %68 : vector<128x256xf32> to vector<128x256xbf16>
    %70 = arith.index_cast %62 : i32 to index
    %c0_31 = arith.constant 0 : index
    %71 = vector.load %arg2[%70, %c0_31] : memref<1024x512xbf16, #tpu.memory_space<vmem>>, vector<256x512xbf16>
    %72 = arith.index_cast %62 : i32 to index
    %c0_32 = arith.constant 0 : index
    %73 = vector.load %arg3[%72, %c0_32] : memref<1024x512xbf16, #tpu.memory_space<vmem>>, vector<256x512xbf16>
    %cst_33 = arith.constant dense<0.000000e+00> : vector<128x512xf32>
    %74 = tpu.matmul %69, %71, %cst_33 {dimension_numbers = #tpu.dot_dimension_numbers<[1], [0], [0], [1], [0, 0, 1, 1], [], []>} : vector<128x256xbf16>, vector<256x512xbf16>, vector<128x512xf32> -> vector<128x512xf32>
    %cst_34 = arith.constant dense<0.000000e+00> : vector<128x512xf32>
    %75 = tpu.matmul %69, %73, %cst_34 {dimension_numbers = #tpu.dot_dimension_numbers<[1], [0], [0], [1], [0, 0, 1, 1], [], []>} : vector<128x256xbf16>, vector<256x512xbf16>, vector<128x512xf32> -> vector<128x512xf32>
    %76 = arith.addf %74, %75 : vector<128x512xf32>
    %c0_35 = arith.constant 0 : index
    %c0_36 = arith.constant 0 : index
    %77 = vector.load %arg5[%c0_35, %c0_36] : memref<128x512xf32, #tpu.memory_space<vmem>>, vector<128x512xf32>
    %78 = arith.addf %77, %76 : vector<128x512xf32>
    %c0_37 = arith.constant 0 : index
    %c0_38 = arith.constant 0 : index
    %79 = vector.load %arg5[%c0_37, %c0_38] : memref<128x512xf32, #tpu.memory_space<vmem>>, vector<128x512xf32>
    tpu.vector_store %arg5[%c0_37, %c0_38], %78 {strides = array<i32>} : memref<128x512xf32, #tpu.memory_space<vmem>>, vector<128x512xf32>,
    %c4_i32 = arith.constant 4 : i32
    return
  }
  func.func @transform_0(%arg0: i32) -> (i32, i32) {
    %c0_i32 = arith.constant 0 : i32
    %c0_i32_0 = arith.constant 0 : i32
    return %arg0, %c0_i32 : i32, i32
  }
  func.func @transform_1(%arg0: i32) -> (i32, i32) {
    %c0_i32 = arith.constant 0 : i32
    %c0_i32_0 = arith.constant 0 : i32
    %c0_i32_1 = arith.constant 0 : i32
    return %c0_i32, %c0_i32_0 : i32, i32
  }
  func.func @transform_2(%arg0: i32) -> (i32, i32) {
    %c0_i32 = arith.constant 0 : i32
    %c0_i32_0 = arith.constant 0 : i32
    %c0_i32_1 = arith.constant 0 : i32
    return %c0_i32, %c0_i32_0 : i32, i32
  }
  func.func @transform_3(%arg0: i32) -> (i32, i32) {
    %c0_i32 = arith.constant 0 : i32
    %c0_i32_0 = arith.constant 0 : i32
    %c0_i32_1 = arith.constant 0 : i32
    return %c0_i32, %c0_i32_0 : i32, i32
  }
  func.func @transform_4(%arg0: i32) -> (i32, i32) {
    %c0_i32 = arith.constant 0 : i32
    %c0_i32_0 = arith.constant 0 : i32
    return %arg0, %c0_i32 : i32, i32
  }
}

</mosaic_0001>

<bundles_post_ra>
// kernel: tpu_custom_call.1
= control target key start
LH: loop header
LB: loop body
LE: loop exit
PB: predicated region body
PF: predicated region fallthrough
CT: control target
= control target key end

     0   :  { %9 = vsyncpa [#allocation3], 0  ;;  %s11335_s0 = inlined_call_operand.vmem [shape: s32[128,1], index: 0, kind: input, shape index: {}]   ;;  %s11336_s1 = inlined_call_operand.hbm [shape: bf16[1024,512], index: 1, kind: input, shape index: {}]   ;;  %s11337_s2 = inlined_call_operand.hbm [shape: bf16[1024,512], index: 2, kind: input, shape index: {}]   ;;  %s11338_s3 = inlined_call_operand.hbm [shape: f32[128,512], index: 3, kind: input, shape index: {}]   ;;  %s11339_s4 = inlined_call_operand.hbm [shape: f32[128,512], index: 4, kind: output, shape index: {}]  }
   0x1   :  { %10 = vsyncpa [#allocation6], 0 }
   0x2   :  { %11 = vsyncpa [#allocation4], 0  ;;  %s8672_s15 = smov [#allocation5]   ;;  %s8673_s17 = smov [#allocation2]  }
   0x3   :  { %s31_s16 = sshll.u32 %s8672_s15, 4  ;;  %s19_s18 = sshll.u32 %s8673_s17, 4  ;;  %s32_s16 = int_to_ptr.vmem [resolvable:$true] %s31_s16  ;;  %s20_s18 = int_to_ptr.vmem [resolvable:$true] %s19_s18 }
   0x4   :  { %s8594_s19 = scalar_lea.vmem %s32_s16, 32768  ;;  %p8599_p1 = scmp.lt.s32.totalorder %s32_s16, %s32_s16 }
   0x5   :  { %p8595_p0 = scmp.ne.s32.totalorder %s32_s16, %s8594_s19  ;;  %p8600_p2 = scmp.lt.s32.totalorder %s8594_s19, %s8594_s19 }
   0x7   :  { %p8601_p3 = por %p8600_p2, %p8599_p1 }
   0x9   :  { %p8602_p4 = pnand %p8601_p3, %p8595_p0 }
   0xb   :  { %8605 = shalt.err (!%p8602_p4)
}
   0xc   :  { %s8674_s20 = smov 256   ;;  %s8675_s21 = smov 16  }
   0xd   :  { %37 = dma.hbm_to_vmem [thread:$0]  %s11337_s2, 32768, %s32_s16, [#allocation6], %s8674_s20, %s8674_s20, %s8675_s21  }
   0xe   :  { %s8614_s24 = scalar_lea.vmem %s20_s18, 32768  ;;  %p8619_p6 = scmp.lt.s32.totalorder %s20_s18, %s20_s18 }
   0xf   :  { %p8615_p5 = scmp.ne.s32.totalorder %s20_s18, %s8614_s24  ;;  %p8620_p7 = scmp.lt.s32.totalorder %s8614_s24, %s8614_s24 }
  0x11   :  { %p8621_p8 = por %p8620_p7, %p8619_p6 }
  0x13   :  { %p8622_p9 = pnand %p8621_p8, %p8615_p5 }
  0x15   :  { %8625 = shalt.err (!%p8622_p9)
}
  0x16   :  { %25 = dma.hbm_to_vmem [thread:$0]  %s11336_s1, 32768, %s20_s18, [#allocation3], %s8674_s20, %s8674_s20, %s8675_s21  }
  0x17   :  { %s8676_s27 = smov [#allocation7]  }
  0x18   :  { %s43_s28 = sshll.u32 %s8676_s27, 4  ;;  %s44_s28 = int_to_ptr.vmem [resolvable:$true] %s43_s28 }
  0x19   :  { %s8634_s29 = scalar_lea.vmem %s44_s28, 8192  ;;  %p8639_p11 = scmp.lt.s32.totalorder %s44_s28, %s44_s28 }
  0x1a   :  { %p8635_p10 = scmp.ne.s32.totalorder %s44_s28, %s8634_s29  ;;  %p8640_p12 = scmp.lt.s32.totalorder %s8634_s29, %s8634_s29 }
  0x1c   :  { %p8641_p13 = por %p8640_p12, %p8639_p11 }
  0x1e   :  { %p8642_p0 = pnand %p8641_p13, %p8635_p10 }
  0x20   :  { %8645 = shalt.err (!%p8642_p0)
}
  0x21   :  { %s8677_s2 = smov 512   ;;  %s8678_s30 = smov 32  }
  0x22   :  { %49 = dma.hbm_to_vmem [thread:$0]  %s11338_s3, 8192, %s44_s28, [#allocation6], %s8677_s2, %s8677_s2, %s8678_s30  }
  0x23   :  { %8666 = dma.done.wait [#allocation3], 32768  }
  0x24   :  { %8667 = vsyncadd [#allocation3], 4294934528 }
  0x25   :  { %8668 = dma.done.wait [#allocation6], 40960  }
  0x26   :  { %8669 = vsyncadd [#allocation6], 4294926336  ;;  %v8679_v0 = vmov 0   ;;  %v8722_v1 = vld [vmem:[%s11335_s0 + $0x10] sm:$0xff]  ;;  %v8727_v2 = vld [vmem:[%s11335_s0] sm:$0xff] }
  0x27   :  { %7817 = vset.pattern.permute.xlu1 %v8679_v0  ;;  %7816 = vset.pattern.permute.xlu0 %v8679_v0  ;;  %v8734_v3 = vld [vmem:[%s11335_s0 + $0x18] sm:$0xff]  ;;  %v8739_v4 = vld [vmem:[%s11335_s0 + $0x8] sm:$0xff]  ;;  %v8751_v6 = vld [vmem:[%s11335_s0 + $0x20] sm:$0xff]  ;;  %v6894_v44 = vadd.s32 4294967040, %v8727_v2  ;;  %v6896_v50 = vadd.s32 4294967040, %v8722_v1 }
  0x28   :  { %230 = vperm.xlu1 %7817, %v8722_v1   ;;  %224 = vperm.xlu0 %7816, %v8727_v2   ;;  %v8746_v5 = vld [vmem:[%s11335_s0 + $0x28] sm:$0xff]  ;;  %v7818_v7 = vld [vmem:[#allocation5 + $0xe4] ss:$16 sps:$4 sm:$0xff]   ;;  %v7822_v9 = vld [vmem:[#allocation5 + $0xe0] ss:$16 sps:$4 sm:$0xff]   ;;  %v6895_v43 = vadd.s32 4294967040, %v8739_v4 }
  0x29   :  { %v7820_v8 = vld [vmem:[#allocation5 + $0xec] ss:$16 sps:$4 sm:$0xff]   ;;  %v8761_v11 = vld [vmem:[%s11335_s0 + $0x30] sm:$0xff]  ;;  %836 = vmatprep.subr.bf16.mxu0 %v7818_v7  ;;  %v7823_v12 = vld [vmem:[#allocation5 + $0xe8] ss:$16 sps:$4 sm:$0xff]   ;;  %v6897_v49 = vadd.s32 4294967040, %v8734_v3 }
  0x2a   :  { %v8756_v10 = vld [vmem:[%s11335_s0 + $0x38] sm:$0xff]  ;;  %v7824_v13 = vld [vmem:[#allocation5 + $0xc4] ss:$16 sps:$4 sm:$0xff]   ;;  %949 = vmatprep.subr.bf16.mxu1 %v7820_v8  ;;  %837 = vmatpush1.bf16.msra.mxu0 %v7822_v9  ;;  %v7828_v15 = vld [vmem:[#allocation5 + $0xc0] ss:$16 sps:$4 sm:$0xff]   ;;  %v6899_v55 = vadd.s32 4294967040, %v8746_v5 }
  0x2b   :  { %v7826_v14 = vld [vmem:[#allocation5 + $0xcc] ss:$16 sps:$4 sm:$0xff]   ;;  %v7829_v16 = vld [vmem:[#allocation5 + $0xc8] ss:$16 sps:$4 sm:$0xff]   ;;  %950 = vmatpush1.bf16.msra.mxu1 %v7823_v12  ;;  %838 = vmatprep.subr.bf16.mxu0 %v7824_v13  ;;  %v7830_v17 = vld [vmem:[#allocation5 + $0xa4] ss:$16 sps:$4 sm:$0xff]  }
  0x2c   :  { %233 = vperm.xlu1 %7817, %v8734_v3   ;;  %227 = vperm.xlu0 %7816, %v8739_v4   ;;  %v7832_v18 = vld [vmem:[#allocation5 + $0xac] ss:$16 sps:$4 sm:$0xff]   ;;  %v8775_v20 = vld [vmem:[%s11335_s0 + $0x40] sm:$0xff]  ;;  %v7835_v22 = vld [vmem:[#allocation5 + $0xa8] ss:$16 sps:$4 sm:$0xff]   ;;  %v6898_v56 = vadd.s32 4294967040, %v8751_v6 }
  0x2d   :  { %951 = vmatprep.subr.bf16.mxu1 %v7826_v14  ;;  %v8770_v19 = vld [vmem:[%s11335_s0 + $0x48] sm:$0xff]  ;;  %v7834_v21 = vld [vmem:[#allocation5 + $0xa0] ss:$16 sps:$4 sm:$0xff]   ;;  %v7836_v23 = vld [vmem:[#allocation5 + $0x84] ss:$16 sps:$4 sm:$0xff]   ;;  %v6901_v61 = vadd.s32 4294967040, %v8756_v10 }
  0x2e   :  { %839 = vmatpush1.bf16.msra.mxu0 %v7828_v15  ;;  %v7838_v24 = vld [vmem:[#allocation5 + $0x8c] ss:$16 sps:$4 sm:$0xff]   ;;  %v8787_v26 = vld [vmem:[%s11335_s0 + $0x50] sm:$0xff]  ;;  %v7841_v28 = vld [vmem:[#allocation5 + $0x88] ss:$16 sps:$4 sm:$0xff]   ;;  %v6900_v62 = vadd.s32 4294967040, %v8761_v11 }
  0x2f   :  { %952 = vmatpush1.bf16.msra.mxu1 %v7829_v16  ;;  %840 = vmatprep.subr.bf16.mxu0 %v7830_v17  ;;  %v8782_v25 = vld [vmem:[%s11335_s0 + $0x58] sm:$0xff]  ;;  %v7840_v27 = vld [vmem:[#allocation5 + $0x80] ss:$16 sps:$4 sm:$0xff]   ;;  %v7842_v29 = vld [vmem:[#allocation5 + $0x64] ss:$16 sps:$4 sm:$0xff]   ;;  %v6903_v9 = vadd.s32 4294967040, %v8770_v19 }
  0x30   :  { %239 = vperm.xlu1 %7817, %v8746_v5   ;;  %236 = vperm.xlu0 %7816, %v8751_v6   ;;  %v7844_v30 = vld [vmem:[#allocation5 + $0x6c] ss:$16 sps:$4 sm:$0xff]   ;;  %v8799_v32 = vld [vmem:[%s11335_s0 + $0x60] sm:$0xff]  ;;  %v7847_v34 = vld [vmem:[#allocation5 + $0x68] ss:$16 sps:$4 sm:$0xff]   ;;  %v6902_v12 = vadd.s32 4294967040, %v8775_v20 }
  0x31   :  { %953 = vmatprep.subr.bf16.mxu1 %v7832_v18  ;;  %v8794_v31 = vld [vmem:[%s11335_s0 + $0x68] sm:$0xff]  ;;  %v7846_v33 = vld [vmem:[#allocation5 + $0x60] ss:$16 sps:$4 sm:$0xff]   ;;  %v7848_v35 = vld [vmem:[#allocation5 + $0x44] ss:$16 sps:$4 sm:$0xff]   ;;  %v6905_v17 = vadd.s32 4294967040, %v8782_v25 }
  0x32   :  { %841 = vmatpush1.bf16.msra.mxu0 %v7834_v21  ;;  %v7850_v36 = vld [vmem:[#allocation5 + $0x4c] ss:$16 sps:$4 sm:$0xff]   ;;  %v8811_v38 = vld [vmem:[%s11335_s0 + $0x70] sm:$0xff]  ;;  %v7853_v40 = vld [vmem:[#allocation5 + $0x48] ss:$16 sps:$4 sm:$0xff]   ;;  %v6904_v18 = vadd.s32 4294967040, %v8787_v26 }
  0x33   :  { %954 = vmatpush1.bf16.msra.mxu1 %v7835_v22  ;;  %842 = vmatprep.subr.bf16.mxu0 %v7836_v23  ;;  %v8806_v37 = vld [vmem:[%s11335_s0 + $0x78] sm:$0xff]  ;;  %v7852_v39 = vld [vmem:[#allocation5 + $0x40] ss:$16 sps:$4 sm:$0xff]   ;;  %v7854_v41 = vld [vmem:[#allocation5 + $0x24] ss:$16 sps:$4 sm:$0xff]   ;;  %s8681_s0 = smov [#allocation8]  }
  0x34   :  { %245 = vperm.xlu1 %7817, %v8756_v10   ;;  %242 = vperm.xlu0 %7816, %v8761_v11   ;;  %v7856_v42 = vld [vmem:[#allocation5 + $0x2c] ss:$16 sps:$4 sm:$0xff]   ;;  %v7858_v45 = vld [vmem:[#allocation5 + $0x20] ss:$16 sps:$4 sm:$0xff]   ;;  %v7859_v46 = vld [vmem:[#allocation5 + $0x28] ss:$16 sps:$4 sm:$0xff]  }
  0x35   :  { %955 = vmatprep.subr.bf16.mxu1 %v7838_v24  ;;  %v7860_v47 = vld [vmem:[#allocation5 + $0x4] ss:$16 sps:$4 sm:$0xff]   ;;  %v7862_v48 = vld [vmem:[#allocation5 + $0xc] ss:$16 sps:$4 sm:$0xff]   ;;  %v7864_v51 = vld [vmem:[#allocation5] ss:$16 sps:$4 sm:$0xff]  }
  0x36   :  { %843 = vmatpush1.bf16.msra.mxu0 %v7840_v27  ;;  %v7865_v52 = vld [vmem:[#allocation5 + $0x8] ss:$16 sps:$4 sm:$0xff]   ;;  %v7866_v53 = vld [vmem:[#allocation5 + $0x1e4] ss:$16 sps:$4 sm:$0xff]   ;;  %v7868_v54 = vld [vmem:[#allocation5 + $0x1ec] ss:$16 sps:$4 sm:$0xff]  }
  0x37   :  { %956 = vmatpush1.bf16.msra.mxu1 %v7841_v28  ;;  %844 = vmatprep.subr.bf16.mxu0 %v7842_v29  ;;  %v7870_v57 = vld [vmem:[#allocation5 + $0x1e0] ss:$16 sps:$4 sm:$0xff]   ;;  %v7871_v58 = vld [vmem:[#allocation5 + $0x1e8] ss:$16 sps:$4 sm:$0xff]   ;;  %v7872_v59 = vld [vmem:[#allocation5 + $0x1c4] ss:$16 sps:$4 sm:$0xff]  }
  0x38   :  { %251 = vperm.xlu1 %7817, %v8770_v19   ;;  %248 = vperm.xlu0 %7816, %v8775_v20   ;;  %v7874_v60 = vld [vmem:[#allocation5 + $0x1cc] ss:$16 sps:$4 sm:$0xff]   ;;  %v7876_v63 = vld [vmem:[#allocation5 + $0x1c0] ss:$16 sps:$4 sm:$0xff]   ;;  %v7877_v0 = vld [vmem:[#allocation5 + $0x1c8] ss:$16 sps:$4 sm:$0xff]  }
  0x39   :  { %957 = vmatprep.subr.bf16.mxu1 %v7844_v30  ;;  %v7878_v7 = vld [vmem:[#allocation5 + $0x1a4] ss:$16 sps:$4 sm:$0xff]   ;;  %v7880_v8 = vld [vmem:[#allocation5 + $0x1ac] ss:$16 sps:$4 sm:$0xff]   ;;  %v7882_v13 = vld [vmem:[#allocation5 + $0x1a0] ss:$16 sps:$4 sm:$0xff]  }
  0x3a   :  { %845 = vmatpush1.bf16.msra.mxu0 %v7846_v33  ;;  %v7883_v14 = vld [vmem:[#allocation5 + $0x1a8] ss:$16 sps:$4 sm:$0xff]   ;;  %v7884_v15 = vld [vmem:[#allocation5 + $0x184] ss:$16 sps:$4 sm:$0xff]   ;;  %v7886_v16 = vld [vmem:[#allocation5 + $0x18c] ss:$16 sps:$4 sm:$0xff]  }
  0x3b   :  { %958 = vmatpush1.bf16.msra.mxu1 %v7847_v34  ;;  %846 = vmatprep.subr.bf16.mxu0 %v7848_v35  ;;  %v7888_v21 = vld [vmem:[#allocation5 + $0x180] ss:$16 sps:$4 sm:$0xff]   ;;  %v7889_v22 = vld [vmem:[#allocation5 + $0x188] ss:$16 sps:$4 sm:$0xff]   ;;  %v7890_v23 = vld [vmem:[#allocation5 + $0x164] ss:$16 sps:$4 sm:$0xff]  }
  0x3c   :  { %257 = vperm.xlu1 %7817, %v8782_v25   ;;  %254 = vperm.xlu0 %7816, %v8787_v26   ;;  %v7892_v24 = vld [vmem:[#allocation5 + $0x16c] ss:$16 sps:$4 sm:$0xff]   ;;  %v6907_v27 = vadd.s32 4294967040, %v8794_v31  ;;  %v6906_v28 = vadd.s32 4294967040, %v8799_v32  ;;  %v7894_v29 = vld [vmem:[#allocation5 + $0x160] ss:$16 sps:$4 sm:$0xff]  }
  0x3d   :  { %959 = vmatprep.subr.bf16.mxu1 %v7850_v36  ;;  %v7895_v30 = vld [vmem:[#allocation5 + $0x168] ss:$16 sps:$4 sm:$0xff]   ;;  %v7896_v33 = vld [vmem:[#allocation5 + $0x144] ss:$16 sps:$4 sm:$0xff]   ;;  %v7898_v34 = vld [vmem:[#allocation5 + $0x14c] ss:$16 sps:$4 sm:$0xff]  }
  0x3e   :  { %847 = vmatpush1.bf16.msra.mxu0 %v7852_v39  ;;  %v6909_v35 = vadd.s32 4294967040, %v8806_v37  ;;  %v6908_v36 = vadd.s32 4294967040, %v8811_v38  ;;  %v7900_v39 = vld [vmem:[#allocation5 + $0x140] ss:$16 sps:$4 sm:$0xff]   ;;  %s6587_s10 = sshll.u32 %s8681_s0, 4  ;;  %s6588_s10 = int_to_ptr.vmem [resolvable:$true] %s6587_s10 }
  0x3f   :  { %960 = vmatpush1.bf16.msra.mxu1 %v7853_v40  ;;  %848 = vmatprep.subr.bf16.mxu0 %v7854_v41  ;;  %v7901_v40 = vld [vmem:[#allocation5 + $0x148] ss:$16 sps:$4 sm:$0xff]   ;;  %v7902_v41 = vld [vmem:[#allocation5 + $0x124] ss:$16 sps:$4 sm:$0xff]   ;;  %s8646_s11 = scalar_lea.vmem %s6588_s10, 8192  ;;  %p8651_p2 = scmp.lt.s32.totalorder %s6588_s10, %s6588_s10 }
  0x40   :  { %263 = vperm.xlu1 %7817, %v8794_v31   ;;  %260 = vperm.xlu0 %7816, %v8799_v32   ;;  %p8647_p1 = scmp.ne.s32.totalorder %s6588_s10, %s8646_s11  ;;  %p8652_p3 = scmp.lt.s32.totalorder %s8646_s11, %s8646_s11 }
  0x41   :  { %961 = vmatprep.subr.bf16.mxu1 %v7856_v42  ;;  %v7904_v42 = vld [vmem:[#allocation5 + $0x12c] ss:$16 sps:$4 sm:$0xff]  }
  0x42   :  { %849 = vmatpush1.bf16.msra.mxu0 %v7858_v45  ;;  %v7906_v45 = vld [vmem:[#allocation5 + $0x120] ss:$16 sps:$4 sm:$0xff]   ;;  %p8653_p4 = por %p8652_p3, %p8651_p2 }
  0x43   :  { %962 = vmatpush1.bf16.msra.mxu1 %v7859_v46  ;;  %850 = vmatprep.subr.bf16.mxu0 %v7860_v47  ;;  %v7907_v46 = vld [vmem:[#allocation5 + $0x128] ss:$16 sps:$4 sm:$0xff]   ;;  %v7908_v47 = vld [vmem:[#allocation5 + $0x104] ss:$16 sps:$4 sm:$0xff]  }
  0x44   :  { %269 = vperm.xlu1 %7817, %v8806_v37   ;;  %266 = vperm.xlu0 %7816, %v8811_v38   ;;  %p8654_p5 = pnand %p8653_p4, %p8647_p1 }
  0x45   :  { %963 = vmatprep.subr.bf16.mxu1 %v7862_v48  ;;  %v7910_v48 = vld [vmem:[#allocation5 + $0x10c] ss:$16 sps:$4 sm:$0xff]  }
  0x46   :  { %851 = vmatpush1.bf16.msra.mxu0 %v7864_v51  ;;  %v7912_v51 = vld [vmem:[#allocation5 + $0x100] ss:$16 sps:$4 sm:$0xff]  }
  0x47   :  { %964 = vmatpush1.bf16.msra.mxu1 %v7865_v52  ;;  %852 = vmatprep.subr.bf16.mxu0 %v7866_v53  ;;  %v7913_v52 = vld [vmem:[#allocation5 + $0x108] ss:$16 sps:$4 sm:$0xff]   ;;  %v7916_v53 = vld [vmem:[#allocation2 + $0xe4] ss:$16 sps:$4 sm:$0xff]  }
  0x48   :  { %1821 = vperm.xlu1 %7817, %v6895_v43   ;;  %1818 = vperm.xlu0 %7816, %v6894_v44   ;;  %v7199_v43 = vadd.s32 4294966784, %v8739_v4  ;;  %v7198_v44 = vadd.s32 4294966784, %v8727_v2 }
  0x49   :  { %965 = vmatprep.subr.bf16.mxu1 %v7868_v54  ;;  %v7919_v54 = vld [vmem:[#allocation2 + $0xec] ss:$16 sps:$4 sm:$0xff]  }
  0x4a   :  { %853 = vmatpush2.bf16.msra.mxu0 %v7870_v57  ;;  %v7205_v57 = vadd.s32 4294966784, %v8756_v10 }
  0x4b   :  { %966 = vmatpush2.bf16.msra.mxu1 %v7871_v58  ;;  %854 = vmatprep.subr.bf16.mxu0 %v7872_v59  ;;  %v7204_v58 = vadd.s32 4294966784, %v8761_v11  ;;  %v7207_v59 = vadd.s32 4294966784, %v8770_v19 }
  0x4c   :  { %1827 = vperm.xlu1 %7817, %v6897_v49   ;;  %1824 = vperm.xlu0 %7816, %v6896_v50   ;;  %v7201_v49 = vadd.s32 4294966784, %v8734_v3  ;;  %v7200_v50 = vadd.s32 4294966784, %v8722_v1 }
  0x4d   :  { %967 = vmatprep.subr.bf16.mxu1 %v7874_v60  ;;  %v7206_v60 = vadd.s32 4294966784, %v8775_v20 }
  0x4e   :  { %855 = vmatpush2.bf16.msra.mxu0 %v7876_v63  ;;  %v7211_v63 = vadd.s32 4294966784, %v8794_v31 }
  0x4f   :  { %968 = vmatpush2.bf16.msra.mxu1 %v7877_v0  ;;  %856 = vmatprep.subr.bf16.mxu0 %v7878_v7  ;;  %v7210_v0 = vadd.s32 4294966784, %v8799_v32  ;;  %v7213_v7 = vadd.s32 4294966784, %v8806_v37 }
  0x50   :  { %1833 = vperm.xlu1 %7817, %v6899_v55   ;;  %1830 = vperm.xlu0 %7816, %v6898_v56   ;;  %v7203_v55 = vadd.s32 4294966784, %v8746_v5  ;;  %v7202_v56 = vadd.s32 4294966784, %v8751_v6 }
  0x51   :  { %969 = vmatprep.subr.bf16.mxu1 %v7880_v8  ;;  %v7212_v8 = vadd.s32 4294966784, %v8811_v38 }
  0x52   :  { %857 = vmatpush2.bf16.msra.mxu0 %v7882_v13  ;;  %v7505_v13 = vadd.s32 4294966528, %v8734_v3  ;;  %v7510_v3 = vadd.s32 4294966528, %v8775_v20  ;;  %v7516_v20 = vadd.s32 4294966528, %v8811_v38  ;;  %v7917_v38 = vld [vmem:[#allocation2 + $0xe8] ss:$16 sps:$4 sm:$0xff]  }
  0x53   :  { %970 = vmatpush2.bf16.msra.mxu1 %v7883_v14  ;;  %858 = vmatprep.subr.bf16.mxu0 %v7884_v15  ;;  %v7504_v14 = vadd.s32 4294966528, %v8722_v1  ;;  %v7507_v15 = vadd.s32 4294966528, %v8746_v5  ;;  %v7513_v1 = vadd.s32 4294966528, %v8782_v25  ;;  %v7512_v5 = vadd.s32 4294966528, %v8787_v26 }
  0x54   :  { %1839 = vperm.xlu1 %7817, %v6901_v61   ;;  %1836 = vperm.xlu0 %7816, %v6900_v62   ;;  %v7209_v61 = vadd.s32 4294966784, %v8782_v25  ;;  %v7208_v62 = vadd.s32 4294966784, %v8787_v26 }
  0x55   :  { %971 = vmatprep.subr.bf16.mxu1 %v7886_v16  ;;  %v7506_v16 = vadd.s32 4294966528, %v8751_v6  ;;  %v7515_v6 = vadd.s32 4294966528, %v8794_v31 }
  0x56   :  { %859 = vmatpush2.bf16.msra.mxu0 %v7888_v21 }
  0x57   :  { %972 = vmatpush2.bf16.msra.mxu1 %v7889_v22  ;;  %860 = vmatprep.subr.bf16.mxu0 %v7890_v23  ;;  %v8016_v23 = vld [vmem:[#allocation5 + $0x2c0] ss:$16 sps:$4 sm:$0xff]  }
  0x58   :  { %1845 = vperm.xlu1 %7817, %v6903_v9   ;;  %1842 = vperm.xlu0 %7816, %v6902_v12   ;;  %v7503_v9 = vadd.s32 4294966528, %v8739_v4  ;;  %v7502_v12 = vadd.s32 4294966528, %v8727_v2  ;;  %v7508_v4 = vadd.s32 4294966528, %v8761_v11  ;;  %v7511_v2 = vadd.s32 4294966528, %v8770_v19 }
  0x59   :  { %973 = vmatprep.subr.bf16.mxu1 %v7892_v24  ;;  %v7517_v11 = vadd.s32 4294966528, %v8806_v37  ;;  %v7922_v24 = vld [vmem:[#allocation2 + $0xc4] ss:$16 sps:$4 sm:$0xff]   ;;  %v8028_v37 = vld [vmem:[#allocation5 + $0x280] ss:$16 sps:$4 sm:$0xff]  }
  0x5a   :  { %861 = vmatpush2.bf16.msra.mxu0 %v7894_v29  ;;  %v7925_v29 = vld [vmem:[#allocation2 + $0xcc] ss:$16 sps:$4 sm:$0xff]  }
  0x5b   :  { %974 = vmatpush2.bf16.msra.mxu1 %v7895_v30  ;;  %862 = vmatprep.subr.bf16.mxu0 %v7896_v33  ;;  %v7920_v30 = vld [vmem:[#allocation2 + $0xc0] ss:$16 sps:$4 sm:$0xff]   ;;  %v7923_v33 = vld [vmem:[#allocation2 + $0xc8] ss:$16 sps:$4 sm:$0xff]  }
  0x5c   :  { %1851 = vperm.xlu1 %7817, %v6905_v17   ;;  %1848 = vperm.xlu0 %7816, %v6904_v18   ;;  %v7509_v17 = vadd.s32 4294966528, %v8756_v10  ;;  %v7514_v10 = vadd.s32 4294966528, %v8799_v32  ;;  %v203_v18 = vlaneseq  ;;  %v7914_v32 = vld [vmem:[#allocation2 + $0xe0] ss:$16 sps:$4 sm:$0xff]  }
  0x5d   :  { %975 = vmatprep.subr.bf16.mxu1 %v7898_v34  ;;  %v7928_v34 = vld [vmem:[#allocation2 + $0xa4] ss:$16 sps:$4 sm:$0xff]  }
  0x5e   :  { %863 = vmatpush2.bf16.msra.mxu0 %v7900_v39  ;;  %v8862_v19 = vand.u32 127, %v203_v18  ;;  %v7968_v18 = vld [vmem:[#allocation2 + $0x1c0] ss:$16 sps:$4 sm:$0xff]  }
  0x5f   :  { %976 = vmatpush2.bf16.msra.mxu1 %v7901_v40  ;;  %864 = vmatprep.subr.bf16.mxu0 %v7902_v41  ;;  %v7926_v40 = vld [vmem:[#allocation2 + $0xa0] ss:$16 sps:$4 sm:$0xff]   ;;  %v7929_v41 = vld [vmem:[#allocation2 + $0xa8] ss:$16 sps:$4 sm:$0xff]  }
  0x60   :  { %1857 = vperm.xlu1 %7817, %v6907_v27   ;;  %1854 = vperm.xlu0 %7816, %v6906_v28   ;;  %v8866_v25 = vadd.s32 128, %v8862_v19  ;;  %v11352_v28 = vmov 1.0|1.0   ;;  %v8025_v27 = vld [vmem:[#allocation5 + $0x2a8] ss:$16 sps:$4 sm:$0xff]  }
  0x61   :  { %977 = vmatprep.subr.bf16.mxu1 %v7904_v42  ;;  %v7934_v42 = vld [vmem:[#allocation2 + $0x84] ss:$16 sps:$4 sm:$0xff]  }
  0x62   :  { %865 = vmatpush2.bf16.msra.mxu0 %v7906_v45  ;;  %v7932_v45 = vld [vmem:[#allocation2 + $0x80] ss:$16 sps:$4 sm:$0xff]  }
  0x63   :  { %978 = vmatpush2.bf16.msra.mxu1 %v7907_v46  ;;  %866 = vmatprep.subr.bf16.mxu0 %v7908_v47  ;;  %v7935_v47 = vld [vmem:[#allocation2 + $0x88] ss:$16 sps:$4 sm:$0xff]   ;;  %v8040_v46 = vld [vmem:[#allocation5 + $0x240] ss:$16 sps:$4 sm:$0xff]  }
  0x64   :  { %1863 = vperm.xlu1 %7817, %v6909_v35   ;;  %1860 = vperm.xlu0 %7816, %v6908_v36   ;;  %v7931_v35 = vld [vmem:[#allocation2 + $0xac] ss:$16 sps:$4 sm:$0xff]  }
  0x65   :  { %979 = vmatprep.subr.bf16.mxu1 %v7910_v48  ;;  %v7940_v48 = vld [vmem:[#allocation2 + $0x64] ss:$16 sps:$4 sm:$0xff]  }
  0x66   :  { %867 = vmatpush2.bf16.msra.mxu0 %v7912_v51 }
  0x67   :  { %980 = vmatpush2.bf16.msra.mxu1 %v7913_v52  ;;  %1382 = vmatprep.subr.bf16.mxu0 %v7916_v53  ;;  %v7938_v52 = vld [vmem:[#allocation2 + $0x60] ss:$16 sps:$4 sm:$0xff]   ;;  %v7941_v53 = vld [vmem:[#allocation2 + $0x68] ss:$16 sps:$4 sm:$0xff]  }
  0x68   :  { %3415 = vperm.xlu1 %7817, %v7199_v43   ;;  %3412 = vperm.xlu0 %7816, %v7198_v44   ;;  %v7937_v44 = vld [vmem:[#allocation2 + $0x8c] ss:$16 sps:$4 sm:$0xff]   ;;  %v8037_v43 = vld [vmem:[#allocation5 + $0x268] ss:$16 sps:$4 sm:$0xff]  }
  0x69   :  { %1495 = vmatprep.subr.bf16.mxu1 %v7919_v54  ;;  %v7946_v54 = vld [vmem:[#allocation2 + $0x44] ss:$16 sps:$4 sm:$0xff]  }
  0x6c   :  { %3421 = vperm.xlu1 %7817, %v7201_v49   ;;  %3418 = vperm.xlu0 %7816, %v7200_v50   ;;  %v7943_v49 = vld [vmem:[#allocation2 + $0x6c] ss:$16 sps:$4 sm:$0xff]  }
  0x70   :  { %3427 = vperm.xlu1 %7817, %v7203_v55   ;;  %3424 = vperm.xlu0 %7816, %v7202_v56   ;;  %v7949_v56 = vld [vmem:[#allocation2 + $0x4c] ss:$16 sps:$4 sm:$0xff]   ;;  %v8049_v55 = vld [vmem:[#allocation5 + $0x228] ss:$16 sps:$4 sm:$0xff]  }
  0x74   :  { %3433 = vperm.xlu1 %7817, %v7205_v57   ;;  %3430 = vperm.xlu0 %7816, %v7204_v58   ;;  %v7944_v57 = vld [vmem:[#allocation2 + $0x40] ss:$16 sps:$4 sm:$0xff]  }
  0x75   :  { %v8052_v58 = vld [vmem:[#allocation5 + $0x200] ss:$16 sps:$4 sm:$0xff]  }
  0x78   :  { %3439 = vperm.xlu1 %7817, %v7207_v59   ;;  %3436 = vperm.xlu0 %7816, %v7206_v60   ;;  %v7947_v59 = vld [vmem:[#allocation2 + $0x48] ss:$16 sps:$4 sm:$0xff]   ;;  %v7952_v60 = vld [vmem:[#allocation2 + $0x24] ss:$16 sps:$4 sm:$0xff]  }
  0x7c   :  { %3445 = vperm.xlu1 %7817, %v7209_v61   ;;  %3442 = vperm.xlu0 %7816, %v7208_v62   ;;  %v7955_v61 = vld [vmem:[#allocation2 + $0x2c] ss:$16 sps:$4 sm:$0xff]  }
  0x80   :  { %3451 = vperm.xlu1 %7817, %v7211_v63   ;;  %3448 = vperm.xlu0 %7816, %v7210_v0   ;;  %v7950_v0 = vld [vmem:[#allocation2 + $0x20] ss:$16 sps:$4 sm:$0xff]  }
  0x84   :  { %3457 = vperm.xlu1 %7817, %v7213_v7   ;;  %3454 = vperm.xlu0 %7816, %v7212_v8   ;;  %v7953_v7 = vld [vmem:[#allocation2 + $0x28] ss:$16 sps:$4 sm:$0xff]   ;;  %v7958_v8 = vld [vmem:[#allocation2 + $0x4] ss:$16 sps:$4 sm:$0xff]  }
  0x88   :  { %5009 = vperm.xlu1 %7817, %v7503_v9   ;;  %5006 = vperm.xlu0 %7816, %v7502_v12   ;;  %v7956_v12 = vld [vmem:[#allocation2] ss:$16 sps:$4 sm:$0xff]   ;;  %v8061_v9 = vld [vmem:[#allocation5 + $0x3e8] ss:$16 sps:$4 sm:$0xff]  }
  0x8c   :  { %5015 = vperm.xlu1 %7817, %v7505_v13   ;;  %5012 = vperm.xlu0 %7816, %v7504_v14   ;;  %v7961_v13 = vld [vmem:[#allocation2 + $0xc] ss:$16 sps:$4 sm:$0xff]   ;;  %v7959_v14 = vld [vmem:[#allocation2 + $0x8] ss:$16 sps:$4 sm:$0xff]  }
  0x90   :  { %5021 = vperm.xlu1 %7817, %v7507_v15   ;;  %5018 = vperm.xlu0 %7816, %v7506_v16   ;;  %v7964_v16 = vld [vmem:[#allocation2 + $0x1e4] ss:$16 sps:$4 sm:$0xff]   ;;  %v8064_v15 = vld [vmem:[#allocation5 + $0x3c0] ss:$16 sps:$4 sm:$0xff]  }
  0x94   :  { %5027 = vperm.xlu1 %7817, %v7509_v17   ;;  %5024 = vperm.xlu0 %7816, %v7508_v4   ;;  %v7967_v17 = vld [vmem:[#allocation2 + $0x1ec] ss:$16 sps:$4 sm:$0xff]  }
  0x98   :  { %5033 = vperm.xlu1 %7817, %v7511_v2   ;;  %5030 = vperm.xlu0 %7816, %v7510_v3   ;;  %v7962_v3 = vld [vmem:[#allocation2 + $0x1e0] ss:$16 sps:$4 sm:$0xff]  }
  0x9c   :  { %5039 = vperm.xlu1 %7817, %v7513_v1   ;;  %5036 = vperm.xlu0 %7816, %v7512_v5   ;;  %v7965_v1 = vld [vmem:[#allocation2 + $0x1e8] ss:$16 sps:$4 sm:$0xff]   ;;  %v7970_v5 = vld [vmem:[#allocation2 + $0x1c4] ss:$16 sps:$4 sm:$0xff]  }
  0xa0   :  { %5045 = vperm.xlu1 %7817, %v7515_v6   ;;  %5042 = vperm.xlu0 %7816, %v7514_v10   ;;  %v7973_v10 = vld [vmem:[#allocation2 + $0x1cc] ss:$16 sps:$4 sm:$0xff]   ;;  %v8073_v6 = vld [vmem:[#allocation5 + $0x3a8] ss:$16 sps:$4 sm:$0xff]  }
  0xa3   :  { %v231_v21 = vpop.permute.xlu1 %230  ;;  %v225_v22 = vpop.permute.xlu0 %224 }
  0xa4   :  { %5051 = vperm.xlu1 %7817, %v7517_v11   ;;  %5048 = vperm.xlu0 %7816, %v7516_v20   ;;  %vm276_vm0 = vcmp.eq.s32.totalorder %v231_v21, %v8866_v25  ;;  %vm272_vm4 = vcmp.eq.s32.totalorder %v225_v22, %v8866_v25  ;;  %vm271_vm6 = vcmp.eq.s32.totalorder %v225_v22, %v8862_v19  ;;  %v7971_v11 = vld [vmem:[#allocation2 + $0x1c8] ss:$16 sps:$4 sm:$0xff]   ;;  %v7979_v22 = vld [vmem:[#allocation2 + $0x1ac] ss:$16 sps:$4 sm:$0xff]   ;;  %v8076_v20 = vld [vmem:[#allocation5 + $0x380] ss:$16 sps:$4 sm:$0xff]  }
  0xa5   :  { %vm275_vm9 = vcmp.eq.s32.totalorder %v231_v21, %v8862_v19  ;;  %v7976_v21 = vld [vmem:[#allocation2 + $0x1a4] ss:$16 sps:$4 sm:$0xff]  }
  0xa7   :  { %v234_v26 = vpop.permute.xlu1 %233  ;;  %v228_v31 = vpop.permute.xlu0 %227 }
  0xa8   :  { %vm278_vm1 = vcmp.eq.s32.totalorder %v234_v26, %v8866_v25  ;;  %vm274_vm2 = vcmp.eq.s32.totalorder %v228_v31, %v8866_v25  ;;  %vm273_vm3 = vcmp.eq.s32.totalorder %v228_v31, %v8862_v19  ;;  %vm277_vm10 = vcmp.eq.s32.totalorder %v234_v26, %v8862_v19 }
  0xa9   :  { %vm8873_vm5 = vmpackc.low %vm278_vm1, %vm276_vm0 }
  0xaa   :  { %vm8878_vm7 = vmpackc.low %vm274_vm2, %vm272_vm4 }
  0xab   :  { %vm8882_vm8 = vmpackc.low %vm273_vm3, %vm271_vm6  ;;  %6703 = vmatprep.mubr.msk.bf16.mxu0 %vm8878_vm7, %v11352_v28  ;;  %6735 = vmatprep.mubr.msk.bf16.mxu1 %vm8878_vm7, %v11352_v28  ;;  %v240_v36 = vpop.permute.xlu1 %239  ;;  %v237_v39 = vpop.permute.xlu0 %236 }
  0xac   :  { %6705 = vmatmul.mubr.msk.bf16.vlgmr.msra.gmra.mxu0 %vm8882_vm8, %v11352_v28  ;;  %6737 = vmatmul.mubr.msk.bf16.vlgmr.msra.gmra.mxu1 %vm8882_vm8, %v11352_v28  ;;  %vm282_vm11 = vcmp.eq.s32.totalorder %v240_v36, %v8866_v25  ;;  %vm280_vm12 = vcmp.eq.s32.totalorder %v237_v39, %v8866_v25  ;;  %vm8908_vm13 = vmpackc.low %vm277_vm10, %vm275_vm9  ;;  %vm281_vm15 = vcmp.eq.s32.totalorder %v240_v36, %v8862_v19  ;;  %v7988_v36 = vld [vmem:[#allocation2 + $0x164] ss:$16 sps:$4 sm:$0xff]  }
  0xad   :  { %1383 = vmatpush1.bf16.msra.mxu0 %v7914_v32  ;;  %1496 = vmatpush1.bf16.msra.mxu1 %v7917_v38  ;;  %vm8918_vm14 = vmpackc.low %vm282_vm11, %vm280_vm12  ;;  %vm279_vm0 = vcmp.eq.s32.totalorder %v237_v39, %v8862_v19  ;;  %v7974_v32 = vld [vmem:[#allocation2 + $0x1a0] ss:$16 sps:$4 sm:$0xff]   ;;  %v7977_v38 = vld [vmem:[#allocation2 + $0x1a8] ss:$16 sps:$4 sm:$0xff]  }
  0xae   :  { %6707 = vmatprep.mubr.msk.bf16.mxu0 %vm8873_vm5, %v11352_v28  ;;  %6739 = vmatprep.mubr.msk.bf16.mxu1 %vm8873_vm5, %v11352_v28  ;;  %vm8932_vm3 = vmpackc.low %vm281_vm15, %vm279_vm0  ;;  %v7991_v39 = vld [vmem:[#allocation2 + $0x16c] ss:$16 sps:$4 sm:$0xff]  }
  0xaf   :  { %1384 = vmatprep.subr.bf16.mxu0 %v7922_v24  ;;  %1497 = vmatprep.subr.bf16.mxu1 %v7925_v29  ;;  %v246_v50 = vpop.permute.xlu1 %245  ;;  %v243_v51 = vpop.permute.xlu0 %242  ;;  %v7982_v24 = vld [vmem:[#allocation2 + $0x184] ss:$16 sps:$4 sm:$0xff]   ;;  %v11394_v29 = vmov 0 }
  0xb0   :  { %vm286_vm1 = vcmp.eq.s32.totalorder %v246_v50, %v8866_v25  ;;  %vm284_vm2 = vcmp.eq.s32.totalorder %v243_v51, %v8866_v25  ;;  %vm285_vm6 = vcmp.eq.s32.totalorder %v246_v50, %v8862_v19  ;;  %vm283_vm9 = vcmp.eq.s32.totalorder %v243_v51, %v8862_v19  ;;  %v7995_v50 = vld [vmem:[#allocation2 + $0x148] ss:$16 sps:$4 sm:$0xff]   ;;  %v8100_v51 = vld [vmem:[#allocation5 + $0x300] ss:$16 sps:$4 sm:$0xff]  }
  0xb1   :  { %1385 = vmatpush1.bf16.msra.mxu0 %v7920_v30  ;;  %1498 = vmatpush1.bf16.msra.mxu1 %v7923_v33  ;;  %vm8942_vm4 = vmpackc.low %vm286_vm1, %vm284_vm2  ;;  %v7985_v30 = vld [vmem:[#allocation2 + $0x18c] ss:$16 sps:$4 sm:$0xff]   ;;  %v7980_v33 = vld [vmem:[#allocation2 + $0x180] ss:$16 sps:$4 sm:$0xff]  }
  0xb2   :  { %1386 = vmatprep.subr.bf16.mxu0 %v7928_v34  ;;  %1499 = vmatprep.subr.bf16.mxu1 %v7931_v35  ;;  %vm8956_vm12 = vmpackc.low %vm285_vm6, %vm283_vm9  ;;  %v7983_v34 = vld [vmem:[#allocation2 + $0x188] ss:$16 sps:$4 sm:$0xff]   ;;  %v11396_v35 = vmov 0 }
  0xb3   :  { %v252_v62 = vpop.permute.xlu1 %251  ;;  %v249_v63 = vpop.permute.xlu0 %248 }
  0xb4   :  { %6709 = vmatmul.mubr.msk.bf16.gmra.mxu0 %vm8908_vm13, %v11352_v28  ;;  %6741 = vmatmul.mubr.msk.bf16.gmra.mxu1 %vm8908_vm13, %v11352_v28  ;;  %vm290_vm10 = vcmp.eq.s32.totalorder %v252_v62, %v8866_v25  ;;  %vm288_vm11 = vcmp.eq.s32.totalorder %v249_v63, %v8866_v25  ;;  %vm289_vm0 = vcmp.eq.s32.totalorder %v252_v62, %v8862_v19  ;;  %v8007_v62 = vld [vmem:[#allocation2 + $0x108] ss:$16 sps:$4 sm:$0xff]  }
  0xb5   :  { %1387 = vmatpush1.bf16.msra.mxu0 %v7926_v40  ;;  %1500 = vmatpush1.bf16.msra.mxu1 %v7929_v41  ;;  %vm8966_vm15 = vmpackc.low %vm290_vm10, %vm288_vm11  ;;  %vm287_vm1 = vcmp.eq.s32.totalorder %v249_v63, %v8862_v19  ;;  %v8012_v63 = vld [vmem:[#allocation5 + $0x2e4] ss:$16 sps:$4 sm:$0xff]  }
  0xb6   :  { %6711 = vmatprep.mubr.msk.bf16.mxu0 %vm8918_vm14, %v11352_v28  ;;  %6743 = vmatprep.mubr.msk.bf16.mxu1 %vm8918_vm14, %v11352_v28  ;;  %vm8978_vm2 = vmpackc.low %vm289_vm0, %vm287_vm1 }
  0xb7   :  { %1388 = vmatprep.subr.bf16.mxu0 %v7934_v42  ;;  %1501 = vmatprep.subr.bf16.mxu1 %v7937_v44  ;;  %v258_v4 = vpop.permute.xlu1 %257  ;;  %v255_v2 = vpop.permute.xlu0 %254  ;;  %v7986_v42 = vld [vmem:[#allocation2 + $0x160] ss:$16 sps:$4 sm:$0xff]   ;;  %v7989_v44 = vld [vmem:[#allocation2 + $0x168] ss:$16 sps:$4 sm:$0xff]  }
  0xb8   :  { %vm294_vm6 = vcmp.eq.s32.totalorder %v258_v4, %v8866_v25  ;;  %vm292_vm9 = vcmp.eq.s32.totalorder %v255_v2, %v8866_v25  ;;  %vm293_vm11 = vcmp.eq.s32.totalorder %v258_v4, %v8862_v19  ;;  %vm291_vm0 = vcmp.eq.s32.totalorder %v255_v2, %v8862_v19  ;;  %v8022_v4 = vld [vmem:[#allocation5 + $0x2a0] ss:$16 sps:$4 sm:$0xff]   ;;  %v8030_v2 = vld [vmem:[#allocation5 + $0x284] ss:$16 sps:$4 sm:$0xff]  }
  0xb9   :  { %1389 = vmatpush1.bf16.msra.mxu0 %v7932_v45  ;;  %1502 = vmatpush1.bf16.msra.mxu1 %v7935_v47  ;;  %vm8990_vm10 = vmpackc.low %vm294_vm6, %vm292_vm9  ;;  %v7994_v45 = vld [vmem:[#allocation2 + $0x144] ss:$16 sps:$4 sm:$0xff]   ;;  %v11398_v47 = vmov 0 }
  0xba   :  { %1390 = vmatprep.subr.bf16.mxu0 %v7940_v48  ;;  %1503 = vmatprep.subr.bf16.mxu1 %v7943_v49  ;;  %vm9002_vm1 = vmpackc.low %vm293_vm11, %vm291_vm0  ;;  %v7997_v48 = vld [vmem:[#allocation2 + $0x14c] ss:$16 sps:$4 sm:$0xff]   ;;  %v7992_v49 = vld [vmem:[#allocation2 + $0x140] ss:$16 sps:$4 sm:$0xff]  }
  0xbb   :  { %v264_v26 = vpop.permute.xlu1 %263  ;;  %v261_v31 = vpop.permute.xlu0 %260  ;;  %v11395_v29 = vsel %vm9002_vm1, 4294967295, %v11394_v29 }
  0xbc   :  { %6713 = vmatmul.mubr.msk.bf16.gmra.mxu0 %vm8932_vm3, %v11352_v28  ;;  %6745 = vmatmul.mubr.msk.bf16.gmra.mxu1 %vm8932_vm3, %v11352_v28  ;;  %vm298_vm6 = vcmp.eq.s32.totalorder %v264_v26, %v8866_v25  ;;  %vm296_vm9 = vcmp.eq.s32.totalorder %v261_v31, %v8866_v25  ;;  %vm297_vm0 = vcmp.eq.s32.totalorder %v264_v26, %v8862_v19  ;;  %v8048_v26 = vld [vmem:[#allocation5 + $0x224] ss:$16 sps:$4 sm:$0xff]  }
  0xbd   :  { %1391 = vmatpush1.bf16.msra.mxu0 %v7938_v52  ;;  %1504 = vmatpush1.bf16.msra.mxu1 %v7941_v53  ;;  %vm9014_vm11 = vmpackc.low %vm298_vm6, %vm296_vm9  ;;  %v8000_v52 = vld [vmem:[#allocation2 + $0x124] ss:$16 sps:$4 sm:$0xff]   ;;  %v8003_v53 = vld [vmem:[#allocation2 + $0x12c] ss:$16 sps:$4 sm:$0xff]  }
  0xbe   :  { %6715 = vmatprep.mubr.msk.bf16.mxu0 %vm8942_vm4, %v11352_v28  ;;  %6747 = vmatprep.mubr.msk.bf16.mxu1 %vm8942_vm4, %v11352_v28  ;;  %v11397_v35 = vsel %vm9014_vm11, 4294967295, %v11396_v35 }
  0xbf   :  { %1392 = vmatprep.subr.bf16.mxu0 %v7946_v54  ;;  %1505 = vmatprep.subr.bf16.mxu1 %v7949_v56  ;;  %v270_v40 = vpop.permute.xlu1 %269  ;;  %v267_v41 = vpop.permute.xlu0 %266  ;;  %v7998_v54 = vld [vmem:[#allocation2 + $0x120] ss:$16 sps:$4 sm:$0xff]   ;;  %v8001_v56 = vld [vmem:[#allocation2 + $0x128] ss:$16 sps:$4 sm:$0xff]  }
  0xc0   :  { %vm302_vm9 = vcmp.eq.s32.totalorder %v270_v40, %v8866_v25 }
  0xc1   :  { %1393 = vmatpush1.bf16.msra.mxu0 %v7944_v57  ;;  %1506 = vmatpush1.bf16.msra.mxu1 %v7947_v59  ;;  %v8006_v57 = vld [vmem:[#allocation2 + $0x104] ss:$16 sps:$4 sm:$0xff]   ;;  %v8106_v59 = vld [vmem:[#allocation2 + $0x2e0] ss:$16 sps:$4 sm:$0xff]  }
  0xc2   :  { %1394 = vmatprep.subr.bf16.mxu0 %v7952_v60  ;;  %1507 = vmatprep.subr.bf16.mxu1 %v7955_v61  ;;  %v8009_v60 = vld [vmem:[#allocation2 + $0x10c] ss:$16 sps:$4 sm:$0xff]   ;;  %v8004_v61 = vld [vmem:[#allocation2 + $0x100] ss:$16 sps:$4 sm:$0xff]  }
  0xc4   :  { %6717 = vmatmul.mubr.msk.bf16.gmra.mxu0 %vm8956_vm12, %v11352_v28  ;;  %6749 = vmatmul.mubr.msk.bf16.gmra.mxu1 %vm8956_vm12, %v11352_v28 }
  0xc5   :  { %1395 = vmatpush1.bf16.msra.mxu0 %v7950_v0  ;;  %1508 = vmatpush1.bf16.msra.mxu1 %v7953_v7  ;;  %v8015_v0 = vld [vmem:[#allocation5 + $0x2ec] ss:$16 sps:$4 sm:$0xff]   ;;  %v8010_v7 = vld [vmem:[#allocation5 + $0x2e0] ss:$16 sps:$4 sm:$0xff]  }
  0xc6   :  { %6719 = vmatprep.mubr.msk.bf16.mxu0 %vm8966_vm15, %v11352_v28  ;;  %6751 = vmatprep.mubr.msk.bf16.mxu1 %vm8966_vm15, %v11352_v28 }
  0xc7   :  { %1396 = vmatprep.subr.bf16.mxu0 %v7958_v8  ;;  %1509 = vmatprep.subr.bf16.mxu1 %v7961_v13  ;;  %v8013_v8 = vld [vmem:[#allocation5 + $0x2e8] ss:$16 sps:$4 sm:$0xff]   ;;  %v8021_v13 = vld [vmem:[#allocation5 + $0x2cc] ss:$16 sps:$4 sm:$0xff]  }
  0xc9   :  { %1397 = vmatpush1.bf16.msra.mxu0 %v7956_v12  ;;  %1510 = vmatpush1.bf16.msra.mxu1 %v7959_v14  ;;  %v8018_v12 = vld [vmem:[#allocation5 + $0x2c4] ss:$16 sps:$4 sm:$0xff]   ;;  %v8019_v14 = vld [vmem:[#allocation5 + $0x2c8] ss:$16 sps:$4 sm:$0xff]  }
  0xca   :  { %1398 = vmatprep.subr.bf16.mxu0 %v7964_v16  ;;  %1511 = vmatprep.subr.bf16.mxu1 %v7967_v17  ;;  %v8024_v16 = vld [vmem:[#allocation5 + $0x2a4] ss:$16 sps:$4 sm:$0xff]   ;;  %v8027_v17 = vld [vmem:[#allocation5 + $0x2ac] ss:$16 sps:$4 sm:$0xff]  }
  0xcc   :  { %6721 = vmatmul.mubr.msk.bf16.gmra.mxu0 %vm8978_vm2, %v11352_v28  ;;  %6753 = vmatmul.mubr.msk.bf16.gmra.mxu1 %vm8978_vm2, %v11352_v28 }
  0xcd   :  { %1399 = vmatpush2.bf16.msra.mxu0 %v7962_v3  ;;  %1512 = vmatpush2.bf16.msra.mxu1 %v7965_v1  ;;  %v8033_v3 = vld [vmem:[#allocation5 + $0x28c] ss:$16 sps:$4 sm:$0xff]   ;;  %v8031_v1 = vld [vmem:[#allocation5 + $0x288] ss:$16 sps:$4 sm:$0xff]  }
  0xce   :  { %6723 = vmatprep.mubr.msk.bf16.mxu0 %vm8990_vm10, %v11352_v28  ;;  %6755 = vmatprep.mubr.msk.bf16.mxu1 %vm8990_vm10, %v11352_v28 }
  0xcf   :  { %1400 = vmatprep.subr.bf16.mxu0 %v7970_v5  ;;  %1513 = vmatprep.subr.bf16.mxu1 %v7973_v10  ;;  %v8036_v5 = vld [vmem:[#allocation5 + $0x264] ss:$16 sps:$4 sm:$0xff]   ;;  %v8039_v10 = vld [vmem:[#allocation5 + $0x26c] ss:$16 sps:$4 sm:$0xff]  }
  0xd1   :  { %1401 = vmatpush2.bf16.msra.mxu0 %v7968_v18  ;;  %1514 = vmatpush2.bf16.msra.mxu1 %v7971_v11  ;;  %v8034_v18 = vld [vmem:[#allocation5 + $0x260] ss:$16 sps:$4 sm:$0xff]   ;;  %v8042_v11 = vld [vmem:[#allocation5 + $0x244] ss:$16 sps:$4 sm:$0xff]  }
  0xd2   :  { %1402 = vmatprep.subr.bf16.mxu0 %v7976_v21  ;;  %1515 = vmatprep.subr.bf16.mxu1 %v7979_v22  ;;  %v8045_v21 = vld [vmem:[#allocation5 + $0x24c] ss:$16 sps:$4 sm:$0xff]   ;;  %v8043_v22 = vld [vmem:[#allocation5 + $0x248] ss:$16 sps:$4 sm:$0xff]  }
  0xd4   :  { %6725 = vmatmul.mubr.msk.bf16.gmra.mxu0 %vm9002_vm1, %v11352_v28  ;;  %6757 = vmatmul.mubr.msk.bf16.gmra.mxu1 %vm9002_vm1, %v11352_v28  ;;  %vm295_vm1 = vcmp.eq.s32.totalorder %v261_v31, %v8862_v19  ;;  %v8051_v31 = vld [vmem:[#allocation5 + $0x22c] ss:$16 sps:$4 sm:$0xff]  }
  0xd5   :  { %1403 = vmatpush2.bf16.msra.mxu0 %v7974_v32  ;;  %1516 = vmatpush2.bf16.msra.mxu1 %v7977_v38  ;;  %vm9026_vm6 = vmpackc.low %vm297_vm0, %vm295_vm1  ;;  %vm301_vm0 = vcmp.eq.s32.totalorder %v270_v40, %v8862_v19  ;;  %v8046_v32 = vld [vmem:[#allocation5 + $0x220] ss:$16 sps:$4 sm:$0xff]   ;;  %v8054_v38 = vld [vmem:[#allocation5 + $0x204] ss:$16 sps:$4 sm:$0xff]  }
  0xd6   :  { %6727 = vmatprep.mubr.msk.bf16.mxu0 %vm9014_vm11, %v11352_v28  ;;  %6759 = vmatprep.mubr.msk.bf16.mxu1 %vm9014_vm11, %v11352_v28  ;;  %v11399_v47 = vsel %vm9026_vm6, 4294967295, %v11398_v47  ;;  %vm300_vm11 = vcmp.eq.s32.totalorder %v267_v41, %v8866_v25  ;;  %v8069_v40 = vld [vmem:[#allocation5 + $0x3cc] ss:$16 sps:$4 sm:$0xff]  }
  0xd7   :  { %1404 = vmatprep.subr.bf16.mxu0 %v7982_v24  ;;  %1517 = vmatprep.subr.bf16.mxu1 %v7985_v30  ;;  %vm9038_vm1 = vmpackc.low %vm302_vm9, %vm300_vm11  ;;  %v8057_v24 = vld [vmem:[#allocation5 + $0x20c] ss:$16 sps:$4 sm:$0xff]   ;;  %v8055_v30 = vld [vmem:[#allocation5 + $0x208] ss:$16 sps:$4 sm:$0xff]  }
  0xd9   :  { %1405 = vmatpush2.bf16.msra.mxu0 %v7980_v33  ;;  %1518 = vmatpush2.bf16.msra.mxu1 %v7983_v34  ;;  %v8060_v33 = vld [vmem:[#allocation5 + $0x3e4] ss:$16 sps:$4 sm:$0xff]   ;;  %v8063_v34 = vld [vmem:[#allocation5 + $0x3ec] ss:$16 sps:$4 sm:$0xff]  }
  0xda   :  { %1406 = vmatprep.subr.bf16.mxu0 %v7988_v36  ;;  %1519 = vmatprep.subr.bf16.mxu1 %v7991_v39  ;;  %v8058_v36 = vld [vmem:[#allocation5 + $0x3e0] ss:$16 sps:$4 sm:$0xff]   ;;  %v8066_v39 = vld [vmem:[#allocation5 + $0x3c4] ss:$16 sps:$4 sm:$0xff]  }
  0xdc   :  { %6729 = vmatmul.mubr.msk.bf16.gmra.mxu0 %vm9026_vm6, %v11352_v28  ;;  %6761 = vmatmul.mubr.msk.bf16.gmra.mxu1 %vm9026_vm6, %v11352_v28  ;;  %vm299_vm6 = vcmp.eq.s32.totalorder %v267_v41, %v8862_v19  ;;  %v8067_v41 = vld [vmem:[#allocation5 + $0x3c8] ss:$16 sps:$4 sm:$0xff]  }
  0xdd   :  { %1407 = vmatpush2.bf16.msra.mxu0 %v7986_v42  ;;  %1520 = vmatpush2.bf16.msra.mxu1 %v7989_v44  ;;  %vm9050_vm11 = vmpackc.low %vm301_vm0, %vm299_vm6  ;;  %v8072_v42 = vld [vmem:[#allocation5 + $0x3a4] ss:$16 sps:$4 sm:$0xff]   ;;  %v8075_v44 = vld [vmem:[#allocation5 + $0x3ac] ss:$16 sps:$4 sm:$0xff]  }
  0xde   :  { %6731 = vmatprep.mubr.msk.bf16.mxu0 %vm9038_vm1, %v11352_v28  ;;  %6763 = vmatprep.mubr.msk.bf16.mxu1 %vm9038_vm1, %v11352_v28 }
  0xdf   :  { %1408 = vmatprep.subr.bf16.mxu0 %v7994_v45  ;;  %1521 = vmatprep.subr.bf16.mxu1 %v7997_v48  ;;  %v8070_v45 = vld [vmem:[#allocation5 + $0x3a0] ss:$16 sps:$4 sm:$0xff]   ;;  %v8078_v48 = vld [vmem:[#allocation5 + $0x384] ss:$16 sps:$4 sm:$0xff]  }
  0xe1   :  { %1409 = vmatpush2.bf16.msra.mxu0 %v7992_v49  ;;  %1522 = vmatpush2.bf16.msra.mxu1 %v7995_v50  ;;  %v8081_v49 = vld [vmem:[#allocation5 + $0x38c] ss:$16 sps:$4 sm:$0xff]   ;;  %v8079_v50 = vld [vmem:[#allocation5 + $0x388] ss:$16 sps:$4 sm:$0xff]  }
  0xe2   :  { %1410 = vmatprep.subr.bf16.mxu0 %v8000_v52  ;;  %1523 = vmatprep.subr.bf16.mxu1 %v8003_v53  ;;  %v8084_v52 = vld [vmem:[#allocation5 + $0x364] ss:$16 sps:$4 sm:$0xff]   ;;  %v8087_v53 = vld [vmem:[#allocation5 + $0x36c] ss:$16 sps:$4 sm:$0xff]  }
  0xe4   :  { %6733 = vmatmul.mubr.msk.bf16.gmra.mxu0 %vm9050_vm11, %v11352_v28  ;;  %6765 = vmatmul.mubr.msk.bf16.gmra.mxu1 %vm9050_vm11, %v11352_v28 }
  0xe5   :  { %1411 = vmatpush2.bf16.msra.mxu0 %v7998_v54  ;;  %1524 = vmatpush2.bf16.msra.mxu1 %v8001_v56  ;;  %v8082_v54 = vld [vmem:[#allocation5 + $0x360] ss:$16 sps:$4 sm:$0xff]   ;;  %v8090_v56 = vld [vmem:[#allocation5 + $0x344] ss:$16 sps:$4 sm:$0xff]  }
  0xe6   :  { %6831 = vmatprep.mubr.msk.bf16.mxu0 %vm8878_vm7, %v11352_v28  ;;  %6863 = vmatprep.mubr.msk.bf16.mxu1 %vm8878_vm7, %v11352_v28  ;;  %vm11405_vm7 = vnez %v11397_v35  ;;  %v8088_v35 = vld [vmem:[#allocation5 + $0x340] ss:$16 sps:$4 sm:$0xff]  }
  0xe7   :  { %1412 = vmatprep.subr.bf16.mxu0 %v8006_v57  ;;  %1525 = vmatprep.subr.bf16.mxu1 %v8009_v60  ;;  %v8093_v57 = vld [vmem:[#allocation5 + $0x34c] ss:$16 sps:$4 sm:$0xff]   ;;  %v1822_v60 = vpop.permute.xlu1 %1821 }
  0xe9   :  { %1413 = vmatpush2.bf16.msra.mxu0 %v8004_v61  ;;  %1526 = vmatpush2.bf16.msra.mxu1 %v8007_v62  ;;  %v1819_v61 = vpop.permute.xlu0 %1818  ;;  %v8091_v62 = vld [vmem:[#allocation5 + $0x348] ss:$16 sps:$4 sm:$0xff]  }
  0xea   :  { %2430 = vmatprep.subr.bf16.mxu0 %v8012_v63  ;;  %2543 = vmatprep.subr.bf16.mxu1 %v8015_v0  ;;  %v8096_v63 = vld [vmem:[#allocation5 + $0x324] ss:$16 sps:$4 sm:$0xff]   ;;  %v8099_v0 = vld [vmem:[#allocation5 + $0x32c] ss:$16 sps:$4 sm:$0xff]  }
  0xec   :  { %6833 = vmatmul.mubr.msk.bf16.vlgmr.msra.gmra.mxu0 %vm8882_vm8, %v11352_v28  ;;  %6865 = vmatmul.mubr.msk.bf16.vlgmr.msra.gmra.mxu1 %vm8882_vm8, %v11352_v28  ;;  %vm11406_vm8 = vnez %v11399_v47  ;;  %v8094_v47 = vld [vmem:[#allocation5 + $0x320] ss:$16 sps:$4 sm:$0xff]  }
  0xed   :  { %2431 = vmatpush1.bf16.msra.mxu0 %v8010_v7  ;;  %2544 = vmatpush1.bf16.msra.mxu1 %v8013_v8  ;;  %v8097_v7 = vld [vmem:[#allocation5 + $0x328] ss:$16 sps:$4 sm:$0xff]   ;;  %v8102_v8 = vld [vmem:[#allocation5 + $0x304] ss:$16 sps:$4 sm:$0xff]  }
  0xee   :  { %6835 = vmatprep.mubr.msk.bf16.mxu0 %vm8873_vm5, %v11352_v28  ;;  %6867 = vmatprep.mubr.msk.bf16.mxu1 %vm8873_vm5, %v11352_v28  ;;  %vm11404_vm5 = vnez %v11395_v29  ;;  %v8085_v29 = vld [vmem:[#allocation5 + $0x368] ss:$16 sps:$4 sm:$0xff]  }
  0xef   :  { %2432 = vmatprep.subr.bf16.mxu0 %v8018_v12  ;;  %2545 = vmatprep.subr.bf16.mxu1 %v8021_v13  ;;  %v8103_v13 = vld [vmem:[#allocation5 + $0x308] ss:$16 sps:$4 sm:$0xff]   ;;  %v8208_v12 = vld [vmem:[#allocation5 + $0x4c0] ss:$16 sps:$4 sm:$0xff]  }
  0xf1   :  { %2433 = vmatpush1.bf16.msra.mxu0 %v8016_v23  ;;  %2546 = vmatpush1.bf16.msra.mxu1 %v8019_v14  ;;  %v8105_v23 = vld [vmem:[#allocation5 + $0x30c] ss:$16 sps:$4 sm:$0xff]   ;;  %v1828_v14 = vpop.permute.xlu1 %1827 }
  0xf2   :  { %2434 = vmatprep.subr.bf16.mxu0 %v8024_v16  ;;  %2547 = vmatprep.subr.bf16.mxu1 %v8027_v17  ;;  %v1825_v16 = vpop.permute.xlu0 %1824  ;;  %v8108_v17 = vld [vmem:[#allocation2 + $0x2e4] ss:$16 sps:$4 sm:$0xff]   ;;  %vm1871_vm9 = vcmp.eq.s32.totalorder %v1828_v14, %v8862_v19 }
  0xf4   :  { %6837 = vmatmul.mubr.msk.bf16.gmra.mxu0 %vm8908_vm13, %v11352_v28  ;;  %6869 = vmatmul.mubr.msk.bf16.gmra.mxu1 %vm8908_vm13, %v11352_v28  ;;  %vm1868_vm13 = vcmp.eq.s32.totalorder %v1822_v60, %v8866_v25 }
  0xf5   :  { %2435 = vmatpush1.bf16.msra.mxu0 %v8022_v4  ;;  %2548 = vmatpush1.bf16.msra.mxu1 %v8025_v27  ;;  %v8111_v4 = vld [vmem:[#allocation2 + $0x2ec] ss:$16 sps:$4 sm:$0xff]   ;;  %v8109_v27 = vld [vmem:[#allocation2 + $0x2e8] ss:$16 sps:$4 sm:$0xff]  }
  0xf6   :  { %6839 = vmatprep.mubr.msk.bf16.mxu0 %vm8918_vm14, %v11352_v28  ;;  %6871 = vmatprep.mubr.msk.bf16.mxu1 %vm8918_vm14, %v11352_v28  ;;  %vm1866_vm14 = vcmp.eq.s32.totalorder %v1819_v61, %v8866_v25 }
  0xf7   :  { %2436 = vmatprep.subr.bf16.mxu0 %v8030_v2  ;;  %2549 = vmatprep.subr.bf16.mxu1 %v8033_v3  ;;  %v8114_v3 = vld [vmem:[#allocation2 + $0x2c4] ss:$16 sps:$4 sm:$0xff]   ;;  %v8214_v2 = vld [vmem:[#allocation5 + $0x4a0] ss:$16 sps:$4 sm:$0xff]  }
  0xf9   :  { %2437 = vmatpush1.bf16.msra.mxu0 %v8028_v37  ;;  %2550 = vmatpush1.bf16.msra.mxu1 %v8031_v1  ;;  %v8112_v1 = vld [vmem:[#allocation2 + $0x2c0] ss:$16 sps:$4 sm:$0xff]   ;;  %v8222_v37 = vld [vmem:[#allocation5 + $0x484] ss:$16 sps:$4 sm:$0xff]  }
  0xfa   :  { %2438 = vmatprep.subr.bf16.mxu0 %v8036_v5  ;;  %2551 = vmatprep.subr.bf16.mxu1 %v8039_v10  ;;  %v8115_v5 = vld [vmem:[#allocation2 + $0x2c8] ss:$16 sps:$4 sm:$0xff]   ;;  %v8117_v10 = vld [vmem:[#allocation2 + $0x2cc] ss:$16 sps:$4 sm:$0xff]  }
  0xfc   :  { %6841 = vmatmul.mubr.msk.bf16.gmra.mxu0 %vm8932_vm3, %v11352_v28  ;;  %6873 = vmatmul.mubr.msk.bf16.gmra.mxu1 %vm8932_vm3, %v11352_v28  ;;  %vm9152_vm3 = vmpackc.low %vm1868_vm13, %vm1866_vm14 }
  0xfd   :  { %2439 = vmatpush1.bf16.msra.mxu0 %v8034_v18  ;;  %2552 = vmatpush1.bf16.msra.mxu1 %v8037_v43  ;;  %v8120_v18 = vld [vmem:[#allocation2 + $0x2a4] ss:$16 sps:$4 sm:$0xff]   ;;  %v8123_v43 = vld [vmem:[#allocation2 + $0x2ac] ss:$16 sps:$4 sm:$0xff]  }
  0xfe   :  { %6843 = vmatprep.mubr.msk.bf16.mxu0 %vm8942_vm4, %v11352_v28  ;;  %6875 = vmatprep.mubr.msk.bf16.mxu1 %vm8942_vm4, %v11352_v28  ;;  %vm1867_vm4 = vcmp.eq.s32.totalorder %v1822_v60, %v8862_v19  ;;  %v8159_v60 = vld [vmem:[#allocation2 + $0x3ec] ss:$16 sps:$4 sm:$0xff]  }
  0xff   :  { %2440 = vmatprep.subr.bf16.mxu0 %v8042_v11  ;;  %2553 = vmatprep.subr.bf16.mxu1 %v8045_v21  ;;  %v1834_v11 = vpop.permute.xlu1 %1833  ;;  %v1831_v21 = vpop.permute.xlu0 %1830 }
 0x100   :  { %vm1876_vm0 = vcmp.eq.s32.totalorder %v1834_v11, %v8866_v25  ;;  %vm1873_vm13 = vcmp.eq.s32.totalorder %v1831_v21, %v8862_v19 }
 0x101   :  { %2441 = vmatpush1.bf16.msra.mxu0 %v8040_v46  ;;  %2554 = vmatpush1.bf16.msra.mxu1 %v8043_v22  ;;  %v8118_v46 = vld [vmem:[#allocation2 + $0x2a0] ss:$16 sps:$4 sm:$0xff]   ;;  %v8121_v22 = vld [vmem:[#allocation2 + $0x2a8] ss:$16 sps:$4 sm:$0xff]  }
 0x102   :  { %2442 = vmatprep.subr.bf16.mxu0 %v8048_v26  ;;  %2555 = vmatprep.subr.bf16.mxu1 %v8051_v31  ;;  %v8126_v31 = vld [vmem:[#allocation2 + $0x284] ss:$16 sps:$4 sm:$0xff]   ;;  %v8226_v26 = vld [vmem:[#allocation5 + $0x460] ss:$16 sps:$4 sm:$0xff]  }
 0x104   :  { %6845 = vmatmul.mubr.msk.bf16.gmra.mxu0 %vm8956_vm12, %v11352_v28  ;;  %6877 = vmatmul.mubr.msk.bf16.gmra.mxu1 %vm8956_vm12, %v11352_v28  ;;  %vm1865_vm12 = vcmp.eq.s32.totalorder %v1819_v61, %v8862_v19 }
 0x105   :  { %2443 = vmatpush1.bf16.msra.mxu0 %v8046_v32  ;;  %2556 = vmatpush1.bf16.msra.mxu1 %v8049_v55  ;;  %v8129_v32 = vld [vmem:[#allocation2 + $0x28c] ss:$16 sps:$4 sm:$0xff]   ;;  %v8124_v55 = vld [vmem:[#allocation2 + $0x280] ss:$16 sps:$4 sm:$0xff]  }
 0x106   :  { %6847 = vmatprep.mubr.msk.bf16.mxu0 %vm8966_vm15, %v11352_v28  ;;  %6879 = vmatprep.mubr.msk.bf16.mxu1 %vm8966_vm15, %v11352_v28  ;;  %vm1872_vm15 = vcmp.eq.s32.totalorder %v1828_v14, %v8866_v25  ;;  %v8168_v14 = vld [vmem:[#allocation2 + $0x3a4] ss:$16 sps:$4 sm:$0xff]  }
 0x107   :  { %2444 = vmatprep.subr.bf16.mxu0 %v8054_v38  ;;  %2557 = vmatprep.subr.bf16.mxu1 %v8057_v24  ;;  %v8127_v38 = vld [vmem:[#allocation2 + $0x288] ss:$16 sps:$4 sm:$0xff]   ;;  %v8132_v24 = vld [vmem:[#allocation2 + $0x264] ss:$16 sps:$4 sm:$0xff]  }
 0x109   :  { %2445 = vmatpush1.bf16.msra.mxu0 %v8052_v58  ;;  %2558 = vmatpush1.bf16.msra.mxu1 %v8055_v30  ;;  %v8135_v30 = vld [vmem:[#allocation2 + $0x26c] ss:$16 sps:$4 sm:$0xff]   ;;  %v8234_v58 = vld [vmem:[#allocation5 + $0x444] ss:$16 sps:$4 sm:$0xff]  }
 0x10a   :  { %2446 = vmatprep.subr.bf16.mxu0 %v8060_v33  ;;  %2559 = vmatprep.subr.bf16.mxu1 %v8063_v34  ;;  %v1840_v33 = vpop.permute.xlu1 %1839  ;;  %v1837_v34 = vpop.permute.xlu0 %1836 }
 0x10b   :  { %vm1880_vm14 = vcmp.eq.s32.totalorder %v1840_v33, %v8866_v25 }
 0x10c   :  { %6849 = vmatmul.mubr.msk.bf16.gmra.mxu0 %vm8978_vm2, %v11352_v28  ;;  %6881 = vmatmul.mubr.msk.bf16.gmra.mxu1 %vm8978_vm2, %v11352_v28  ;;  %vm1870_vm2 = vcmp.eq.s32.totalorder %v1825_v16, %v8866_v25 }
 0x10d   :  { %2447 = vmatpush2.bf16.msra.mxu0 %v8058_v36  ;;  %2560 = vmatpush2.bf16.msra.mxu1 %v8061_v9  ;;  %vm9176_vm6 = vmpackc.low %vm1872_vm15, %vm1870_vm2  ;;  %v8130_v36 = vld [vmem:[#allocation2 + $0x260] ss:$16 sps:$4 sm:$0xff]   ;;  %v8133_v9 = vld [vmem:[#allocation2 + $0x268] ss:$16 sps:$4 sm:$0xff]   ;;  %vm1879_vm2 = vcmp.eq.s32.totalorder %v1840_v33, %v8862_v19 }
 0x10e   :  { %6851 = vmatprep.mubr.msk.bf16.mxu0 %vm8990_vm10, %v11352_v28  ;;  %6883 = vmatprep.mubr.msk.bf16.mxu1 %vm8990_vm10, %v11352_v28  ;;  %vm9172_vm10 = vmpackc.low %vm1867_vm4, %vm1865_vm12  ;;  %vm1878_vm4 = vcmp.eq.s32.totalorder %v1837_v34, %v8866_v25 }
 0x10f   :  { %2448 = vmatprep.subr.bf16.mxu0 %v8066_v39  ;;  %2561 = vmatprep.subr.bf16.mxu1 %v8069_v40  ;;  %v8138_v39 = vld [vmem:[#allocation2 + $0x244] ss:$16 sps:$4 sm:$0xff]   ;;  %v8141_v40 = vld [vmem:[#allocation2 + $0x24c] ss:$16 sps:$4 sm:$0xff]   ;;  %vm9230_vm15 = vmpackc.low %vm1880_vm14, %vm1878_vm4 }
 0x111   :  { %2449 = vmatpush2.bf16.msra.mxu0 %v8064_v15  ;;  %2562 = vmatpush2.bf16.msra.mxu1 %v8067_v41  ;;  %v8136_v41 = vld [vmem:[#allocation2 + $0x240] ss:$16 sps:$4 sm:$0xff]  }
 0x112   :  { %2450 = vmatprep.subr.bf16.mxu0 %v8072_v42  ;;  %2563 = vmatprep.subr.bf16.mxu1 %v8075_v44  ;;  %v8139_v44 = vld [vmem:[#allocation2 + $0x248] ss:$16 sps:$4 sm:$0xff]   ;;  %v8238_v15 = vld [vmem:[#allocation5 + $0x420] ss:$16 sps:$4 sm:$0xff]   ;;  %v8246_v42 = vld [vmem:[#allocation5 + $0x404] ss:$16 sps:$4 sm:$0xff]  }
 0x114   :  { %6853 = vmatmul.mubr.msk.bf16.gmra.mxu0 %vm11404_vm5, %v11352_v28  ;;  %6885 = vmatmul.mubr.msk.bf16.gmra.mxu1 %vm11404_vm5, %v11352_v28 }
 0x115   :  { %2451 = vmatpush2.bf16.msra.mxu0 %v8070_v45  ;;  %2564 = vmatpush2.bf16.msra.mxu1 %v8073_v6  ;;  %v8144_v45 = vld [vmem:[#allocation2 + $0x224] ss:$16 sps:$4 sm:$0xff]   ;;  %v8147_v6 = vld [vmem:[#allocation2 + $0x22c] ss:$16 sps:$4 sm:$0xff]  }
 0x116   :  { %6855 = vmatprep.mubr.msk.bf16.mxu0 %vm11405_vm7, %v11352_v28  ;;  %6887 = vmatprep.mubr.msk.bf16.mxu1 %vm11405_vm7, %v11352_v28 }
 0x117   :  { %2452 = vmatprep.subr.bf16.mxu0 %v8078_v48  ;;  %2565 = vmatprep.subr.bf16.mxu1 %v8081_v49  ;;  %v1846_v48 = vpop.permute.xlu1 %1845  ;;  %v1843_v49 = vpop.permute.xlu0 %1842 }
 0x118   :  { %vm1881_vm14 = vcmp.eq.s32.totalorder %v1843_v49, %v8862_v19 }
 0x119   :  { %2453 = vmatpush2.bf16.msra.mxu0 %v8076_v20  ;;  %2566 = vmatpush2.bf16.msra.mxu1 %v8079_v50  ;;  %v8142_v20 = vld [vmem:[#allocation2 + $0x220] ss:$16 sps:$4 sm:$0xff]   ;;  %v8145_v50 = vld [vmem:[#allocation2 + $0x228] ss:$16 sps:$4 sm:$0xff]  }
 0x11a   :  { %2454 = vmatprep.subr.bf16.mxu0 %v8084_v52  ;;  %2567 = vmatprep.subr.bf16.mxu1 %v8087_v53  ;;  %v8150_v52 = vld [vmem:[#allocation2 + $0x204] ss:$16 sps:$4 sm:$0xff]   ;;  %v8153_v53 = vld [vmem:[#allocation2 + $0x20c] ss:$16 sps:$4 sm:$0xff]  }
 0x11b   :  { %v1852_v61 = vpop.permute.xlu1 %1851 }
 0x11c   :  { %6857 = vmatmul.mubr.msk.bf16.gmra.mxu0 %vm11406_vm8, %v11352_v28  ;;  %6889 = vmatmul.mubr.msk.bf16.gmra.mxu1 %vm11406_vm8, %v11352_v28  ;;  %vm1875_vm8 = vcmp.eq.s32.totalorder %v1834_v11, %v8862_v19  ;;  %vm1888_vm4 = vcmp.eq.s32.totalorder %v1852_v61, %v8866_v25  ;;  %v8180_v11 = vld [vmem:[#allocation2 + $0x364] ss:$16 sps:$4 sm:$0xff]  }
 0x11d   :  { %2455 = vmatpush2.bf16.msra.mxu0 %v8082_v54  ;;  %2568 = vmatpush2.bf16.msra.mxu1 %v8085_v29  ;;  %vm9220_vm12 = vmpackc.low %vm1875_vm8, %vm1873_vm13  ;;  %v8148_v29 = vld [vmem:[#allocation2 + $0x200] ss:$16 sps:$4 sm:$0xff]   ;;  %vm1883_vm13 = vcmp.eq.s32.totalorder %v1846_v48, %v8862_v19 }
 0x11e   :  { %6859 = vmatprep.mubr.msk.bf16.mxu0 %vm9038_vm1, %v11352_v28  ;;  %6891 = vmatprep.mubr.msk.bf16.mxu1 %vm9038_vm1, %v11352_v28  ;;  %vm1869_vm1 = vcmp.eq.s32.totalorder %v1825_v16, %v8862_v19  ;;  %v8171_v16 = vld [vmem:[#allocation2 + $0x3ac] ss:$16 sps:$4 sm:$0xff]   ;;  %v8250_v54 = vld [vmem:[#allocation5 + $0x5e0] ss:$16 sps:$4 sm:$0xff]  }
 0x11f   :  { %2456 = vmatprep.subr.bf16.mxu0 %v8090_v56  ;;  %2569 = vmatprep.subr.bf16.mxu1 %v8093_v57  ;;  %vm9196_vm5 = vmpackc.low %vm1871_vm9, %vm1869_vm1  ;;  %vm1877_vm9 = vcmp.eq.s32.totalorder %v1837_v34, %v8862_v19  ;;  %vm1884_vm1 = vcmp.eq.s32.totalorder %v1846_v48, %v8866_v25  ;;  %v8151_v57 = vld [vmem:[#allocation2 + $0x208] ss:$16 sps:$4 sm:$0xff]   ;;  %v8258_v56 = vld [vmem:[#allocation5 + $0x5c4] ss:$16 sps:$4 sm:$0xff]  }
 0x120   :  { %v8187_v34 = vld [vmem:[#allocation2 + $0x348] ss:$16 sps:$4 sm:$0xff]  }
 0x121   :  { %2457 = vmatpush2.bf16.msra.mxu0 %v8088_v35  ;;  %2570 = vmatpush2.bf16.msra.mxu1 %v8091_v62  ;;  %v8156_v35 = vld [vmem:[#allocation2 + $0x3e4] ss:$16 sps:$4 sm:$0xff]   ;;  %v1849_v62 = vpop.permute.xlu0 %1848  ;;  %v8199_v48 = vld [vmem:[#allocation2 + $0x308] ss:$16 sps:$4 sm:$0xff]  }
 0x122   :  { %2458 = vmatprep.subr.bf16.mxu0 %v8096_v63  ;;  %2571 = vmatprep.subr.bf16.mxu1 %v8099_v0  ;;  %v8154_v63 = vld [vmem:[#allocation2 + $0x3e0] ss:$16 sps:$4 sm:$0xff]   ;;  %v8157_v0 = vld [vmem:[#allocation2 + $0x3e8] ss:$16 sps:$4 sm:$0xff]  }
 0x124   :  { %6861 = vmatmul.mubr.msk.bf16.gmra.mxu0 %vm9050_vm11, %v11352_v28  ;;  %6893 = vmatmul.mubr.msk.bf16.gmra.mxu1 %vm9050_vm11, %v11352_v28  ;;  %vm1874_vm11 = vcmp.eq.s32.totalorder %v1831_v21, %v8866_v25  ;;  %v8183_v21 = vld [vmem:[#allocation2 + $0x36c] ss:$16 sps:$4 sm:$0xff]  }
 0x125   :  { %2459 = vmatpush2.bf16.msra.mxu0 %v8094_v47  ;;  %2572 = vmatpush2.bf16.msra.mxu1 %v8097_v7  ;;  %vm9206_vm7 = vmpackc.low %vm1876_vm0, %vm1874_vm11  ;;  %vm1882_vm0 = vcmp.eq.s32.totalorder %v1843_v49, %v8866_v25  ;;  %v8162_v47 = vld [vmem:[#allocation2 + $0x3c4] ss:$16 sps:$4 sm:$0xff]   ;;  %v8165_v7 = vld [vmem:[#allocation2 + $0x3cc] ss:$16 sps:$4 sm:$0xff]  }
 0x126   :  { %7007 = vmatprep.mubr.msk.bf16.mxu0 %vm9152_vm3, %v11352_v28  ;;  %7039 = vmatprep.mubr.msk.bf16.mxu1 %vm9152_vm3, %v11352_v28  ;;  %vm9244_vm11 = vmpackc.low %vm1879_vm2, %vm1877_vm9  ;;  %vm1886_vm2 = vcmp.eq.s32.totalorder %v1849_v62, %v8866_v25  ;;  %v8204_v49 = vld [vmem:[#allocation5 + $0x4e4] ss:$16 sps:$4 sm:$0xff]  }
 0x127   :  { %2460 = vmatprep.subr.bf16.mxu0 %v8102_v8  ;;  %2573 = vmatprep.subr.bf16.mxu1 %v8105_v23  ;;  %vm9254_vm8 = vmpackc.low %vm1884_vm1, %vm1882_vm0  ;;  %v8163_v23 = vld [vmem:[#allocation2 + $0x3c8] ss:$16 sps:$4 sm:$0xff]   ;;  %vm1887_vm0 = vcmp.eq.s32.totalorder %v1852_v61, %v8862_v19  ;;  %v8216_v61 = vld [vmem:[#allocation5 + $0x4a4] ss:$16 sps:$4 sm:$0xff]  }
 0x128   :  { %vm9268_vm9 = vmpackc.low %vm1883_vm13, %vm1881_vm14  ;;  %vm1885_vm13 = vcmp.eq.s32.totalorder %v1849_v62, %v8862_v19 }
 0x129   :  { %2461 = vmatpush2.bf16.msra.mxu0 %v8100_v51  ;;  %2574 = vmatpush2.bf16.msra.mxu1 %v8103_v13  ;;  %v8160_v51 = vld [vmem:[#allocation2 + $0x3c0] ss:$16 sps:$4 sm:$0xff]   ;;  %vm9278_vm1 = vmpackc.low %vm1888_vm4, %vm1886_vm2  ;;  %v11427_v13 = vmov 0 }
 0x12a   :  { %2976 = vmatprep.subr.bf16.mxu0 %v8108_v17  ;;  %3089 = vmatprep.subr.bf16.mxu1 %v8111_v4  ;;  %v11428_v13 = vsel %vm9278_vm1, 4294967295, %v11427_v13  ;;  %v1858_v17 = vpop.permute.xlu1 %1857  ;;  %v1855_v4 = vpop.permute.xlu0 %1854  ;;  %vm9292_vm2 = vmpackc.low %vm1887_vm0, %vm1885_vm13 }
 0x12b   :  { %vm1892_vm14 = vcmp.eq.s32.totalorder %v1858_v17, %v8866_v25  ;;  %vm1890_vm4 = vcmp.eq.s32.totalorder %v1855_v4, %v8866_v25  ;;  %vm1891_vm0 = vcmp.eq.s32.totalorder %v1858_v17, %v8862_v19  ;;  %vm1889_vm13 = vcmp.eq.s32.totalorder %v1855_v4, %v8862_v19  ;;  %v8223_v17 = vld [vmem:[#allocation5 + $0x488] ss:$16 sps:$4 sm:$0xff]   ;;  %v8225_v4 = vld [vmem:[#allocation5 + $0x48c] ss:$16 sps:$4 sm:$0xff]  }
 0x12c   :  { %7009 = vmatmul.mubr.msk.bf16.vlgmr.msra.gmra.mxu0 %vm9172_vm10, %v11352_v28  ;;  %7041 = vmatmul.mubr.msk.bf16.vlgmr.msra.gmra.mxu1 %vm9172_vm10, %v11352_v28 }
 0x12d   :  { %2977 = vmatpush1.bf16.msra.mxu0 %v8106_v59  ;;  %3090 = vmatpush1.bf16.msra.mxu1 %v8109_v27  ;;  %v8166_v59 = vld [vmem:[#allocation2 + $0x3a0] ss:$16 sps:$4 sm:$0xff]   ;;  %v8169_v27 = vld [vmem:[#allocation2 + $0x3a8] ss:$16 sps:$4 sm:$0xff]  }
 0x12e   :  { %7011 = vmatprep.mubr.msk.bf16.mxu0 %vm9176_vm6, %v11352_v28  ;;  %7043 = vmatprep.mubr.msk.bf16.mxu1 %vm9176_vm6, %v11352_v28 }
 0x12f   :  { %2978 = vmatprep.subr.bf16.mxu0 %v8114_v3  ;;  %3091 = vmatprep.subr.bf16.mxu1 %v8117_v10  ;;  %v8174_v3 = vld [vmem:[#allocation2 + $0x384] ss:$16 sps:$4 sm:$0xff]   ;;  %v8172_v10 = vld [vmem:[#allocation2 + $0x380] ss:$16 sps:$4 sm:$0xff]  }
 0x131   :  { %2979 = vmatpush1.bf16.msra.mxu0 %v8112_v1  ;;  %3092 = vmatpush1.bf16.msra.mxu1 %v8115_v5  ;;  %v8177_v1 = vld [vmem:[#allocation2 + $0x38c] ss:$16 sps:$4 sm:$0xff]   ;;  %v11429_v5 = vmov 0 }
 0x132   :  { %2980 = vmatprep.subr.bf16.mxu0 %v8120_v18  ;;  %3093 = vmatprep.subr.bf16.mxu1 %v8123_v43  ;;  %v11430_v5 = vsel %vm9292_vm2, 4294967295, %v11429_v5  ;;  %v11431_v18 = vmov 0  ;;  %v8175_v43 = vld [vmem:[#allocation2 + $0x388] ss:$16 sps:$4 sm:$0xff]  }
 0x134   :  { %7013 = vmatmul.mubr.msk.bf16.gmra.mxu0 %vm9196_vm5, %v11352_v28  ;;  %7045 = vmatmul.mubr.msk.bf16.gmra.mxu1 %vm9196_vm5, %v11352_v28 }
 0x135   :  { %2981 = vmatpush1.bf16.msra.mxu0 %v8118_v46  ;;  %3094 = vmatpush1.bf16.msra.mxu1 %v8121_v22  ;;  %v1864_v46 = vpop.permute.xlu1 %1863  ;;  %v1861_v22 = vpop.permute.xlu0 %1860 }
 0x136   :  { %7015 = vmatprep.mubr.msk.bf16.mxu0 %vm9206_vm7, %v11352_v28  ;;  %7047 = vmatprep.mubr.msk.bf16.mxu1 %vm9206_vm7, %v11352_v28 }
 0x137   :  { %2982 = vmatprep.subr.bf16.mxu0 %v8126_v31  ;;  %3095 = vmatprep.subr.bf16.mxu1 %v8129_v32  ;;  %v8178_v32 = vld [vmem:[#allocation2 + $0x360] ss:$16 sps:$4 sm:$0xff]  }
 0x139   :  { %2983 = vmatpush1.bf16.msra.mxu0 %v8124_v55  ;;  %3096 = vmatpush1.bf16.msra.mxu1 %v8127_v38  ;;  %v8181_v55 = vld [vmem:[#allocation2 + $0x368] ss:$16 sps:$4 sm:$0xff]   ;;  %v8186_v38 = vld [vmem:[#allocation2 + $0x344] ss:$16 sps:$4 sm:$0xff]   ;;  %v3416_v31 = vpop.permute.xlu1 %3415 }
 0x13a   :  { %2984 = vmatprep.subr.bf16.mxu0 %v8132_v24  ;;  %3097 = vmatprep.subr.bf16.mxu1 %v8135_v30  ;;  %v8189_v24 = vld [vmem:[#allocation2 + $0x34c] ss:$16 sps:$4 sm:$0xff]   ;;  %v8184_v30 = vld [vmem:[#allocation2 + $0x340] ss:$16 sps:$4 sm:$0xff]  }
 0x13c   :  { %7017 = vmatmul.mubr.msk.bf16.gmra.mxu0 %vm9220_vm12, %v11352_v28  ;;  %7049 = vmatmul.mubr.msk.bf16.gmra.mxu1 %vm9220_vm12, %v11352_v28 }
 0x13d   :  { %2985 = vmatpush1.bf16.msra.mxu0 %v8130_v36  ;;  %3098 = vmatpush1.bf16.msra.mxu1 %v8133_v9  ;;  %v8192_v36 = vld [vmem:[#allocation2 + $0x324] ss:$16 sps:$4 sm:$0xff]   ;;  %v8195_v9 = vld [vmem:[#allocation2 + $0x32c] ss:$16 sps:$4 sm:$0xff]  }
 0x13e   :  { %7019 = vmatprep.mubr.msk.bf16.mxu0 %vm9230_vm15, %v11352_v28  ;;  %7051 = vmatprep.mubr.msk.bf16.mxu1 %vm9230_vm15, %v11352_v28 }
 0x13f   :  { %2986 = vmatprep.subr.bf16.mxu0 %v8138_v39  ;;  %3099 = vmatprep.subr.bf16.mxu1 %v8141_v40  ;;  %v8190_v40 = vld [vmem:[#allocation2 + $0x320] ss:$16 sps:$4 sm:$0xff]  }
 0x141   :  { %2987 = vmatpush1.bf16.msra.mxu0 %v8136_v41  ;;  %3100 = vmatpush1.bf16.msra.mxu1 %v8139_v44  ;;  %v8193_v41 = vld [vmem:[#allocation2 + $0x328] ss:$16 sps:$4 sm:$0xff]   ;;  %v8198_v44 = vld [vmem:[#allocation2 + $0x304] ss:$16 sps:$4 sm:$0xff]  }
 0x142   :  { %2988 = vmatprep.subr.bf16.mxu0 %v8144_v45  ;;  %3101 = vmatprep.subr.bf16.mxu1 %v8147_v6  ;;  %v8201_v45 = vld [vmem:[#allocation2 + $0x30c] ss:$16 sps:$4 sm:$0xff]   ;;  %v8196_v6 = vld [vmem:[#allocation2 + $0x300] ss:$16 sps:$4 sm:$0xff]  }
 0x144   :  { %7021 = vmatmul.mubr.msk.bf16.gmra.mxu0 %vm9244_vm11, %v11352_v28  ;;  %7053 = vmatmul.mubr.msk.bf16.gmra.mxu1 %vm9244_vm11, %v11352_v28 }
 0x145   :  { %2989 = vmatpush1.bf16.msra.mxu0 %v8142_v20  ;;  %3102 = vmatpush1.bf16.msra.mxu1 %v8145_v50  ;;  %v8207_v20 = vld [vmem:[#allocation5 + $0x4ec] ss:$16 sps:$4 sm:$0xff]   ;;  %v8202_v50 = vld [vmem:[#allocation5 + $0x4e0] ss:$16 sps:$4 sm:$0xff]  }
 0x146   :  { %7023 = vmatprep.mubr.msk.bf16.mxu0 %vm9254_vm8, %v11352_v28  ;;  %7055 = vmatprep.mubr.msk.bf16.mxu1 %vm9254_vm8, %v11352_v28 }
 0x147   :  { %2990 = vmatprep.subr.bf16.mxu0 %v8150_v52  ;;  %3103 = vmatprep.subr.bf16.mxu1 %v8153_v53  ;;  %v8205_v52 = vld [vmem:[#allocation5 + $0x4e8] ss:$16 sps:$4 sm:$0xff]   ;;  %v8210_v53 = vld [vmem:[#allocation5 + $0x4c4] ss:$16 sps:$4 sm:$0xff]  }
 0x149   :  { %2991 = vmatpush1.bf16.msra.mxu0 %v8148_v29  ;;  %3104 = vmatpush1.bf16.msra.mxu1 %v8151_v57  ;;  %v8213_v29 = vld [vmem:[#allocation5 + $0x4cc] ss:$16 sps:$4 sm:$0xff]  }
 0x14a   :  { %2992 = vmatprep.subr.bf16.mxu0 %v8156_v35  ;;  %3105 = vmatprep.subr.bf16.mxu1 %v8159_v60  ;;  %v8211_v60 = vld [vmem:[#allocation5 + $0x4c8] ss:$16 sps:$4 sm:$0xff]  }
 0x14c   :  { %7025 = vmatmul.mubr.msk.bf16.gmra.mxu0 %vm9268_vm9, %v11352_v28  ;;  %7057 = vmatmul.mubr.msk.bf16.gmra.mxu1 %vm9268_vm9, %v11352_v28 }
 0x14d   :  { %2993 = vmatpush2.bf16.msra.mxu0 %v8154_v63  ;;  %3106 = vmatpush2.bf16.msra.mxu1 %v8157_v0  ;;  %v8219_v0 = vld [vmem:[#allocation5 + $0x4ac] ss:$16 sps:$4 sm:$0xff]  }
 0x14e   :  { %7027 = vmatprep.mubr.msk.bf16.mxu0 %vm9278_vm1, %v11352_v28  ;;  %7059 = vmatprep.mubr.msk.bf16.mxu1 %vm9278_vm1, %v11352_v28  ;;  %vm9302_vm1 = vmpackc.low %vm1892_vm14, %vm1890_vm4  ;;  %vm1896_vm4 = vcmp.eq.s32.totalorder %v1864_v46, %v8866_v25 }
 0x14f   :  { %2994 = vmatprep.subr.bf16.mxu0 %v8162_v47  ;;  %3107 = vmatprep.subr.bf16.mxu1 %v8165_v7  ;;  %v11432_v18 = vsel %vm9302_vm1, 4294967295, %v11431_v18  ;;  %vm9314_vm14 = vmpackc.low %vm1891_vm0, %vm1889_vm13  ;;  %vm1895_vm13 = vcmp.eq.s32.totalorder %v1864_v46, %v8862_v19  ;;  %v8229_v46 = vld [vmem:[#allocation5 + $0x468] ss:$16 sps:$4 sm:$0xff]  }
 0x151   :  { %2995 = vmatpush2.bf16.msra.mxu0 %v8160_v51  ;;  %3108 = vmatpush2.bf16.msra.mxu1 %v8163_v23  ;;  %v8217_v51 = vld [vmem:[#allocation5 + $0x4a8] ss:$16 sps:$4 sm:$0xff]  }
 0x152   :  { %2996 = vmatprep.subr.bf16.mxu0 %v8168_v14  ;;  %3109 = vmatprep.subr.bf16.mxu1 %v8171_v16  ;;  %v8220_v16 = vld [vmem:[#allocation5 + $0x480] ss:$16 sps:$4 sm:$0xff]  }
 0x154   :  { %7029 = vmatmul.mubr.msk.bf16.gmra.mxu0 %vm9292_vm2, %v11352_v28  ;;  %7061 = vmatmul.mubr.msk.bf16.gmra.mxu1 %vm9292_vm2, %v11352_v28  ;;  %vm1894_vm2 = vcmp.eq.s32.totalorder %v1861_v22, %v8866_v25 }
 0x155   :  { %2997 = vmatpush2.bf16.msra.mxu0 %v8166_v59  ;;  %3110 = vmatpush2.bf16.msra.mxu1 %v8169_v27  ;;  %vm9326_vm0 = vmpackc.low %vm1896_vm4, %vm1894_vm2 }
 0x156   :  { %7031 = vmatprep.mubr.msk.bf16.mxu0 %vm9302_vm1, %v11352_v28  ;;  %7063 = vmatprep.mubr.msk.bf16.mxu1 %vm9302_vm1, %v11352_v28  ;;  %vm1893_vm1 = vcmp.eq.s32.totalorder %v1861_v22, %v8862_v19 }
 0x157   :  { %2998 = vmatprep.subr.bf16.mxu0 %v8174_v3  ;;  %3111 = vmatprep.subr.bf16.mxu1 %v8177_v1  ;;  %vm9338_vm2 = vmpackc.low %vm1895_vm13, %vm1893_vm1  ;;  %v8228_v3 = vld [vmem:[#allocation5 + $0x464] ss:$16 sps:$4 sm:$0xff]   ;;  %v8231_v1 = vld [vmem:[#allocation5 + $0x46c] ss:$16 sps:$4 sm:$0xff]  }
 0x159   :  { %2999 = vmatpush2.bf16.msra.mxu0 %v8172_v10  ;;  %3112 = vmatpush2.bf16.msra.mxu1 %v8175_v43 }
 0x15a   :  { %3000 = vmatprep.subr.bf16.mxu0 %v8180_v11  ;;  %3113 = vmatprep.subr.bf16.mxu1 %v8183_v21 }
 0x15c   :  { %7033 = vmatmul.mubr.msk.bf16.gmra.mxu0 %vm9314_vm14, %v11352_v28  ;;  %7065 = vmatmul.mubr.msk.bf16.gmra.mxu1 %vm9314_vm14, %v11352_v28 }
 0x15d   :  { %3001 = vmatpush2.bf16.msra.mxu0 %v8178_v32  ;;  %3114 = vmatpush2.bf16.msra.mxu1 %v8181_v55  ;;  %v8232_v55 = vld [vmem:[#allocation5 + $0x440] ss:$16 sps:$4 sm:$0xff]  }
 0x15e   :  { %7035 = vmatprep.mubr.msk.bf16.mxu0 %vm9326_vm0, %v11352_v28  ;;  %7067 = vmatprep.mubr.msk.bf16.mxu1 %vm9326_vm0, %v11352_v28 }
 0x15f   :  { %3002 = vmatprep.subr.bf16.mxu0 %v8186_v38  ;;  %3115 = vmatprep.subr.bf16.mxu1 %v8189_v24  ;;  %v8235_v38 = vld [vmem:[#allocation5 + $0x448] ss:$16 sps:$4 sm:$0xff]   ;;  %v8237_v24 = vld [vmem:[#allocation5 + $0x44c] ss:$16 sps:$4 sm:$0xff]  }
 0x161   :  { %3003 = vmatpush2.bf16.msra.mxu0 %v8184_v30  ;;  %3116 = vmatpush2.bf16.msra.mxu1 %v8187_v34 }
 0x162   :  { %3004 = vmatprep.subr.bf16.mxu0 %v8192_v36  ;;  %3117 = vmatprep.subr.bf16.mxu1 %v8195_v9  ;;  %v8240_v36 = vld [vmem:[#allocation5 + $0x424] ss:$16 sps:$4 sm:$0xff]   ;;  %v8243_v9 = vld [vmem:[#allocation5 + $0x42c] ss:$16 sps:$4 sm:$0xff]  }
 0x164   :  { %7037 = vmatmul.mubr.msk.bf16.gmra.mxu0 %vm9338_vm2, %v11352_v28  ;;  %7069 = vmatmul.mubr.msk.bf16.gmra.mxu1 %vm9338_vm2, %v11352_v28 }
 0x165   :  { %3005 = vmatpush2.bf16.msra.mxu0 %v8190_v40  ;;  %3118 = vmatpush2.bf16.msra.mxu1 %v8193_v41 }
 0x166   :  { %7135 = vmatprep.mubr.msk.bf16.mxu0 %vm9152_vm3, %v11352_v28  ;;  %7167 = vmatprep.mubr.msk.bf16.mxu1 %vm9152_vm3, %v11352_v28  ;;  %vm11439_vm3 = vnez %v11428_v13 }
 0x167   :  { %3006 = vmatprep.subr.bf16.mxu0 %v8198_v44  ;;  %3119 = vmatprep.subr.bf16.mxu1 %v8201_v45 }
 0x169   :  { %3007 = vmatpush2.bf16.msra.mxu0 %v8196_v6  ;;  %3120 = vmatpush2.bf16.msra.mxu1 %v8199_v48  ;;  %v8241_v6 = vld [vmem:[#allocation5 + $0x428] ss:$16 sps:$4 sm:$0xff]  }
 0x16a   :  { %4024 = vmatprep.subr.bf16.mxu0 %v8204_v49  ;;  %4137 = vmatprep.subr.bf16.mxu1 %v8207_v20  ;;  %v8244_v20 = vld [vmem:[#allocation5 + $0x400] ss:$16 sps:$4 sm:$0xff]  }
 0x16c   :  { %v9354_v57 = vpop.f32.mrf.mxu0  ;;  %v9356_v35 = vpop.f32.mrf.mxu1  ;;  %7137 = vmatmul.mubr.msk.bf16.vlgmr.msra.gmra.mxu0 %vm9172_vm10, %v11352_v28  ;;  %7169 = vmatmul.mubr.msk.bf16.vlgmr.msra.gmra.mxu1 %vm9172_vm10, %v11352_v28  ;;  %vm11445_vm10 = vnez %v11430_v5 }
 0x16d   :  { %4025 = vmatpush1.bf16.msra.mxu0 %v8202_v50  ;;  %4138 = vmatpush1.bf16.msra.mxu1 %v8205_v52  ;;  %v8247_v50 = vld [vmem:[#allocation5 + $0x408] ss:$16 sps:$4 sm:$0xff]   ;;  %v8249_v52 = vld [vmem:[#allocation5 + $0x40c] ss:$16 sps:$4 sm:$0xff]  }
 0x16e   :  { %7139 = vmatprep.mubr.msk.bf16.mxu0 %vm9176_vm6, %v11352_v28  ;;  %7171 = vmatprep.mubr.msk.bf16.mxu1 %vm9176_vm6, %v11352_v28  ;;  %v9370_v62 = vpop.f32.mrf.mxu0  ;;  %v9372_v63 = vpop.f32.mrf.mxu1  ;;  %vm11446_vm6 = vnez %v11432_v18 }
 0x16f   :  { %4026 = vmatprep.subr.bf16.mxu0 %v8210_v53  ;;  %4139 = vmatprep.subr.bf16.mxu1 %v8213_v29 }
 0x170   :  { %v9374_v47 = vpop.f32.mrf.mxu0  ;;  %v9376_v7 = vpop.f32.mrf.mxu1 }
 0x171   :  { %4027 = vmatpush1.bf16.msra.mxu0 %v8208_v12  ;;  %4140 = vmatpush1.bf16.msra.mxu1 %v8211_v60  ;;  %v8252_v12 = vld [vmem:[#allocation5 + $0x5e4] ss:$16 sps:$4 sm:$0xff]   ;;  %v8255_v60 = vld [vmem:[#allocation5 + $0x5ec] ss:$16 sps:$4 sm:$0xff]  }
 0x172   :  { %v9378_v23 = vpop.f32.mrf.mxu0  ;;  %v9380_v14 = vpop.f32.mrf.mxu1  ;;  %4028 = vmatprep.subr.bf16.mxu0 %v8216_v61  ;;  %4141 = vmatprep.subr.bf16.mxu1 %v8219_v0 }
 0x174   :  { %v9382_v59 = vpop.f32.mrf.mxu0  ;;  %v9384_v27 = vpop.f32.mrf.mxu1  ;;  %7141 = vmatmul.mubr.msk.bf16.gmra.mxu0 %vm9196_vm5, %v11352_v28  ;;  %7173 = vmatmul.mubr.msk.bf16.gmra.mxu1 %vm9196_vm5, %v11352_v28  ;;  %vm3462_vm5 = vcmp.eq.s32.totalorder %v3416_v31, %v8866_v25 }
 0x175   :  { %4029 = vmatpush1.bf16.msra.mxu0 %v8214_v2  ;;  %4142 = vmatpush1.bf16.msra.mxu1 %v8217_v51 }
 0x176   :  { %7143 = vmatprep.mubr.msk.bf16.mxu0 %vm9206_vm7, %v11352_v28  ;;  %7175 = vmatprep.mubr.msk.bf16.mxu1 %vm9206_vm7, %v11352_v28  ;;  %v9398_v10 = vpop.f32.mrf.mxu0  ;;  %v9400_v43 = vpop.f32.mrf.mxu1 }
 0x177   :  { %4030 = vmatprep.subr.bf16.mxu0 %v8222_v37  ;;  %4143 = vmatprep.subr.bf16.mxu1 %v8225_v4  ;;  %v8253_v37 = vld [vmem:[#allocation5 + $0x5e8] ss:$16 sps:$4 sm:$0xff]   ;;  %v8261_v4 = vld [vmem:[#allocation5 + $0x5cc] ss:$16 sps:$4 sm:$0xff]  }
 0x178   :  { %v9402_v11 = vpop.f32.mrf.mxu0  ;;  %v9404_v21 = vpop.f32.mrf.mxu1 }
 0x179   :  { %4031 = vmatpush1.bf16.msra.mxu0 %v8220_v16  ;;  %4144 = vmatpush1.bf16.msra.mxu1 %v8223_v17 }
 0x17a   :  { %v9406_v22 = vpop.f32.mrf.mxu0  ;;  %v9408_v32 = vpop.f32.mrf.mxu1  ;;  %4032 = vmatprep.subr.bf16.mxu0 %v8228_v3  ;;  %4145 = vmatprep.subr.bf16.mxu1 %v8231_v1 }
 0x17c   :  { %v9410_v30 = vpop.f32.mrf.mxu0  ;;  %v9412_v34 = vpop.f32.mrf.mxu1  ;;  %7145 = vmatmul.mubr.msk.bf16.gmra.mxu0 %vm9220_vm12, %v11352_v28  ;;  %7177 = vmatmul.mubr.msk.bf16.gmra.mxu1 %vm9220_vm12, %v11352_v28 }
 0x17d   :  { %4033 = vmatpush1.bf16.msra.mxu0 %v8226_v26  ;;  %4146 = vmatpush1.bf16.msra.mxu1 %v8229_v46  ;;  %v8256_v26 = vld [vmem:[#allocation5 + $0x5c0] ss:$16 sps:$4 sm:$0xff]   ;;  %v8259_v46 = vld [vmem:[#allocation5 + $0x5c8] ss:$16 sps:$4 sm:$0xff]  }
 0x17e   :  { %7147 = vmatprep.mubr.msk.bf16.mxu0 %vm9230_vm15, %v11352_v28  ;;  %7179 = vmatprep.mubr.msk.bf16.mxu1 %vm9230_vm15, %v11352_v28  ;;  %v9426_v40 = vpop.f32.mrf.mxu0  ;;  %v9428_v41 = vpop.f32.mrf.mxu1  ;;  %vm3461_vm15 = vcmp.eq.s32.totalorder %v3416_v31, %v8862_v19  ;;  %v8306_v31 = vld [vmem:[#allocation2 + $0x4c4] ss:$16 sps:$4 sm:$0xff]  }
 0x17f   :  { %4034 = vmatprep.subr.bf16.mxu0 %v8234_v58  ;;  %4147 = vmatprep.subr.bf16.mxu1 %v8237_v24  ;;  %v8267_v24 = vld [vmem:[#allocation5 + $0x5ac] ss:$16 sps:$4 sm:$0xff]  }
 0x180   :  { %v9430_v44 = vpop.f32.mrf.mxu0  ;;  %v9432_v45 = vpop.f32.mrf.mxu1 }
 0x181   :  { %4035 = vmatpush1.bf16.msra.mxu0 %v8232_v55  ;;  %4148 = vmatpush1.bf16.msra.mxu1 %v8235_v38  ;;  %v8264_v38 = vld [vmem:[#allocation5 + $0x5a4] ss:$16 sps:$4 sm:$0xff]  }
 0x182   :  { %v9434_v48 = vpop.f32.mrf.mxu0  ;;  %v9436_v49 = vpop.f32.mrf.mxu1  ;;  %4036 = vmatprep.subr.bf16.mxu0 %v8240_v36  ;;  %4149 = vmatprep.subr.bf16.mxu1 %v8243_v9  ;;  %v8262_v9 = vld [vmem:[#allocation5 + $0x5a0] ss:$16 sps:$4 sm:$0xff]  }
 0x184   :  { %v9438_v53 = vpop.f32.mrf.mxu0  ;;  %v9440_v29 = vpop.f32.mrf.mxu1  ;;  %7149 = vmatmul.mubr.msk.bf16.gmra.mxu0 %vm9244_vm11, %v11352_v28  ;;  %7181 = vmatmul.mubr.msk.bf16.gmra.mxu1 %vm9244_vm11, %v11352_v28 }
 0x185   :  { %4037 = vmatpush1.bf16.msra.mxu0 %v8238_v15  ;;  %4150 = vmatpush1.bf16.msra.mxu1 %v8241_v6  ;;  %v8265_v15 = vld [vmem:[#allocation5 + $0x5a8] ss:$16 sps:$4 sm:$0xff]  }
 0x186   :  { %7151 = vmatprep.mubr.msk.bf16.mxu0 %vm9254_vm8, %v11352_v28  ;;  %7183 = vmatprep.mubr.msk.bf16.mxu1 %vm9254_vm8, %v11352_v28  ;;  %v9454_v61 = vpop.f32.mrf.mxu0  ;;  %v9456_v0 = vpop.f32.mrf.mxu1 }
 0x187   :  { %4038 = vmatprep.subr.bf16.mxu0 %v8246_v42  ;;  %4151 = vmatprep.subr.bf16.mxu1 %v8249_v52  ;;  %v8270_v42 = vld [vmem:[#allocation5 + $0x584] ss:$16 sps:$4 sm:$0xff]  }
 0x188   :  { %v9458_v2 = vpop.f32.mrf.mxu0  ;;  %v9460_v51 = vpop.f32.mrf.mxu1 }
 0x189   :  { %4039 = vmatpush1.bf16.msra.mxu0 %v8244_v20  ;;  %4152 = vmatpush1.bf16.msra.mxu1 %v8247_v50  ;;  %v8273_v20 = vld [vmem:[#allocation5 + $0x58c] ss:$16 sps:$4 sm:$0xff]  }
 0x18a   :  { %v9462_v16 = vpop.f32.mrf.mxu0  ;;  %v9464_v17 = vpop.f32.mrf.mxu1  ;;  %4040 = vmatprep.subr.bf16.mxu0 %v8252_v12  ;;  %4153 = vmatprep.subr.bf16.mxu1 %v8255_v60  ;;  %v8268_v12 = vld [vmem:[#allocation5 + $0x580] ss:$16 sps:$4 sm:$0xff]   ;;  %v8271_v60 = vld [vmem:[#allocation5 + $0x588] ss:$16 sps:$4 sm:$0xff]  }
 0x18c   :  { %v9466_v3 = vpop.f32.mrf.mxu0  ;;  %v9468_v1 = vpop.f32.mrf.mxu1  ;;  %7153 = vmatmul.mubr.msk.bf16.gmra.mxu0 %vm9268_vm9, %v11352_v28  ;;  %7185 = vmatmul.mubr.msk.bf16.gmra.mxu1 %vm9268_vm9, %v11352_v28 }
 0x18d   :  { %4041 = vmatpush2.bf16.msra.mxu0 %v8250_v54  ;;  %4154 = vmatpush2.bf16.msra.mxu1 %v8253_v37 }
 0x18e   :  { %7155 = vmatprep.mubr.msk.bf16.mxu0 %vm11439_vm3, %v11352_v28  ;;  %7187 = vmatprep.mubr.msk.bf16.mxu1 %vm11439_vm3, %v11352_v28  ;;  %v9482_v58 = vpop.f32.mrf.mxu0  ;;  %v9484_v55 = vpop.f32.mrf.mxu1 }
 0x18f   :  { %4042 = vmatprep.subr.bf16.mxu0 %v8258_v56  ;;  %4155 = vmatprep.subr.bf16.mxu1 %v8261_v4  ;;  %v8276_v56 = vld [vmem:[#allocation5 + $0x564] ss:$16 sps:$4 sm:$0xff]   ;;  %v8279_v4 = vld [vmem:[#allocation5 + $0x56c] ss:$16 sps:$4 sm:$0xff]  }
 0x190   :  { %v9486_v8 = vpop.f32.mrf.mxu0  ;;  %v9488_v36 = vpop.f32.mrf.mxu1 }
 0x191   :  { %11440 = vst [vmem:[#allocation12_spill] sm:$0xff] %v9488_v36  ;;  %4043 = vmatpush2.bf16.msra.mxu0 %v8256_v26  ;;  %4156 = vmatpush2.bf16.msra.mxu1 %v8259_v46  ;;  %v8274_v46 = vld [vmem:[#allocation5 + $0x560] ss:$16 sps:$4 sm:$0xff]  }
 0x192   :  { %v9490_v6 = vpop.f32.mrf.mxu0  ;;  %v9492_v13 = vpop.f32.mrf.mxu1  ;;  %4044 = vmatprep.subr.bf16.mxu0 %v8264_v38  ;;  %4157 = vmatprep.subr.bf16.mxu1 %v8267_v24  ;;  %v8277_v38 = vld [vmem:[#allocation5 + $0x568] ss:$16 sps:$4 sm:$0xff]  }
 0x193   :  { %11441 = vst [vmem:[#allocation13_spill] sm:$0xff] %v9490_v6  ;;  %11442 = vst [vmem:[#allocation14_spill] sm:$0xff] %v9492_v13  ;;  %v65_v6 = vld [vmem:[#allocation7 + $0x30] sm:$0xff] }
 0x194   :  { %v9494_v50 = vpop.f32.mrf.mxu0  ;;  %v9496_v52 = vpop.f32.mrf.mxu1  ;;  %7157 = vmatmul.mubr.msk.bf16.gmra.mxu0 %vm11445_vm10, %v11352_v28  ;;  %7189 = vmatmul.mubr.msk.bf16.gmra.mxu1 %vm11445_vm10, %v11352_v28 }
 0x195   :  { %11443 = vst [vmem:[#allocation15_spill] sm:$0xff] %v9494_v50  ;;  %11444 = vst [vmem:[#allocation16_spill] sm:$0xff] %v9496_v52  ;;  %4045 = vmatpush2.bf16.msra.mxu0 %v8262_v9  ;;  %4158 = vmatpush2.bf16.msra.mxu1 %v8265_v15  ;;  %v8282_v9 = vld [vmem:[#allocation5 + $0x544] ss:$16 sps:$4 sm:$0xff]   ;;  %v8285_v15 = vld [vmem:[#allocation5 + $0x54c] ss:$16 sps:$4 sm:$0xff]  }
 0x196   :  { %7159 = vmatprep.mubr.msk.bf16.mxu0 %vm11446_vm6, %v11352_v28  ;;  %7191 = vmatprep.mubr.msk.bf16.mxu1 %vm11446_vm6, %v11352_v28  ;;  %v9510_v54 = vpop.f32.mrf.mxu0  ;;  %v9512_v37 = vpop.f32.mrf.mxu1  ;;  %v8312_v52 = vld [vmem:[#allocation2 + $0x4a4] ss:$16 sps:$4 sm:$0xff]   ;;  %v8315_v50 = vld [vmem:[#allocation2 + $0x4ac] ss:$16 sps:$4 sm:$0xff]  }
 0x197   :  { %11447 = vst [vmem:[#allocation17_spill] sm:$0xff] %v9510_v54  ;;  %11448 = vst [vmem:[#allocation18_spill] sm:$0xff] %v9512_v37  ;;  %4046 = vmatprep.subr.bf16.mxu0 %v8270_v42  ;;  %4159 = vmatprep.subr.bf16.mxu1 %v8273_v20  ;;  %v11455_v20 = vmov 1.0|1.0   ;;  %v62_v37 = vld [vmem:[#allocation7 + $0x18] sm:$0xff] }
 0x198   :  { %v9514_v5 = vpop.f32.mrf.mxu0  ;;  %v9516_v26 = vpop.f32.mrf.mxu1 }
 0x199   :  { %11449 = vst [vmem:[#allocation19_spill] sm:$0xff] %v9514_v5  ;;  %11450 = vst [vmem:[#allocation20_spill] sm:$0xff] %v9516_v26  ;;  %4047 = vmatpush2.bf16.msra.mxu0 %v8268_v12  ;;  %4160 = vmatpush2.bf16.msra.mxu1 %v8271_v60  ;;  %v8280_v12 = vld [vmem:[#allocation5 + $0x540] ss:$16 sps:$4 sm:$0xff]   ;;  %v8283_v60 = vld [vmem:[#allocation5 + $0x548] ss:$16 sps:$4 sm:$0xff]  }
 0x19a   :  { %v9518_v24 = vpop.f32.mrf.mxu0  ;;  %v9520_v18 = vpop.f32.mrf.mxu1  ;;  %4048 = vmatprep.subr.bf16.mxu0 %v8276_v56  ;;  %4161 = vmatprep.subr.bf16.mxu1 %v8279_v4  ;;  %v8289_v26 = vld [vmem:[#allocation5 + $0x528] ss:$16 sps:$4 sm:$0xff]  }
 0x19b   :  { %11451 = vst [vmem:[#allocation21_spill] sm:$0xff] %v9518_v24  ;;  %11452 = vst [vmem:[#allocation22_spill] sm:$0xff] %v9520_v18  ;;  %v3413_v18 = vpop.permute.xlu0 %3412  ;;  %v8286_v24 = vld [vmem:[#allocation5 + $0x520] ss:$16 sps:$4 sm:$0xff]  }
 0x19c   :  { %v9522_v28 = vpop.f32.mrf.mxu0  ;;  %v9524_v42 = vpop.f32.mrf.mxu1  ;;  %7161 = vmatmul.mubr.msk.bf16.gmra.mxu0 %vm9314_vm14, %v11455_v20  ;;  %7193 = vmatmul.mubr.msk.bf16.gmra.mxu1 %vm9314_vm14, %v11455_v20  ;;  %vm3460_vm7 = vcmp.eq.s32.totalorder %v3413_v18, %v8866_v25  ;;  %vm3459_vm11 = vcmp.eq.s32.totalorder %v3413_v18, %v8862_v19  ;;  %v11473_v18 = vmov 0 }
 0x19d   :  { %11453 = vst [vmem:[#allocation23_spill] sm:$0xff] %v9522_v28  ;;  %11454 = vst [vmem:[#allocation24_spill] sm:$0xff] %v9524_v42  ;;  %4049 = vmatpush2.bf16.msra.mxu0 %v8274_v46  ;;  %4162 = vmatpush2.bf16.msra.mxu1 %v8277_v38  ;;  %v8288_v42 = vld [vmem:[#allocation5 + $0x524] ss:$16 sps:$4 sm:$0xff]   ;;  %v8291_v28 = vld [vmem:[#allocation5 + $0x52c] ss:$16 sps:$4 sm:$0xff]  }
 0x19e   :  { %7163 = vmatprep.mubr.msk.bf16.mxu0 %vm9326_vm0, %v11455_v20  ;;  %7195 = vmatprep.mubr.msk.bf16.mxu1 %vm9326_vm0, %v11455_v20  ;;  %v9538_v56 = vpop.f32.mrf.mxu0  ;;  %v9540_v4 = vpop.f32.mrf.mxu1  ;;  %vm9562_vm12 = vmpackc.low %vm3462_vm5, %vm3460_vm7 }
 0x19f   :  { %11456 = vst [vmem:[#allocation25_spill] sm:$0xff] %v9538_v56  ;;  %11457 = vst [vmem:[#allocation26_spill] sm:$0xff] %v9540_v4  ;;  %4050 = vmatprep.subr.bf16.mxu0 %v8282_v9  ;;  %4163 = vmatprep.subr.bf16.mxu1 %v8285_v15  ;;  %v8294_v9 = vld [vmem:[#allocation5 + $0x504] ss:$16 sps:$4 sm:$0xff]   ;;  %v8297_v15 = vld [vmem:[#allocation5 + $0x50c] ss:$16 sps:$4 sm:$0xff]  }
 0x1a0   :  { %v9542_v46 = vpop.f32.mrf.mxu0  ;;  %v9544_v38 = vpop.f32.mrf.mxu1  ;;  %vm9594_vm1 = vmpackc.low %vm3461_vm15, %vm3459_vm11 }
 0x1a1   :  { %11458 = vst [vmem:[#allocation27_spill] sm:$0xff] %v9542_v46  ;;  %11459 = vst [vmem:[#allocation28_spill] sm:$0xff] %v9544_v38  ;;  %4051 = vmatpush2.bf16.msra.mxu0 %v8280_v12  ;;  %4164 = vmatpush2.bf16.msra.mxu1 %v8283_v60  ;;  %v11464_v12 = vmov 0  ;;  %v11474_v18 = vsel %vm9594_vm1, 4294967295, %v11473_v18  ;;  %v8307_v38 = vld [vmem:[#allocation2 + $0x4c8] ss:$16 sps:$4 sm:$0xff]  }
 0x1a2   :  { %v9548_v33 = vpop.f32.mrf.mxu0  ;;  %v9550_v4 = vpop.f32.mrf.mxu1  ;;  %4052 = vmatprep.subr.bf16.mxu0 %v8288_v42  ;;  %4165 = vmatprep.subr.bf16.mxu1 %v8291_v28  ;;  %v11465_v12 = vsel %vm9562_vm12, 4294967295, %v11464_v12  ;;  %v8292_v28 = vld [vmem:[#allocation5 + $0x500] ss:$16 sps:$4 sm:$0xff]   ;;  %v8295_v42 = vld [vmem:[#allocation5 + $0x508] ss:$16 sps:$4 sm:$0xff]   ;;  %11475 = vst [vmem:[#allocation40_spill] sm:$0xff] %v11474_v18 }
 0x1a3   :  { %11460 = vst [vmem:[#allocation29_spill] sm:$0xff] %v9548_v33  ;;  %11461 = vst [vmem:[#allocation30_spill] sm:$0xff] %v9550_v4  ;;  %v9576_v4 = vpop.permute.xlu1 %3421  ;;  %v8304_v33 = vld [vmem:[#allocation2 + $0x4c0] ss:$16 sps:$4 sm:$0xff]   ;;  %v60_v18 = vld [vmem:[#allocation7 + $0x8] sm:$0xff] }
 0x1a4   :  { %v9552_v56 = vpop.f32.mrf.mxu0  ;;  %v9554_v46 = vpop.f32.mrf.mxu1  ;;  %7165 = vmatmul.mubr.msk.bf16.gmra.mxu0 %vm9338_vm2, %v11455_v20  ;;  %7197 = vmatmul.mubr.msk.bf16.gmra.mxu1 %vm9338_vm2, %v11455_v20  ;;  %11466 = vst [vmem:[#allocation33_spill] sm:$0xff] %v11465_v12  ;;  %vm3466_vm8 = vcmp.eq.s32.totalorder %v9576_v4, %v8866_v25  ;;  %vm3465_vm4 = vcmp.eq.s32.totalorder %v9576_v4, %v8862_v19  ;;  %v8318_v4 = vld [vmem:[#allocation2 + $0x484] ss:$16 sps:$4 sm:$0xff]  }
 0x1a5   :  { %11462 = vst [vmem:[#allocation31_spill] sm:$0xff] %v9552_v56  ;;  %11463 = vst [vmem:[#allocation32_spill] sm:$0xff] %v9554_v46  ;;  %4053 = vmatpush2.bf16.msra.mxu0 %v8286_v24  ;;  %4166 = vmatpush2.bf16.msra.mxu1 %v8289_v26  ;;  %v8300_v46 = vld [vmem:[#allocation2 + $0x4e4] ss:$16 sps:$4 sm:$0xff]   ;;  %v8303_v56 = vld [vmem:[#allocation2 + $0x4ec] ss:$16 sps:$4 sm:$0xff]   ;;  %v9578_v24 = vpop.permute.xlu0 %3418 }
 0x1a6   :  { %7311 = vmatprep.mubr.msk.bf16.mxu0 %vm9562_vm12, %v11455_v20  ;;  %7343 = vmatprep.mubr.msk.bf16.mxu1 %vm9562_vm12, %v11455_v20  ;;  %v9572_v60 = vpop.f32.mrf.mxu0  ;;  %v9574_v39 = vpop.f32.mrf.mxu1  ;;  %vm3464_vm9 = vcmp.eq.s32.totalorder %v9578_v24, %v8866_v25  ;;  %vm3463_vm0 = vcmp.eq.s32.totalorder %v9578_v24, %v8862_v19 }
 0x1a7   :  { %11467 = vst [vmem:[#allocation34_spill] sm:$0xff] %v9572_v60  ;;  %11468 = vst [vmem:[#allocation35_spill] sm:$0xff] %v9574_v39  ;;  %4054 = vmatprep.subr.bf16.mxu0 %v8294_v9  ;;  %4167 = vmatprep.subr.bf16.mxu1 %v8297_v15  ;;  %v8298_v60 = vld [vmem:[#allocation2 + $0x4e0] ss:$16 sps:$4 sm:$0xff]   ;;  %v8301_v39 = vld [vmem:[#allocation2 + $0x4e8] ss:$16 sps:$4 sm:$0xff]  }
 0x1a8   :  { %v9582_v26 = vpop.f32.mrf.mxu0  ;;  %v9584_v12 = vpop.f32.mrf.mxu1  ;;  %vm9607_vm14 = vmpackc.low %vm3466_vm8, %vm3464_vm9 }
 0x1a9   :  { %11469 = vst [vmem:[#allocation36_spill] sm:$0xff] %v9582_v26  ;;  %11470 = vst [vmem:[#allocation37_spill] sm:$0xff] %v9584_v12  ;;  %4055 = vmatpush2.bf16.msra.mxu0 %v8292_v28  ;;  %4168 = vmatpush2.bf16.msra.mxu1 %v8295_v42  ;;  %v59_v28 = vld [vmem:[#allocation7] sm:$0xff]  ;;  %v61_v12 = vld [vmem:[#allocation7 + $0x10] sm:$0xff] }
 0x1aa   :  { %v9590_v9 = vpop.f32.mrf.mxu0  ;;  %v9592_v15 = vpop.f32.mrf.mxu1  ;;  %4570 = vmatprep.subr.bf16.mxu0 %v8300_v46  ;;  %4683 = vmatprep.subr.bf16.mxu1 %v8303_v56  ;;  %v11476_v56 = vmov 0  ;;  %vm9641_vm3 = vmpackc.low %vm3465_vm4, %vm3463_vm0 }
 0x1ab   :  { %11471 = vst [vmem:[#allocation38_spill] sm:$0xff] %v9590_v9  ;;  %11472 = vst [vmem:[#allocation39_spill] sm:$0xff] %v9592_v15  ;;  %v8309_v15 = vld [vmem:[#allocation2 + $0x4cc] ss:$16 sps:$4 sm:$0xff]   ;;  %v11477_v56 = vsel %vm9607_vm14, 4294967295, %v11476_v56 }
 0x1ac   :  { %v1416_v42 = vpop.f32.mrf.mxu0  ;;  %v1529_v26 = vpop.f32.mrf.mxu1  ;;  %7313 = vmatmul.mubr.msk.bf16.vlgmr.msra.gmra.mxu0 %vm9594_vm1, %v11455_v20  ;;  %7345 = vmatmul.mubr.msk.bf16.vlgmr.msra.gmra.mxu1 %vm9594_vm1, %v11455_v20  ;;  %11478 = vst [vmem:[#allocation41_spill] sm:$0xff] %v11477_v56  ;;  %v63_v56 = vld [vmem:[#allocation7 + $0x20] sm:$0xff] }
 0x1ad   :  { %v1417_v46 = vadd.f32 %v1416_v42, %v9354_v57  ;;  %v1530_v9 = vadd.f32 %v1529_v26, %v9356_v35  ;;  %4571 = vmatpush1.bf16.msra.mxu0 %v8298_v60  ;;  %4684 = vmatpush1.bf16.msra.mxu1 %v8301_v39  ;;  %v9619_v57 = vpop.permute.xlu1 %3427  ;;  %v9621_v35 = vpop.permute.xlu0 %3424 }
 0x1ae   :  { %7315 = vmatprep.mubr.msk.bf16.mxu0 %vm9607_vm14, %v11455_v20  ;;  %7347 = vmatprep.mubr.msk.bf16.mxu1 %vm9607_vm14, %v11455_v20  ;;  %v1418_v5 = vpop.f32.mrf.mxu0  ;;  %v1531_v54 = vpop.f32.mrf.mxu1  ;;  %vm3470_vm13 = vcmp.eq.s32.totalorder %v9619_v57, %v8866_v25  ;;  %vm3468_vm2 = vcmp.eq.s32.totalorder %v9621_v35, %v8866_v25  ;;  %vm3469_vm6 = vcmp.eq.s32.totalorder %v9619_v57, %v8862_v19  ;;  %v8330_v57 = vld [vmem:[#allocation2 + $0x444] ss:$16 sps:$4 sm:$0xff]  }
 0x1af   :  { %v1672_v60 = vadd.f32 %v1417_v46, %v59_v28  ;;  %v1674_v39 = vadd.f32 %v1530_v9, %v61_v12  ;;  %v1419_v26 = vadd.f32 %v1418_v5, %v9370_v62  ;;  %v1532_v42 = vadd.f32 %v1531_v54, %v9372_v63  ;;  %4572 = vmatprep.subr.bf16.mxu0 %v8306_v31  ;;  %v8310_v54 = vld [vmem:[#allocation2 + $0x4a0] ss:$16 sps:$4 sm:$0xff]   ;;  %v64_v5 = vld [vmem:[#allocation7 + $0x28] sm:$0xff]  ;;  %v66_v31 = vld [vmem:[#allocation7 + $0x38] sm:$0xff] }
 0x1b0   :  { %4685 = vmatprep.subr.bf16.mxu1 %v8309_v15  ;;  %v1420_v13 = vpop.f32.mrf.mxu0  ;;  %v1533_v36 = vpop.f32.mrf.mxu1  ;;  %vm9659_vm10 = vmpackc.low %vm3470_vm13, %vm3468_vm2  ;;  %vm3467_vm5 = vcmp.eq.s32.totalorder %v9621_v35, %v8862_v19 }
 0x1b1   :  { %1736 = vst [vmem:[#allocation8] sm:$0xff] %v1672_v60  ;;  %1738 = vst [vmem:[#allocation8 + $0x10] sm:$0xff] %v1674_v39  ;;  %v1673_v12 = vadd.f32 %v1419_v26, %v60_v18  ;;  %v1675_v9 = vadd.f32 %v1532_v42, %v62_v37  ;;  %v1421_v62 = vadd.f32 %v1420_v13, %v9374_v47  ;;  %4573 = vmatpush1.bf16.msra.mxu0 %v8304_v33  ;;  %v8313_v18 = vld [vmem:[#allocation2 + $0x4a8] ss:$16 sps:$4 sm:$0xff]   ;;  %v69_v33 = vld [vmem:[#allocation7 + $0x50] sm:$0xff] }
 0x1b2   :  { %v1534_v63 = vadd.f32 %v1533_v36, %v9376_v7  ;;  %4686 = vmatpush1.bf16.msra.mxu1 %v8307_v38  ;;  %v1422_v15 = vpop.f32.mrf.mxu0  ;;  %v1535_v28 = vpop.f32.mrf.mxu1  ;;  %4574 = vmatprep.subr.bf16.mxu0 %v8312_v52  ;;  %v67_v52 = vld [vmem:[#allocation7 + $0x40] sm:$0xff]  ;;  %v68_v60 = vld [vmem:[#allocation7 + $0x48] sm:$0xff]  ;;  %v70_v42 = vld [vmem:[#allocation7 + $0x58] sm:$0xff] }
 0x1b3   :  { %1737 = vst [vmem:[#allocation8 + $0x8] sm:$0xff] %v1673_v12  ;;  %1739 = vst [vmem:[#allocation8 + $0x18] sm:$0xff] %v1675_v9  ;;  %v1676_v7 = vadd.f32 %v1421_v62, %v63_v56  ;;  %v1423_v13 = vadd.f32 %v1422_v15, %v9378_v23  ;;  %v1536_v37 = vadd.f32 %v1535_v28, %v9380_v14  ;;  %4687 = vmatprep.subr.bf16.mxu1 %v8315_v50  ;;  %v8321_v56 = vld [vmem:[#allocation2 + $0x48c] ss:$16 sps:$4 sm:$0xff]   ;;  %v8316_v39 = vld [vmem:[#allocation2 + $0x480] ss:$16 sps:$4 sm:$0xff]  }
 0x1b4   :  { %v1678_v36 = vadd.f32 %v1534_v63, %v65_v6  ;;  %v1426_v38 = vpop.f32.mrf.mxu0  ;;  %v1539_v24 = vpop.f32.mrf.mxu1  ;;  %7317 = vmatmul.mubr.msk.bf16.gmra.mxu0 %vm9641_vm3, %v11455_v20  ;;  %7349 = vmatmul.mubr.msk.bf16.gmra.mxu1 %vm9641_vm3, %v11455_v20  ;;  %v8319_v9 = vld [vmem:[#allocation2 + $0x488] ss:$16 sps:$4 sm:$0xff]   ;;  %v8324_v62 = vld [vmem:[#allocation2 + $0x464] ss:$16 sps:$4 sm:$0xff]   ;;  %vm9693_vm11 = vmpackc.low %vm3469_vm6, %vm3467_vm5 }
 0x1b5   :  { %1740 = vst [vmem:[#allocation8 + $0x20] sm:$0xff] %v1676_v7  ;;  %v1677_v14 = vadd.f32 %v1423_v13, %v64_v5  ;;  %v1679_v6 = vadd.f32 %v1536_v37, %v66_v31  ;;  %v1427_v50 = vadd.f32 %v1426_v38, %v9382_v59  ;;  %v1540_v46 = vadd.f32 %v1539_v24, %v9384_v27  ;;  %v9668_v63 = vpop.permute.xlu1 %3433  ;;  %v9670_v5 = vpop.permute.xlu0 %3430  ;;  %v8327_v31 = vld [vmem:[#allocation2 + $0x46c] ss:$16 sps:$4 sm:$0xff]   ;;  %v71_v28 = vld [vmem:[#allocation7 + $0x60] sm:$0xff]  ;;  %v73_v7 = vld [vmem:[#allocation7 + $0x70] sm:$0xff] }
 0x1b6   :  { %1742 = vst [vmem:[#allocation8 + $0x30] sm:$0xff] %v1678_v36  ;;  %4575 = vmatpush1.bf16.msra.mxu0 %v8310_v54  ;;  %4688 = vmatpush1.bf16.msra.mxu1 %v8313_v18  ;;  %v1428_v26 = vpop.f32.mrf.mxu0  ;;  %v1541_v12 = vpop.f32.mrf.mxu1  ;;  %vm3474_vm7 = vcmp.eq.s32.totalorder %v9668_v63, %v8866_v25  ;;  %vm3472_vm15 = vcmp.eq.s32.totalorder %v9670_v5, %v8866_v25  ;;  %v72_v38 = vld [vmem:[#allocation7 + $0x68] sm:$0xff]  ;;  %v74_v24 = vld [vmem:[#allocation7 + $0x78] sm:$0xff] }
 0x1b7   :  { %7319 = vmatprep.mubr.msk.bf16.mxu0 %vm9659_vm10, %v11455_v20  ;;  %1741 = vst [vmem:[#allocation8 + $0x28] sm:$0xff] %v1677_v14  ;;  %1743 = vst [vmem:[#allocation8 + $0x38] sm:$0xff] %v1679_v6  ;;  %v1680_v59 = vadd.f32 %v1427_v50, %v67_v52  ;;  %v1682_v27 = vadd.f32 %v1540_v46, %v69_v33  ;;  %7351 = vmatprep.mubr.msk.bf16.mxu1 %vm9659_vm10, %v11455_v20  ;;  %v8322_v52 = vld [vmem:[#allocation2 + $0x460] ss:$16 sps:$4 sm:$0xff]   ;;  %v8423_v47 = vld [vmem:[#allocation5 + $0x66c] ss:$16 sps:$4 sm:$0xff]  }
 0x1b8   :  { %v1429_v54 = vadd.f32 %v1428_v26, %v9398_v10  ;;  %v1542_v15 = vadd.f32 %v1541_v12, %v9400_v43  ;;  %4576 = vmatprep.subr.bf16.mxu0 %v8318_v4  ;;  %4689 = vmatprep.subr.bf16.mxu1 %v8321_v56  ;;  %v1430_v18 = vpop.f32.mrf.mxu0  ;;  %v1543_v36 = vpop.f32.mrf.mxu1  ;;  %v8325_v56 = vld [vmem:[#allocation2 + $0x468] ss:$16 sps:$4 sm:$0xff]   ;;  %v75_v46 = vld [vmem:[#allocation7 + $0x80] sm:$0xff]  ;;  %v8333_v26 = vld [vmem:[#allocation2 + $0x44c] ss:$16 sps:$4 sm:$0xff]   ;;  %vm3473_vm9 = vcmp.eq.s32.totalorder %v9668_v63, %v8862_v19 }
 0x1b9   :  { %1744 = vst [vmem:[#allocation8 + $0x40] sm:$0xff] %v1680_v59  ;;  %1746 = vst [vmem:[#allocation8 + $0x50] sm:$0xff] %v1682_v27  ;;  %v1431_v10 = vadd.f32 %v1430_v18, %v9402_v11  ;;  %v1544_v43 = vadd.f32 %v1543_v36, %v9404_v21  ;;  %v8328_v59 = vld [vmem:[#allocation2 + $0x440] ss:$16 sps:$4 sm:$0xff]   ;;  %v9720_v18 = vpop.permute.xlu1 %3439  ;;  %vm3471_vm4 = vcmp.eq.s32.totalorder %v9670_v5, %v8862_v19  ;;  %v8342_v63 = vld [vmem:[#allocation2 + $0x404] ss:$16 sps:$4 sm:$0xff]  }
 0x1ba   :  { %v1681_v13 = vadd.f32 %v1429_v54, %v68_v60  ;;  %v1683_v37 = vadd.f32 %v1542_v15, %v70_v42  ;;  %4577 = vmatpush1.bf16.msra.mxu0 %v8316_v39  ;;  %4690 = vmatpush1.bf16.msra.mxu1 %v8319_v9  ;;  %v1432_v33 = vpop.f32.mrf.mxu0  ;;  %v1545_v4 = vpop.f32.mrf.mxu1  ;;  %v77_v39 = vld [vmem:[#allocation7 + $0x90] sm:$0xff]  ;;  %vm9711_vm8 = vmpackc.low %vm3474_vm7, %vm3472_vm15  ;;  %v78_v54 = vld [vmem:[#allocation7 + $0x98] sm:$0xff]  ;;  %vm3478_vm0 = vcmp.eq.s32.totalorder %v9720_v18, %v8866_v25 }
 0x1bb   :  { %4578 = vmatprep.subr.bf16.mxu0 %v8324_v62  ;;  %v1684_v21 = vadd.f32 %v1431_v10, %v71_v28  ;;  %v1686_v14 = vadd.f32 %v1544_v43, %v73_v7  ;;  %v1433_v6 = vadd.f32 %v1432_v33, %v9406_v22  ;;  %v1546_v50 = vadd.f32 %v1545_v4, %v9408_v32  ;;  %v76_v62 = vld [vmem:[#allocation7 + $0x88] sm:$0xff]  ;;  %v8336_v28 = vld [vmem:[#allocation2 + $0x424] ss:$16 sps:$4 sm:$0xff]   ;;  %v9722_v7 = vpop.permute.xlu0 %3436  ;;  %v8334_v4 = vld [vmem:[#allocation2 + $0x420] ss:$16 sps:$4 sm:$0xff]  }
 0x1bc   :  { %1745 = vst [vmem:[#allocation8 + $0x48] sm:$0xff] %v1681_v13  ;;  %1747 = vst [vmem:[#allocation8 + $0x58] sm:$0xff] %v1683_v37  ;;  %4691 = vmatprep.subr.bf16.mxu1 %v8327_v31  ;;  %v1436_v60 = vpop.f32.mrf.mxu0  ;;  %v1549_v35 = vpop.f32.mrf.mxu1  ;;  %7321 = vmatmul.mubr.msk.bf16.gmra.mxu0 %vm9693_vm11, %v11455_v20  ;;  %v8331_v31 = vld [vmem:[#allocation2 + $0x448] ss:$16 sps:$4 sm:$0xff]   ;;  %v8339_v37 = vld [vmem:[#allocation2 + $0x42c] ss:$16 sps:$4 sm:$0xff]   ;;  %vm3476_vm13 = vcmp.eq.s32.totalorder %v9722_v7, %v8866_v25  ;;  %vm3477_vm5 = vcmp.eq.s32.totalorder %v9720_v18, %v8862_v19 }
 0x1bd   :  { %7353 = vmatmul.mubr.msk.bf16.gmra.mxu1 %vm9693_vm11, %v11455_v20  ;;  %1748 = vst [vmem:[#allocation8 + $0x60] sm:$0xff] %v1684_v21  ;;  %1750 = vst [vmem:[#allocation8 + $0x70] sm:$0xff] %v1686_v14  ;;  %v1685_v32 = vadd.f32 %v1433_v6, %v72_v38  ;;  %v1687_v42 = vadd.f32 %v1546_v50, %v74_v24  ;;  %v1437_v12 = vadd.f32 %v1436_v60, %v9410_v30  ;;  %v79_v10 = vld [vmem:[#allocation7 + $0xa0] sm:$0xff]  ;;  %v82_v14 = vld [vmem:[#allocation7 + $0xb8] sm:$0xff] }
 0x1be   :  { %v1550_v9 = vadd.f32 %v1549_v35, %v9412_v34  ;;  %4579 = vmatpush1.bf16.msra.mxu0 %v8322_v52  ;;  %4692 = vmatpush1.bf16.msra.mxu1 %v8325_v56  ;;  %v1438_v27 = vpop.f32.mrf.mxu0  ;;  %v1551_v15 = vpop.f32.mrf.mxu1  ;;  %v81_v52 = vld [vmem:[#allocation7 + $0xb0] sm:$0xff]  ;;  %v80_v56 = vld [vmem:[#allocation7 + $0xa8] sm:$0xff]  ;;  %vm9745_vm2 = vmpackc.low %vm3473_vm9, %vm3471_vm4  ;;  %vm3475_vm7 = vcmp.eq.s32.totalorder %v9722_v7, %v8862_v19 }
 0x1bf   :  { %7323 = vmatprep.mubr.msk.bf16.mxu0 %vm9711_vm8, %v11455_v20  ;;  %1749 = vst [vmem:[#allocation8 + $0x68] sm:$0xff] %v1685_v32  ;;  %1751 = vst [vmem:[#allocation8 + $0x78] sm:$0xff] %v1687_v42  ;;  %v1688_v30 = vadd.f32 %v1437_v12, %v75_v46  ;;  %7355 = vmatprep.mubr.msk.bf16.mxu1 %vm9711_vm8, %v11455_v20  ;;  %v1439_v36 = vadd.f32 %v1438_v27, %v9426_v40  ;;  %v8337_v50 = vld [vmem:[#allocation2 + $0x428] ss:$16 sps:$4 sm:$0xff]   ;;  %v83_v35 = vld [vmem:[#allocation7 + $0xc0] sm:$0xff] }
 0x1c0   :  { %v1690_v34 = vadd.f32 %v1550_v9, %v77_v39  ;;  %v1552_v13 = vadd.f32 %v1551_v15, %v9428_v41  ;;  %4580 = vmatprep.subr.bf16.mxu0 %v8330_v57  ;;  %4693 = vmatprep.subr.bf16.mxu1 %v8333_v26  ;;  %v1440_v43 = vpop.f32.mrf.mxu0  ;;  %v1553_v38 = vpop.f32.mrf.mxu1  ;;  %v85_v26 = vld [vmem:[#allocation7 + $0xd0] sm:$0xff]  ;;  %v8345_v32 = vld [vmem:[#allocation2 + $0x40c] ss:$16 sps:$4 sm:$0xff]   ;;  %vm9763_vm6 = vmpackc.low %vm3478_vm0, %vm3476_vm13 }
 0x1c1   :  { %1752 = vst [vmem:[#allocation8 + $0x80] sm:$0xff] %v1688_v30  ;;  %v1689_v33 = vadd.f32 %v1439_v36, %v76_v62  ;;  %v1441_v40 = vadd.f32 %v1440_v43, %v9430_v44  ;;  %v1554_v41 = vadd.f32 %v1553_v38, %v9432_v45  ;;  %v84_v62 = vld [vmem:[#allocation7 + $0xc8] sm:$0xff]  ;;  %v9772_v30 = vpop.permute.xlu1 %3445  ;;  %vm9797_vm4 = vmpackc.low %vm3477_vm5, %vm3475_vm7  ;;  %v8354_v18 = vld [vmem:[#allocation2 + $0x5c4] ss:$16 sps:$4 sm:$0xff]  }
 0x1c2   :  { %1754 = vst [vmem:[#allocation8 + $0x90] sm:$0xff] %v1690_v34  ;;  %v1691_v24 = vadd.f32 %v1552_v13, %v78_v54  ;;  %4581 = vmatpush1.bf16.msra.mxu0 %v8328_v59  ;;  %4694 = vmatpush1.bf16.msra.mxu1 %v8331_v31  ;;  %v1442_v21 = vpop.f32.mrf.mxu0  ;;  %v1555_v6 = vpop.f32.mrf.mxu1  ;;  %v8340_v59 = vld [vmem:[#allocation2 + $0x400] ss:$16 sps:$4 sm:$0xff]   ;;  %v86_v54 = vld [vmem:[#allocation7 + $0xd8] sm:$0xff]  ;;  %vm3482_vm15 = vcmp.eq.s32.totalorder %v9772_v30, %v8866_v25 }
 0x1c3   :  { %4582 = vmatprep.subr.bf16.mxu0 %v8336_v28  ;;  %1753 = vst [vmem:[#allocation8 + $0x88] sm:$0xff] %v1689_v33  ;;  %v1692_v45 = vadd.f32 %v1441_v40, %v79_v10  ;;  %v1694_v46 = vadd.f32 %v1554_v41, %v81_v52  ;;  %v1443_v60 = vadd.f32 %v1442_v21, %v9434_v48  ;;  %v8343_v31 = vld [vmem:[#allocation2 + $0x408] ss:$16 sps:$4 sm:$0xff]   ;;  %v8348_v28 = vld [vmem:[#allocation2 + $0x5e4] ss:$16 sps:$4 sm:$0xff]   ;;  %v9774_v34 = vpop.permute.xlu0 %3442 }
 0x1c4   :  { %1755 = vst [vmem:[#allocation8 + $0x98] sm:$0xff] %v1691_v24  ;;  %v1556_v39 = vadd.f32 %v1555_v6, %v9436_v49  ;;  %4695 = vmatprep.subr.bf16.mxu1 %v8339_v37  ;;  %v1446_v57 = vpop.f32.mrf.mxu0  ;;  %v1559_v5 = vpop.f32.mrf.mxu1  ;;  %7325 = vmatmul.mubr.msk.bf16.gmra.mxu0 %vm9745_vm2, %v11455_v20  ;;  %v8351_v37 = vld [vmem:[#allocation2 + $0x5ec] ss:$16 sps:$4 sm:$0xff]   ;;  %v87_v10 = vld [vmem:[#allocation7 + $0xe0] sm:$0xff]  ;;  %v89_v52 = vld [vmem:[#allocation7 + $0xf0] sm:$0xff]  ;;  %vm3480_vm9 = vcmp.eq.s32.totalorder %v9774_v34, %v8866_v25 }
 0x1c5   :  { %7357 = vmatmul.mubr.msk.bf16.gmra.mxu1 %vm9745_vm2, %v11455_v20  ;;  %1756 = vst [vmem:[#allocation8 + $0xa0] sm:$0xff] %v1692_v45  ;;  %1758 = vst [vmem:[#allocation8 + $0xb0] sm:$0xff] %v1694_v46  ;;  %v1693_v49 = vadd.f32 %v1443_v60, %v80_v56  ;;  %v1447_v12 = vadd.f32 %v1446_v57, %v9438_v53  ;;  %v1560_v9 = vadd.f32 %v1559_v5, %v9440_v29  ;;  %v8346_v40 = vld [vmem:[#allocation2 + $0x5e0] ss:$16 sps:$4 sm:$0xff]   ;;  %v88_v41 = vld [vmem:[#allocation7 + $0xe8] sm:$0xff] }
 0x1c6   :  { %v1695_v42 = vadd.f32 %v1556_v39, %v82_v14  ;;  %4583 = vmatpush1.bf16.msra.mxu0 %v8334_v4  ;;  %4696 = vmatpush1.bf16.msra.mxu1 %v8337_v50  ;;  %v1448_v27 = vpop.f32.mrf.mxu0  ;;  %v1561_v15 = vpop.f32.mrf.mxu1  ;;  %v90_v56 = vld [vmem:[#allocation7 + $0xf8] sm:$0xff]  ;;  %v91_v46 = vld [vmem:[#allocation7 + $0x100] sm:$0xff]  ;;  %v93_v39 = vld [vmem:[#allocation7 + $0x110] sm:$0xff]  ;;  %vm3481_vm13 = vcmp.eq.s32.totalorder %v9772_v30, %v8862_v19  ;;  %vm3479_vm5 = vcmp.eq.s32.totalorder %v9774_v34, %v8862_v19 }
 0x1c7   :  { %7327 = vmatprep.mubr.msk.bf16.mxu0 %vm9763_vm6, %v11455_v20  ;;  %1757 = vst [vmem:[#allocation8 + $0xa8] sm:$0xff] %v1693_v49  ;;  %v1696_v53 = vadd.f32 %v1447_v12, %v83_v35  ;;  %v1698_v29 = vadd.f32 %v1560_v9, %v85_v26  ;;  %7359 = vmatprep.mubr.msk.bf16.mxu1 %vm9763_vm6, %v11455_v20  ;;  %v8349_v14 = vld [vmem:[#allocation2 + $0x5e8] ss:$16 sps:$4 sm:$0xff]   ;;  %v8357_v35 = vld [vmem:[#allocation2 + $0x5cc] ss:$16 sps:$4 sm:$0xff]   ;;  %vm9815_vm0 = vmpackc.low %vm3482_vm15, %vm3480_vm9 }
 0x1c8   :  { %1759 = vst [vmem:[#allocation8 + $0xb8] sm:$0xff] %v1695_v42  ;;  %v1449_v36 = vadd.f32 %v1448_v27, %v9454_v61  ;;  %v1562_v13 = vadd.f32 %v1561_v15, %v9456_v0  ;;  %4584 = vmatprep.subr.bf16.mxu0 %v8342_v63  ;;  %4697 = vmatprep.subr.bf16.mxu1 %v8345_v32  ;;  %v1450_v43 = vpop.f32.mrf.mxu0  ;;  %v1563_v38 = vpop.f32.mrf.mxu1  ;;  %v92_v63 = vld [vmem:[#allocation7 + $0x108] sm:$0xff]  ;;  %v8352_v32 = vld [vmem:[#allocation2 + $0x5c0] ss:$16 sps:$4 sm:$0xff]   ;;  %v94_v42 = vld [vmem:[#allocation7 + $0x118] sm:$0xff] }
 0x1c9   :  { %1760 = vst [vmem:[#allocation8 + $0xc0] sm:$0xff] %v1696_v53  ;;  %1762 = vst [vmem:[#allocation8 + $0xd0] sm:$0xff] %v1698_v29  ;;  %v1451_v61 = vadd.f32 %v1450_v43, %v9458_v2  ;;  %v1564_v0 = vadd.f32 %v1563_v38, %v9460_v51  ;;  %v8355_v9 = vld [vmem:[#allocation2 + $0x5c8] ss:$16 sps:$4 sm:$0xff]   ;;  %v9826_v27 = vpop.permute.xlu0 %3448  ;;  %v97_v29 = vld [vmem:[#allocation7 + $0x130] sm:$0xff] }
 0x1ca   :  { %v1697_v33 = vadd.f32 %v1449_v36, %v84_v62  ;;  %v1699_v24 = vadd.f32 %v1562_v13, %v86_v54  ;;  %4585 = vmatpush1.bf16.msra.mxu0 %v8340_v59  ;;  %4698 = vmatpush1.bf16.msra.mxu1 %v8343_v31  ;;  %v1452_v4 = vpop.f32.mrf.mxu0  ;;  %v1565_v21 = vpop.f32.mrf.mxu1  ;;  %v8360_v62 = vld [vmem:[#allocation2 + $0x5a4] ss:$16 sps:$4 sm:$0xff]   ;;  %v8363_v31 = vld [vmem:[#allocation2 + $0x5ac] ss:$16 sps:$4 sm:$0xff]   ;;  %v8358_v43 = vld [vmem:[#allocation2 + $0x5a0] ss:$16 sps:$4 sm:$0xff]   ;;  %vm3484_vm15 = vcmp.eq.s32.totalorder %v9826_v27, %v8866_v25 }
 0x1cb   :  { %4586 = vmatprep.subr.bf16.mxu0 %v8348_v28  ;;  %v1700_v51 = vadd.f32 %v1451_v61, %v87_v10  ;;  %v1702_v6 = vadd.f32 %v1564_v0, %v89_v52  ;;  %v1453_v50 = vadd.f32 %v1452_v4, %v9462_v16  ;;  %v1566_v45 = vadd.f32 %v1565_v21, %v9464_v17  ;;  %v9824_v59 = vpop.permute.xlu1 %3451  ;;  %v95_v28 = vld [vmem:[#allocation7 + $0x120] sm:$0xff]  ;;  %v96_v52 = vld [vmem:[#allocation7 + $0x128] sm:$0xff]  ;;  %vm9849_vm9 = vmpackc.low %vm3481_vm13, %vm3479_vm5 }
 0x1cc   :  { %1761 = vst [vmem:[#allocation8 + $0xc8] sm:$0xff] %v1697_v33  ;;  %1763 = vst [vmem:[#allocation8 + $0xd8] sm:$0xff] %v1699_v24  ;;  %4699 = vmatprep.subr.bf16.mxu1 %v8351_v37  ;;  %v1456_v60 = vpop.f32.mrf.mxu0  ;;  %v1569_v7 = vpop.f32.mrf.mxu1  ;;  %7329 = vmatmul.mubr.msk.bf16.gmra.mxu0 %vm9797_vm4, %v11455_v20  ;;  %vm3486_vm7 = vcmp.eq.s32.totalorder %v9824_v59, %v8866_v25  ;;  %v98_v33 = vld [vmem:[#allocation7 + $0x138] sm:$0xff]  ;;  %v8366_v30 = vld [vmem:[#allocation2 + $0x584] ss:$16 sps:$4 sm:$0xff]  }
 0x1cd   :  { %7361 = vmatmul.mubr.msk.bf16.gmra.mxu1 %vm9797_vm4, %v11455_v20  ;;  %1764 = vst [vmem:[#allocation8 + $0xe0] sm:$0xff] %v1700_v51  ;;  %1766 = vst [vmem:[#allocation8 + $0xf0] sm:$0xff] %v1702_v6  ;;  %v1701_v17 = vadd.f32 %v1453_v50, %v88_v41  ;;  %v1703_v57 = vadd.f32 %v1566_v45, %v90_v56  ;;  %v1457_v26 = vadd.f32 %v1456_v60, %v9466_v3  ;;  %v8361_v61 = vld [vmem:[#allocation2 + $0x5a8] ss:$16 sps:$4 sm:$0xff]   ;;  %v11499_v56 = vld [vmem:[#allocation14_spill] sm:$0xff]  ;;  %v11500_v45 = vmov 0 }
 0x1ce   :  { %v1570_v5 = vadd.f32 %v1569_v7, %v9468_v1  ;;  %4587 = vmatpush2.bf16.msra.mxu0 %v8346_v40  ;;  %4700 = vmatpush2.bf16.msra.mxu1 %v8349_v14  ;;  %v1458_v49 = vpop.f32.mrf.mxu0  ;;  %v1571_v12 = vpop.f32.mrf.mxu1  ;;  %v11498_v41 = vld [vmem:[#allocation13_spill] sm:$0xff]  ;;  %v99_v14 = vld [vmem:[#allocation7 + $0x140] sm:$0xff]  ;;  %v101_v6 = vld [vmem:[#allocation7 + $0x150] sm:$0xff] }
 0x1cf   :  { %7331 = vmatprep.mubr.msk.bf16.mxu0 %vm9815_vm0, %v11455_v20  ;;  %1765 = vst [vmem:[#allocation8 + $0xe8] sm:$0xff] %v1701_v17  ;;  %1767 = vst [vmem:[#allocation8 + $0xf8] sm:$0xff] %v1703_v57  ;;  %v1704_v3 = vadd.f32 %v1457_v26, %v91_v46  ;;  %7363 = vmatprep.mubr.msk.bf16.mxu1 %vm9815_vm0, %v11455_v20  ;;  %v1459_v54 = vadd.f32 %v1458_v49, %v9482_v58  ;;  %v8369_v50 = vld [vmem:[#allocation2 + $0x58c] ss:$16 sps:$4 sm:$0xff]   ;;  %v8364_v57 = vld [vmem:[#allocation2 + $0x580] ss:$16 sps:$4 sm:$0xff]  }
 0x1d0   :  { %v1706_v1 = vadd.f32 %v1570_v5, %v93_v39  ;;  %v1572_v15 = vadd.f32 %v1571_v12, %v9484_v55  ;;  %4588 = vmatprep.subr.bf16.mxu0 %v8354_v18  ;;  %4701 = vmatprep.subr.bf16.mxu1 %v8357_v35  ;;  %v1460_v53 = vpop.f32.mrf.mxu0  ;;  %v1573_v36 = vpop.f32.mrf.mxu1  ;;  %v11495_v55 = vld [vmem:[#allocation12_spill] sm:$0xff]  ;;  %vm9867_vm13 = vmpackc.low %vm3486_vm7, %vm3484_vm15  ;;  %v11502_v39 = vld [vmem:[#allocation15_spill] sm:$0xff]  ;;  %vm3483_vm7 = vcmp.eq.s32.totalorder %v9826_v27, %v8862_v19 }
 0x1d1   :  { %1768 = vst [vmem:[#allocation8 + $0x100] sm:$0xff] %v1704_v3  ;;  %v1705_v13 = vadd.f32 %v1459_v54, %v92_v63  ;;  %v1461_v58 = vadd.f32 %v1460_v53, %v9486_v8  ;;  %v1574_v10 = vadd.f32 %v1573_v36, %v11495_v55  ;;  %v11496_v8 = vmov 0  ;;  %v11503_v18 = vld [vmem:[#allocation16_spill] sm:$0xff]  ;;  %v100_v17 = vld [vmem:[#allocation7 + $0x148] sm:$0xff]  ;;  %v102_v5 = vld [vmem:[#allocation7 + $0x158] sm:$0xff]  ;;  %v9878_v12 = vpop.permute.xlu0 %3454 }
 0x1d2   :  { %1770 = vst [vmem:[#allocation8 + $0x110] sm:$0xff] %v1706_v1  ;;  %v1707_v37 = vadd.f32 %v1572_v15, %v94_v42  ;;  %4589 = vmatpush2.bf16.msra.mxu0 %v8352_v32  ;;  %4702 = vmatpush2.bf16.msra.mxu1 %v8355_v9  ;;  %v1462_v38 = vpop.f32.mrf.mxu0  ;;  %v1575_v24 = vpop.f32.mrf.mxu1  ;;  %v11497_v8 = vsel %vm9849_vm9, 4294967295, %v11496_v8  ;;  %v11501_v45 = vsel %vm9867_vm13, 4294967295, %v11500_v45  ;;  %v8367_v32 = vld [vmem:[#allocation2 + $0x588] ss:$16 sps:$4 sm:$0xff]   ;;  %v11505_v54 = vld [vmem:[#allocation18_spill] sm:$0xff]  ;;  %vm3488_vm5 = vcmp.eq.s32.totalorder %v9878_v12, %v8866_v25 }
 0x1d3   :  { %4590 = vmatprep.subr.bf16.mxu0 %v8360_v62  ;;  %1769 = vst [vmem:[#allocation8 + $0x108] sm:$0xff] %v1705_v13  ;;  %v1708_v0 = vadd.f32 %v1461_v58, %v95_v28  ;;  %v1710_v40 = vadd.f32 %v1574_v10, %v97_v29  ;;  %v1463_v4 = vadd.f32 %v1462_v38, %v11498_v41  ;;  %v8372_v49 = vld [vmem:[#allocation2 + $0x564] ss:$16 sps:$4 sm:$0xff]   ;;  %v9876_v42 = vpop.permute.xlu1 %3457  ;;  %v11504_v3 = vld [vmem:[#allocation17_spill] sm:$0xff]  ;;  %v11506_v58 = vld [vmem:[#allocation19_spill] sm:$0xff] }
 0x1d4   :  { %1771 = vst [vmem:[#allocation8 + $0x118] sm:$0xff] %v1707_v37  ;;  %v1576_v21 = vadd.f32 %v1575_v24, %v11499_v56  ;;  %4703 = vmatprep.subr.bf16.mxu1 %v8363_v31  ;;  %v1466_v51 = vpop.f32.mrf.mxu0  ;;  %v1579_v34 = vpop.f32.mrf.mxu1  ;;  %7333 = vmatmul.mubr.msk.bf16.gmra.mxu0 %vm9849_vm9, %v11455_v20  ;;  %v8375_v31 = vld [vmem:[#allocation2 + $0x56c] ss:$16 sps:$4 sm:$0xff]   ;;  %v103_v28 = vld [vmem:[#allocation7 + $0x160] sm:$0xff]  ;;  %v105_v29 = vld [vmem:[#allocation7 + $0x170] sm:$0xff]  ;;  %vm3490_vm15 = vcmp.eq.s32.totalorder %v9876_v42, %v8866_v25 }
 0x1d5   :  { %7365 = vmatmul.mubr.msk.bf16.gmra.mxu1 %vm9849_vm9, %v11455_v20  ;;  %1772 = vst [vmem:[#allocation8 + $0x120] sm:$0xff] %v1708_v0  ;;  %1774 = vst [vmem:[#allocation8 + $0x130] sm:$0xff] %v1710_v40  ;;  %v1709_v46 = vadd.f32 %v1463_v4, %v96_v52  ;;  %v1467_v7 = vadd.f32 %v1466_v51, %v11502_v39  ;;  %v1580_v35 = vadd.f32 %v1579_v34, %v11503_v18  ;;  %v11507_v10 = vld [vmem:[#allocation20_spill] sm:$0xff]  ;;  %v104_v38 = vld [vmem:[#allocation7 + $0x168] sm:$0xff] }
 0x1d6   :  { %v1711_v60 = vadd.f32 %v1576_v21, %v98_v33  ;;  %4591 = vmatpush2.bf16.msra.mxu0 %v8358_v43  ;;  %4704 = vmatpush2.bf16.msra.mxu1 %v8361_v61  ;;  %v1468_v26 = vpop.f32.mrf.mxu0  ;;  %v1581_v63 = vpop.f32.mrf.mxu1  ;;  %v8370_v52 = vld [vmem:[#allocation2 + $0x560] ss:$16 sps:$4 sm:$0xff]   ;;  %v106_v24 = vld [vmem:[#allocation7 + $0x178] sm:$0xff]  ;;  %v11511_v56 = vld [vmem:[#allocation21_spill] sm:$0xff] }
 0x1d7   :  { %7335 = vmatprep.mubr.msk.bf16.mxu0 %vm9867_vm13, %v11455_v20  ;;  %1773 = vst [vmem:[#allocation8 + $0x128] sm:$0xff] %v1709_v46  ;;  %v1712_v9 = vadd.f32 %v1467_v7, %v99_v14  ;;  %v1714_v62 = vadd.f32 %v1580_v35, %v101_v6  ;;  %7367 = vmatprep.mubr.msk.bf16.mxu1 %vm9867_vm13, %v11455_v20  ;;  %v8373_v0 = vld [vmem:[#allocation2 + $0x568] ss:$16 sps:$4 sm:$0xff]   ;;  %v11512_v14 = vld [vmem:[#allocation22_spill] sm:$0xff]  ;;  %v107_v6 = vld [vmem:[#allocation7 + $0x180] sm:$0xff] }
 0x1d8   :  { %1775 = vst [vmem:[#allocation8 + $0x138] sm:$0xff] %v1711_v60  ;;  %v1469_v1 = vadd.f32 %v1468_v26, %v11504_v3  ;;  %v1582_v15 = vadd.f32 %v1581_v63, %v11505_v54  ;;  %4592 = vmatprep.subr.bf16.mxu0 %v8366_v30  ;;  %4705 = vmatprep.subr.bf16.mxu1 %v8369_v50  ;;  %v1470_v53 = vpop.f32.mrf.mxu0  ;;  %v1583_v36 = vpop.f32.mrf.mxu1  ;;  %v109_v30 = vld [vmem:[#allocation7 + $0x190] sm:$0xff]  ;;  %v8381_v50 = vld [vmem:[#allocation2 + $0x54c] ss:$16 sps:$4 sm:$0xff]   ;;  %v11516_v35 = vld [vmem:[#allocation24_spill] sm:$0xff] }
 0x1d9   :  { %1776 = vst [vmem:[#allocation8 + $0x140] sm:$0xff] %v1712_v9  ;;  %1778 = vst [vmem:[#allocation8 + $0x150] sm:$0xff] %v1714_v62  ;;  %v1471_v55 = vadd.f32 %v1470_v53, %v11506_v58  ;;  %v1584_v43 = vadd.f32 %v1583_v36, %v11507_v10  ;;  %vm11508_vm13 = vcmp.eq.s32.totalorder %v9824_v59, %v8862_v19  ;;  %v8378_v59 = vld [vmem:[#allocation2 + $0x544] ss:$16 sps:$4 sm:$0xff]   ;;  %v11515_v7 = vld [vmem:[#allocation23_spill] sm:$0xff] }
 0x1da   :  { %v1713_v13 = vadd.f32 %v1469_v1, %v100_v17  ;;  %v1715_v37 = vadd.f32 %v1582_v15, %v102_v5  ;;  %4593 = vmatpush2.bf16.msra.mxu0 %v8364_v57  ;;  %4706 = vmatpush2.bf16.msra.mxu1 %v8367_v32  ;;  %v1472_v33 = vpop.f32.mrf.mxu0  ;;  %v1585_v61 = vpop.f32.mrf.mxu1  ;;  %vm9901_vm9 = vmpackc.low %vm11508_vm13, %vm3483_vm7  ;;  %v108_v57 = vld [vmem:[#allocation7 + $0x188] sm:$0xff]  ;;  %v8376_v26 = vld [vmem:[#allocation2 + $0x540] ss:$16 sps:$4 sm:$0xff]   ;;  %vm3487_vm7 = vcmp.eq.s32.totalorder %v9878_v12, %v8862_v19 }
 0x1db   :  { %4594 = vmatprep.subr.bf16.mxu0 %v8372_v49  ;;  %v1716_v41 = vadd.f32 %v1471_v55, %v103_v28  ;;  %v1718_v4 = vadd.f32 %v1584_v43, %v105_v29  ;;  %v1473_v21 = vadd.f32 %v1472_v33, %v11511_v56  ;;  %v1586_v51 = vadd.f32 %v1585_v61, %v11512_v14  ;;  %vm9919_vm13 = vmpackc.low %vm3490_vm15, %vm3488_vm5  ;;  %v110_v63 = vld [vmem:[#allocation7 + $0x198] sm:$0xff]  ;;  %v8384_v9 = vld [vmem:[#allocation2 + $0x524] ss:$16 sps:$4 sm:$0xff]  }
 0x1dc   :  { %1777 = vst [vmem:[#allocation8 + $0x148] sm:$0xff] %v1713_v13  ;;  %1779 = vst [vmem:[#allocation8 + $0x158] sm:$0xff] %v1715_v37  ;;  %4707 = vmatprep.subr.bf16.mxu1 %v8375_v31  ;;  %v1476_v34 = vpop.f32.mrf.mxu0  ;;  %v1589_v27 = vpop.f32.mrf.mxu1  ;;  %7337 = vmatmul.mubr.msk.bf16.gmra.mxu0 %vm9901_vm9, %v11455_v20  ;;  %v8379_v49 = vld [vmem:[#allocation2 + $0x548] ss:$16 sps:$4 sm:$0xff]   ;;  %v11518_v15 = vld [vmem:[#allocation26_spill] sm:$0xff]  ;;  %vm3489_vm5 = vcmp.eq.s32.totalorder %v9876_v42, %v8862_v19 }
 0x1dd   :  { %7369 = vmatmul.mubr.msk.bf16.gmra.mxu1 %vm9901_vm9, %v11455_v20  ;;  %1780 = vst [vmem:[#allocation8 + $0x160] sm:$0xff] %v1716_v41  ;;  %1782 = vst [vmem:[#allocation8 + $0x170] sm:$0xff] %v1718_v4  ;;  %v1717_v60 = vadd.f32 %v1473_v21, %v104_v38  ;;  %v1719_v39 = vadd.f32 %v1586_v51, %v106_v24  ;;  %v1477_v18 = vadd.f32 %v1476_v34, %v11515_v7  ;;  %v11517_v1 = vld [vmem:[#allocation25_spill] sm:$0xff]  ;;  %v111_v53 = vld [vmem:[#allocation7 + $0x1a0] sm:$0xff] }
 0x1de   :  { %v1590_v17 = vadd.f32 %v1589_v27, %v11516_v35  ;;  %4595 = vmatpush2.bf16.msra.mxu0 %v8370_v52  ;;  %4708 = vmatpush2.bf16.msra.mxu1 %v8373_v0  ;;  %v1478_v5 = vpop.f32.mrf.mxu0  ;;  %v1591_v32 = vpop.f32.mrf.mxu1  ;;  %v8387_v28 = vld [vmem:[#allocation2 + $0x52c] ss:$16 sps:$4 sm:$0xff]   ;;  %v113_v36 = vld [vmem:[#allocation7 + $0x1b0] sm:$0xff]  ;;  %v11520_v43 = vld [vmem:[#allocation28_spill] sm:$0xff] }
 0x1df   :  { %7339 = vmatprep.mubr.msk.bf16.mxu0 %vm9919_vm13, %v11455_v20  ;;  %1781 = vst [vmem:[#allocation8 + $0x168] sm:$0xff] %v1717_v60  ;;  %1783 = vst [vmem:[#allocation8 + $0x178] sm:$0xff] %v1719_v39  ;;  %v1720_v62 = vadd.f32 %v1477_v18, %v107_v6  ;;  %7371 = vmatprep.mubr.msk.bf16.mxu1 %vm9919_vm13, %v11455_v20  ;;  %v1479_v54 = vadd.f32 %v1478_v5, %v11517_v1  ;;  %v11519_v55 = vld [vmem:[#allocation27_spill] sm:$0xff]  ;;  %v8382_v38 = vld [vmem:[#allocation2 + $0x520] ss:$16 sps:$4 sm:$0xff]  }
 0x1e0   :  { %v1722_v3 = vadd.f32 %v1590_v17, %v109_v30  ;;  %v1592_v31 = vadd.f32 %v1591_v32, %v11518_v15  ;;  %4596 = vmatprep.subr.bf16.mxu0 %v8378_v59  ;;  %4709 = vmatprep.subr.bf16.mxu1 %v8381_v50  ;;  %v1480_v29 = vpop.f32.mrf.mxu0  ;;  %v1593_v13 = vpop.f32.mrf.mxu1  ;;  %v112_v33 = vld [vmem:[#allocation7 + $0x1a8] sm:$0xff]  ;;  %v114_v61 = vld [vmem:[#allocation7 + $0x1b8] sm:$0xff]  ;;  %vm9945_vm15 = vmpackc.low %vm3489_vm5, %vm3487_vm7 }
 0x1e1   :  { %1784 = vst [vmem:[#allocation8 + $0x180] sm:$0xff] %v1720_v62  ;;  %v1721_v37 = vadd.f32 %v1479_v54, %v108_v57  ;;  %v1481_v10 = vadd.f32 %v1480_v29, %v11519_v55  ;;  %v1594_v52 = vadd.f32 %v1593_v13, %v11520_v43  ;;  %v8385_v41 = vld [vmem:[#allocation2 + $0x528] ss:$16 sps:$4 sm:$0xff]   ;;  %v11524_v6 = vld [vmem:[#allocation30_spill] sm:$0xff]  ;;  %v115_v30 = vld [vmem:[#allocation7 + $0x1c0] sm:$0xff] }
 0x1e2   :  { %1786 = vst [vmem:[#allocation8 + $0x190] sm:$0xff] %v1722_v3  ;;  %v1723_v58 = vadd.f32 %v1592_v31, %v110_v63  ;;  %4597 = vmatpush2.bf16.msra.mxu0 %v8376_v26  ;;  %4710 = vmatpush2.bf16.msra.mxu1 %v8379_v49  ;;  %v1482_v24 = vpop.f32.mrf.mxu0  ;;  %v1595_v0 = vpop.f32.mrf.mxu1  ;;  %v11523_v14 = vld [vmem:[#allocation29_spill] sm:$0xff]  ;;  %v117_v59 = vld [vmem:[#allocation7 + $0x1d0] sm:$0xff]  ;;  %v11525_v7 = vld [vmem:[#allocation31_spill] sm:$0xff] }
 0x1e3   :  { %4598 = vmatprep.subr.bf16.mxu0 %v8384_v9  ;;  %1785 = vst [vmem:[#allocation8 + $0x188] sm:$0xff] %v1721_v37  ;;  %v1724_v56 = vadd.f32 %v1481_v10, %v111_v53  ;;  %v1726_v21 = vadd.f32 %v1594_v52, %v113_v36  ;;  %v1483_v51 = vadd.f32 %v1482_v24, %v11523_v14  ;;  %v8390_v42 = vld [vmem:[#allocation2 + $0x504] ss:$16 sps:$4 sm:$0xff]   ;;  %v8393_v50 = vld [vmem:[#allocation2 + $0x50c] ss:$16 sps:$4 sm:$0xff]  }
 0x1e4   :  { %1787 = vst [vmem:[#allocation8 + $0x198] sm:$0xff] %v1723_v58  ;;  %v1596_v34 = vadd.f32 %v1595_v0, %v11524_v6  ;;  %4711 = vmatprep.subr.bf16.mxu1 %v8387_v28  ;;  %v1486_v27 = vpop.f32.mrf.mxu0  ;;  %v1599_v12 = vpop.f32.mrf.mxu1  ;;  %7341 = vmatmul.mubr.msk.bf16.gmra.mxu0 %vm9945_vm15, %v11455_v20  ;;  %v11526_v35 = vld [vmem:[#allocation32_spill] sm:$0xff]  ;;  %v116_v57 = vld [vmem:[#allocation7 + $0x1c8] sm:$0xff]  ;;  %v118_v32 = vld [vmem:[#allocation7 + $0x1d8] sm:$0xff] }
 0x1e5   :  { %7373 = vmatmul.mubr.msk.bf16.gmra.mxu1 %vm9945_vm15, %v11455_v20  ;;  %1788 = vst [vmem:[#allocation8 + $0x1a0] sm:$0xff] %v1724_v56  ;;  %1790 = vst [vmem:[#allocation8 + $0x1b0] sm:$0xff] %v1726_v21  ;;  %v1725_v60 = vadd.f32 %v1483_v51, %v112_v33  ;;  %v1487_v18 = vadd.f32 %v1486_v27, %v11525_v7  ;;  %v1600_v17 = vadd.f32 %v1599_v12, %v11526_v35  ;;  %v8388_v26 = vld [vmem:[#allocation2 + $0x500] ss:$16 sps:$4 sm:$0xff]   ;;  %v8391_v9 = vld [vmem:[#allocation2 + $0x508] ss:$16 sps:$4 sm:$0xff]  }
 0x1e6   :  { %v1727_v39 = vadd.f32 %v1596_v34, %v114_v61  ;;  %4599 = vmatpush2.bf16.msra.mxu0 %v8382_v38  ;;  %4712 = vmatpush2.bf16.msra.mxu1 %v8385_v41  ;;  %v1488_v63 = vpop.f32.mrf.mxu0  ;;  %v1601_v49 = vpop.f32.mrf.mxu1  ;;  %v8396_v62 = vld [vmem:[#allocation5 + $0x6e4] ss:$16 sps:$4 sm:$0xff]   ;;  %v11529_v31 = vld [vmem:[#allocation35_spill] sm:$0xff]  ;;  %v11531_v52 = vld [vmem:[#allocation37_spill] sm:$0xff] }
 0x1e7   :  { %7439 = vmatprep.mubr.msk.bf16.mxu0 %vm9562_vm12, %v11455_v20  ;;  %1789 = vst [vmem:[#allocation8 + $0x1a8] sm:$0xff] %v1725_v60  ;;  %v1728_v3 = vadd.f32 %v1487_v18, %v115_v30  ;;  %v1730_v1 = vadd.f32 %v1600_v17, %v117_v59  ;;  %7471 = vmatprep.mubr.msk.bf16.mxu1 %vm9562_vm12, %v11455_v20  ;;  %v11528_v54 = vld [vmem:[#allocation34_spill] sm:$0xff]  ;;  %v8399_v53 = vld [vmem:[#allocation5 + $0x6ec] ss:$16 sps:$4 sm:$0xff]   ;;  %v119_v29 = vld [vmem:[#allocation7 + $0x1e0] sm:$0xff]  ;;  %vm11538_vm12 = vnez %v11497_v8 }
 0x1e8   :  { %1791 = vst [vmem:[#allocation8 + $0x1b8] sm:$0xff] %v1727_v39  ;;  %v1489_v15 = vadd.f32 %v1488_v63, %v11528_v54  ;;  %v1602_v28 = vadd.f32 %v1601_v49, %v11529_v31  ;;  %4600 = vmatprep.subr.bf16.mxu0 %v8390_v42  ;;  %4713 = vmatprep.subr.bf16.mxu1 %v8393_v50  ;;  %v1490_v36 = vpop.f32.mrf.mxu0  ;;  %v121_v13 = vld [vmem:[#allocation7 + $0x1f0] sm:$0xff]  ;;  %v1603_v37 = vpop.f32.mrf.mxu1  ;;  %v11530_v10 = vld [vmem:[#allocation36_spill] sm:$0xff]  ;;  %v120_v24 = vld [vmem:[#allocation7 + $0x1e8] sm:$0xff] }
 0x1e9   :  { %1792 = vst [vmem:[#allocation8 + $0x1c0] sm:$0xff] %v1728_v3  ;;  %1794 = vst [vmem:[#allocation8 + $0x1d0] sm:$0xff] %v1730_v1  ;;  %v1491_v43 = vadd.f32 %v1490_v36, %v11530_v10  ;;  %v1604_v38 = vadd.f32 %v1603_v37, %v11531_v52  ;;  %v8394_v33 = vld [vmem:[#allocation5 + $0x6e0] ss:$16 sps:$4 sm:$0xff]   ;;  %v122_v0 = vld [vmem:[#allocation7 + $0x1f8] sm:$0xff] }
 0x1ea   :  { %v1729_v58 = vadd.f32 %v1489_v15, %v116_v57  ;;  %v1731_v55 = vadd.f32 %v1602_v28, %v118_v32  ;;  %4601 = vmatpush2.bf16.msra.mxu0 %v8388_v26  ;;  %4714 = vmatpush2.bf16.msra.mxu1 %v8391_v9  ;;  %v1492_v61 = vpop.f32.mrf.mxu0  ;;  %v1605_v41 = vpop.f32.mrf.mxu1  ;;  %v8397_v56 = vld [vmem:[#allocation5 + $0x6e8] ss:$16 sps:$4 sm:$0xff]   ;;  %v11532_v51 = vld [vmem:[#allocation38_spill] sm:$0xff]  ;;  %v8405_v50 = vld [vmem:[#allocation5 + $0x6cc] ss:$16 sps:$4 sm:$0xff]  }
 0x1eb   :  { %5618 = vmatprep.subr.bf16.mxu0 %v8396_v62  ;;  %v1732_v21 = vadd.f32 %v1491_v43, %v119_v29  ;;  %v1734_v14 = vadd.f32 %v1604_v38, %v121_v13  ;;  %v1493_v6 = vadd.f32 %v1492_v61, %v11532_v51  ;;  %v11533_v34 = vld [vmem:[#allocation39_spill] sm:$0xff]  ;;  %5731 = vmatprep.subr.bf16.mxu1 %v8399_v53  ;;  %v8402_v27 = vld [vmem:[#allocation5 + $0x6c4] ss:$16 sps:$4 sm:$0xff]   ;;  %v8400_v7 = vld [vmem:[#allocation5 + $0x6c0] ss:$16 sps:$4 sm:$0xff]  }
 0x1ec   :  { %1793 = vst [vmem:[#allocation8 + $0x1c8] sm:$0xff] %v1729_v58  ;;  %1795 = vst [vmem:[#allocation8 + $0x1d8] sm:$0xff] %v1731_v55  ;;  %v1606_v30 = vadd.f32 %v1605_v41, %v11533_v34  ;;  %v9971_v59 = vpop.f32.mrf.mxu0  ;;  %v9973_v12 = vpop.f32.mrf.mxu1  ;;  %v8403_v57 = vld [vmem:[#allocation5 + $0x6c8] ss:$16 sps:$4 sm:$0xff]   ;;  %v8408_v26 = vld [vmem:[#allocation5 + $0x6a4] ss:$16 sps:$4 sm:$0xff]  }
 0x1ed   :  { %7441 = vmatmul.mubr.msk.bf16.vlgmr.msra.gmra.mxu0 %vm9594_vm1, %v11455_v20  ;;  %1796 = vst [vmem:[#allocation8 + $0x1e0] sm:$0xff] %v1732_v21  ;;  %1798 = vst [vmem:[#allocation8 + $0x1f0] sm:$0xff] %v1734_v14  ;;  %v1733_v60 = vadd.f32 %v1493_v6, %v120_v24  ;;  %7473 = vmatmul.mubr.msk.bf16.vlgmr.msra.gmra.mxu1 %vm9594_vm1, %v11455_v20  ;;  %v8411_v5 = vld [vmem:[#allocation5 + $0x6ac] ss:$16 sps:$4 sm:$0xff]   ;;  %v8406_v49 = vld [vmem:[#allocation5 + $0x6a0] ss:$16 sps:$4 sm:$0xff]   ;;  %vm11539_vm1 = vnez %v11501_v45 }
 0x1ee   :  { %v1735_v39 = vadd.f32 %v1606_v30, %v122_v0  ;;  %5619 = vmatpush1.bf16.msra.mxu0 %v8394_v33  ;;  %5732 = vmatpush1.bf16.msra.mxu1 %v8397_v56  ;;  %v9984_v35 = vpop.f32.mrf.mxu0  ;;  %v9986_v17 = vpop.f32.mrf.mxu1  ;;  %v8409_v3 = vld [vmem:[#allocation5 + $0x6a8] ss:$16 sps:$4 sm:$0xff]   ;;  %v8414_v1 = vld [vmem:[#allocation5 + $0x684] ss:$16 sps:$4 sm:$0xff]   ;;  %v8417_v31 = vld [vmem:[#allocation5 + $0x68c] ss:$16 sps:$4 sm:$0xff]  }
 0x1ef   :  { %7443 = vmatprep.mubr.msk.bf16.mxu0 %vm9607_vm14, %v11455_v20  ;;  %1797 = vst [vmem:[#allocation8 + $0x1e8] sm:$0xff] %v1733_v60  ;;  %7475 = vmatprep.mubr.msk.bf16.mxu1 %vm9607_vm14, %v11455_v20  ;;  %v8412_v28 = vld [vmem:[#allocation5 + $0x680] ss:$16 sps:$4 sm:$0xff]   ;;  %v8415_v36 = vld [vmem:[#allocation5 + $0x688] ss:$16 sps:$4 sm:$0xff]  }
 0x1f0   :  { %1799 = vst [vmem:[#allocation8 + $0x1f8] sm:$0xff] %v1735_v39  ;;  %5620 = vmatprep.subr.bf16.mxu0 %v8402_v27  ;;  %5733 = vmatprep.subr.bf16.mxu1 %v8405_v50  ;;  %v9991_v63 = vpop.f32.mrf.mxu0  ;;  %v9993_v32 = vpop.f32.mrf.mxu1  ;;  %v8420_v13 = vld [vmem:[#allocation5 + $0x664] ss:$16 sps:$4 sm:$0xff]   ;;  %v8418_v55 = vld [vmem:[#allocation5 + $0x660] ss:$16 sps:$4 sm:$0xff]  }
 0x1f1   :  { %v8421_v52 = vld [vmem:[#allocation5 + $0x668] ss:$16 sps:$4 sm:$0xff]   ;;  %v8426_v38 = vld [vmem:[#allocation5 + $0x644] ss:$16 sps:$4 sm:$0xff]   ;;  %v8429_v24 = vld [vmem:[#allocation5 + $0x64c] ss:$16 sps:$4 sm:$0xff]  }
 0x1f2   :  { %5621 = vmatpush1.bf16.msra.mxu0 %v8400_v7  ;;  %5734 = vmatpush1.bf16.msra.mxu1 %v8403_v57  ;;  %v9995_v9 = vpop.f32.mrf.mxu0  ;;  %v9997_v62 = vpop.f32.mrf.mxu1  ;;  %v8424_v61 = vld [vmem:[#allocation5 + $0x640] ss:$16 sps:$4 sm:$0xff]   ;;  %v8427_v56 = vld [vmem:[#allocation5 + $0x648] ss:$16 sps:$4 sm:$0xff]   ;;  %v8432_v21 = vld [vmem:[#allocation5 + $0x624] ss:$16 sps:$4 sm:$0xff]  }
 0x1f3   :  { %5622 = vmatprep.subr.bf16.mxu0 %v8408_v26  ;;  %5735 = vmatprep.subr.bf16.mxu1 %v8411_v5  ;;  %v8435_v11 = vld [vmem:[#allocation5 + $0x62c] ss:$16 sps:$4 sm:$0xff]   ;;  %v8430_v6 = vld [vmem:[#allocation5 + $0x620] ss:$16 sps:$4 sm:$0xff]   ;;  %v8433_v27 = vld [vmem:[#allocation5 + $0x628] ss:$16 sps:$4 sm:$0xff]  }
 0x1f4   :  { %v9999_v54 = vpop.f32.mrf.mxu0  ;;  %v10001_v15 = vpop.f32.mrf.mxu1  ;;  %v8438_v42 = vld [vmem:[#allocation5 + $0x604] ss:$16 sps:$4 sm:$0xff]   ;;  %v8441_v60 = vld [vmem:[#allocation5 + $0x60c] ss:$16 sps:$4 sm:$0xff]   ;;  %v8436_v39 = vld [vmem:[#allocation5 + $0x600] ss:$16 sps:$4 sm:$0xff]  }
 0x1f5   :  { %7445 = vmatmul.mubr.msk.bf16.gmra.mxu0 %vm9641_vm3, %v11455_v20  ;;  %7477 = vmatmul.mubr.msk.bf16.gmra.mxu1 %vm9641_vm3, %v11455_v20  ;;  %v8439_v57 = vld [vmem:[#allocation5 + $0x608] ss:$16 sps:$4 sm:$0xff]   ;;  %v8444_v26 = vld [vmem:[#allocation5 + $0x7e4] ss:$16 sps:$4 sm:$0xff]   ;;  %v8447_v44 = vld [vmem:[#allocation5 + $0x7ec] ss:$16 sps:$4 sm:$0xff]  }
 0x1f6   :  { %5623 = vmatpush1.bf16.msra.mxu0 %v8406_v49  ;;  %5736 = vmatpush1.bf16.msra.mxu1 %v8409_v3  ;;  %v10012_v53 = vpop.f32.mrf.mxu0  ;;  %v10014_v29 = vpop.f32.mrf.mxu1  ;;  %v8442_v3 = vld [vmem:[#allocation5 + $0x7e0] ss:$16 sps:$4 sm:$0xff]   ;;  %v8459_v2 = vld [vmem:[#allocation5 + $0x7ac] ss:$16 sps:$4 sm:$0xff]   ;;  %v8481_v46 = vld [vmem:[#allocation5 + $0x728] ss:$16 sps:$4 sm:$0xff]  }
 0x1f7   :  { %7447 = vmatprep.mubr.msk.bf16.mxu0 %vm9659_vm10, %v11455_v20  ;;  %7479 = vmatprep.mubr.msk.bf16.mxu1 %vm9659_vm10, %v11455_v20  ;;  %v8471_v8 = vld [vmem:[#allocation5 + $0x76c] ss:$16 sps:$4 sm:$0xff]  }
 0x1f8   :  { %5624 = vmatprep.subr.bf16.mxu0 %v8414_v1  ;;  %5737 = vmatprep.subr.bf16.mxu1 %v8417_v31  ;;  %v10019_v37 = vpop.f32.mrf.mxu0  ;;  %v10021_v58 = vpop.f32.mrf.mxu1  ;;  %v8483_v40 = vld [vmem:[#allocation5 + $0x72c] ss:$16 sps:$4 sm:$0xff]  }
 0x1f9   :  { %v8495_v4 = vld [vmem:[#allocation2 + $0x6ec] ss:$16 sps:$4 sm:$0xff]  }
 0x1fa   :  { %5625 = vmatpush1.bf16.msra.mxu0 %v8412_v28  ;;  %5738 = vmatpush1.bf16.msra.mxu1 %v8415_v36  ;;  %v10023_v10 = vpop.f32.mrf.mxu0  ;;  %v10025_v43 = vpop.f32.mrf.mxu1  ;;  %v8445_v28 = vld [vmem:[#allocation5 + $0x7e8] ss:$16 sps:$4 sm:$0xff]   ;;  %v8450_v36 = vld [vmem:[#allocation5 + $0x7c4] ss:$16 sps:$4 sm:$0xff]  }
 0x1fb   :  { %5626 = vmatprep.subr.bf16.mxu0 %v8420_v13  ;;  %5739 = vmatprep.subr.bf16.mxu1 %v8423_v47  ;;  %v8453_v47 = vld [vmem:[#allocation5 + $0x7cc] ss:$16 sps:$4 sm:$0xff]  }
 0x1fc   :  { %v10027_v23 = vpop.f32.mrf.mxu0  ;;  %v10029_v33 = vpop.f32.mrf.mxu1 }
 0x1fd   :  { %7449 = vmatmul.mubr.msk.bf16.gmra.mxu0 %vm9693_vm11, %v11455_v20  ;;  %7481 = vmatmul.mubr.msk.bf16.gmra.mxu1 %vm9693_vm11, %v11455_v20 }
 0x1fe   :  { %5627 = vmatpush1.bf16.msra.mxu0 %v8418_v55  ;;  %5740 = vmatpush1.bf16.msra.mxu1 %v8421_v52  ;;  %v10040_v0 = vpop.f32.mrf.mxu0  ;;  %v10042_v41 = vpop.f32.mrf.mxu1  ;;  %v8448_v55 = vld [vmem:[#allocation5 + $0x7c0] ss:$16 sps:$4 sm:$0xff]  }
 0x1ff   :  { %7451 = vmatprep.mubr.msk.bf16.mxu0 %vm9711_vm8, %v11455_v20  ;;  %7483 = vmatprep.mubr.msk.bf16.mxu1 %vm9711_vm8, %v11455_v20 }
 0x200   :  { %5628 = vmatprep.subr.bf16.mxu0 %v8426_v38  ;;  %5741 = vmatprep.subr.bf16.mxu1 %v8429_v24  ;;  %v10047_v14 = vpop.f32.mrf.mxu0  ;;  %v10049_v51 = vpop.f32.mrf.mxu1  ;;  %v8451_v24 = vld [vmem:[#allocation5 + $0x7c8] ss:$16 sps:$4 sm:$0xff]  }
 0x202   :  { %5629 = vmatpush1.bf16.msra.mxu0 %v8424_v61  ;;  %5742 = vmatpush1.bf16.msra.mxu1 %v8427_v56  ;;  %v10051_v34 = vpop.f32.mrf.mxu0  ;;  %v10053_v30 = vpop.f32.mrf.mxu1  ;;  %v8456_v61 = vld [vmem:[#allocation5 + $0x7a4] ss:$16 sps:$4 sm:$0xff]  }
 0x203   :  { %5630 = vmatprep.subr.bf16.mxu0 %v8432_v21  ;;  %5743 = vmatprep.subr.bf16.mxu1 %v8435_v11  ;;  %v8454_v11 = vld [vmem:[#allocation5 + $0x7a0] ss:$16 sps:$4 sm:$0xff]  }
 0x204   :  { %v10055_v22 = vpop.f32.mrf.mxu0  ;;  %v10057_v50 = vpop.f32.mrf.mxu1 }
 0x205   :  { %7453 = vmatmul.mubr.msk.bf16.gmra.mxu0 %vm9745_vm2, %v11455_v20  ;;  %7485 = vmatmul.mubr.msk.bf16.gmra.mxu1 %vm9745_vm2, %v11455_v20 }
 0x206   :  { %5631 = vmatpush1.bf16.msra.mxu0 %v8430_v6  ;;  %5744 = vmatpush1.bf16.msra.mxu1 %v8433_v27  ;;  %v10068_v7 = vpop.f32.mrf.mxu0  ;;  %v10070_v18 = vpop.f32.mrf.mxu1 }
 0x207   :  { %7455 = vmatprep.mubr.msk.bf16.mxu0 %vm9763_vm6, %v11455_v20  ;;  %7487 = vmatprep.mubr.msk.bf16.mxu1 %vm9763_vm6, %v11455_v20 }
 0x208   :  { %5632 = vmatprep.subr.bf16.mxu0 %v8438_v42  ;;  %5745 = vmatprep.subr.bf16.mxu1 %v8441_v60  ;;  %v10075_v5 = vpop.f32.mrf.mxu0  ;;  %v10077_v49 = vpop.f32.mrf.mxu1  ;;  %v8457_v42 = vld [vmem:[#allocation5 + $0x7a8] ss:$16 sps:$4 sm:$0xff]   ;;  %v8462_v60 = vld [vmem:[#allocation5 + $0x784] ss:$16 sps:$4 sm:$0xff]  }
 0x20a   :  { %5633 = vmatpush1.bf16.msra.mxu0 %v8436_v39  ;;  %5746 = vmatpush1.bf16.msra.mxu1 %v8439_v57  ;;  %v10079_v1 = vpop.f32.mrf.mxu0  ;;  %v10081_v31 = vpop.f32.mrf.mxu1  ;;  %v8465_v57 = vld [vmem:[#allocation5 + $0x78c] ss:$16 sps:$4 sm:$0xff]  }
 0x20b   :  { %5634 = vmatprep.subr.bf16.mxu0 %v8444_v26  ;;  %5747 = vmatprep.subr.bf16.mxu1 %v8447_v44  ;;  %v8460_v26 = vld [vmem:[#allocation5 + $0x780] ss:$16 sps:$4 sm:$0xff]  }
 0x20c   :  { %v10083_v48 = vpop.f32.mrf.mxu0  ;;  %v10085_v13 = vpop.f32.mrf.mxu1 }
 0x20d   :  { %7457 = vmatmul.mubr.msk.bf16.gmra.mxu0 %vm9797_vm4, %v11455_v20  ;;  %7489 = vmatmul.mubr.msk.bf16.gmra.mxu1 %vm9797_vm4, %v11455_v20 }
 0x20e   :  { %5635 = vmatpush2.bf16.msra.mxu0 %v8442_v3  ;;  %5748 = vmatpush2.bf16.msra.mxu1 %v8445_v28  ;;  %v10096_v52 = vpop.f32.mrf.mxu0  ;;  %v10098_v38 = vpop.f32.mrf.mxu1  ;;  %v8463_v28 = vld [vmem:[#allocation5 + $0x788] ss:$16 sps:$4 sm:$0xff]  }
 0x20f   :  { %7459 = vmatprep.mubr.msk.bf16.mxu0 %vm9815_vm0, %v11455_v20  ;;  %7491 = vmatprep.mubr.msk.bf16.mxu1 %vm9815_vm0, %v11455_v20 }
 0x210   :  { %5636 = vmatprep.subr.bf16.mxu0 %v8450_v36  ;;  %5749 = vmatprep.subr.bf16.mxu1 %v8453_v47  ;;  %v10103_v56 = vpop.f32.mrf.mxu0  ;;  %v10105_v21 = vpop.f32.mrf.mxu1  ;;  %v8468_v36 = vld [vmem:[#allocation5 + $0x764] ss:$16 sps:$4 sm:$0xff]  }
 0x212   :  { %5637 = vmatpush2.bf16.msra.mxu0 %v8448_v55  ;;  %5750 = vmatpush2.bf16.msra.mxu1 %v8451_v24  ;;  %v10107_v6 = vpop.f32.mrf.mxu0  ;;  %v10109_v27 = vpop.f32.mrf.mxu1  ;;  %v8466_v24 = vld [vmem:[#allocation5 + $0x760] ss:$16 sps:$4 sm:$0xff]  }
 0x213   :  { %5638 = vmatprep.subr.bf16.mxu0 %v8456_v61  ;;  %5751 = vmatprep.subr.bf16.mxu1 %v8459_v2 }
 0x214   :  { %v10111_v16 = vpop.f32.mrf.mxu0  ;;  %v10113_v39 = vpop.f32.mrf.mxu1 }
 0x215   :  { %11536 = vst [vmem:[#allocation12_spill] sm:$0xff] %v10111_v16  ;;  %11537 = vst [vmem:[#allocation13_spill] sm:$0xff] %v10113_v39  ;;  %7461 = vmatmul.mubr.msk.bf16.gmra.mxu0 %vm11538_vm12, %v11455_v20  ;;  %7493 = vmatmul.mubr.msk.bf16.gmra.mxu1 %vm11538_vm12, %v11455_v20  ;;  %v3203_v39 = vld [vmem:[#allocation8 + $0x8] sm:$0xff]  ;;  %v3205_v16 = vld [vmem:[#allocation8 + $0x18] sm:$0xff] }
 0x216   :  { %5639 = vmatpush2.bf16.msra.mxu0 %v8454_v11  ;;  %5752 = vmatpush2.bf16.msra.mxu1 %v8457_v42  ;;  %v10124_v44 = vpop.f32.mrf.mxu0  ;;  %v10126_v3 = vpop.f32.mrf.mxu1  ;;  %v8469_v11 = vld [vmem:[#allocation5 + $0x768] ss:$16 sps:$4 sm:$0xff]   ;;  %v8474_v42 = vld [vmem:[#allocation5 + $0x744] ss:$16 sps:$4 sm:$0xff]  }
 0x217   :  { %7463 = vmatprep.mubr.msk.bf16.mxu0 %vm11539_vm1, %v11455_v20  ;;  %11540 = vst [vmem:[#allocation14_spill] sm:$0xff] %v10124_v44  ;;  %11541 = vst [vmem:[#allocation15_spill] sm:$0xff] %v10126_v3  ;;  %7495 = vmatprep.mubr.msk.bf16.mxu1 %vm11539_vm1, %v11455_v20  ;;  %v8504_v44 = vld [vmem:[#allocation2 + $0x6a4] ss:$16 sps:$4 sm:$0xff]  }
 0x218   :  { %5640 = vmatprep.subr.bf16.mxu0 %v8462_v60  ;;  %5753 = vmatprep.subr.bf16.mxu1 %v8465_v57  ;;  %v10131_v47 = vpop.f32.mrf.mxu0  ;;  %v10133_v55 = vpop.f32.mrf.mxu1  ;;  %v8477_v57 = vld [vmem:[#allocation5 + $0x74c] ss:$16 sps:$4 sm:$0xff]  }
 0x219   :  { %11542 = vst [vmem:[#allocation16_spill] sm:$0xff] %v10131_v47  ;;  %11543 = vst [vmem:[#allocation17_spill] sm:$0xff] %v10133_v55  ;;  %v3204_v55 = vld [vmem:[#allocation8 + $0x10] sm:$0xff] }
 0x21a   :  { %5641 = vmatpush2.bf16.msra.mxu0 %v8460_v26  ;;  %5754 = vmatpush2.bf16.msra.mxu1 %v8463_v28  ;;  %v10135_v61 = vpop.f32.mrf.mxu0  ;;  %v10137_v2 = vpop.f32.mrf.mxu1  ;;  %v8472_v26 = vld [vmem:[#allocation5 + $0x740] ss:$16 sps:$4 sm:$0xff]  }
 0x21b   :  { %11544 = vst [vmem:[#allocation18_spill] sm:$0xff] %v10135_v61  ;;  %11545 = vst [vmem:[#allocation19_spill] sm:$0xff] %v10137_v2  ;;  %5642 = vmatprep.subr.bf16.mxu0 %v8468_v36  ;;  %5755 = vmatprep.subr.bf16.mxu1 %v8471_v8  ;;  %v8475_v8 = vld [vmem:[#allocation5 + $0x748] ss:$16 sps:$4 sm:$0xff]   ;;  %v5007_v2 = vpop.permute.xlu0 %5006  ;;  %v8478_v61 = vld [vmem:[#allocation5 + $0x720] ss:$16 sps:$4 sm:$0xff]  }
 0x21c   :  { %v10139_v45 = vpop.f32.mrf.mxu0  ;;  %v10141_v60 = vpop.f32.mrf.mxu1  ;;  %vm5054_vm3 = vcmp.eq.s32.totalorder %v5007_v2, %v8866_v25  ;;  %vm5053_vm8 = vcmp.eq.s32.totalorder %v5007_v2, %v8862_v19  ;;  %v8493_v2 = vld [vmem:[#allocation2 + $0x6e8] ss:$16 sps:$4 sm:$0xff]  }
 0x21d   :  { %11546 = vst [vmem:[#allocation20_spill] sm:$0xff] %v10139_v45  ;;  %11547 = vst [vmem:[#allocation21_spill] sm:$0xff] %v10141_v60  ;;  %7465 = vmatmul.mubr.msk.bf16.gmra.mxu0 %vm9901_vm9, %v11455_v20  ;;  %7497 = vmatmul.mubr.msk.bf16.gmra.mxu1 %vm9901_vm9, %v11455_v20  ;;  %v8480_v60 = vld [vmem:[#allocation5 + $0x724] ss:$16 sps:$4 sm:$0xff]   ;;  %v5010_v45 = vpop.permute.xlu1 %5009 }
 0x21e   :  { %5643 = vmatpush2.bf16.msra.mxu0 %v8466_v24  ;;  %5756 = vmatpush2.bf16.msra.mxu1 %v8469_v11  ;;  %v10152_v28 = vpop.f32.mrf.mxu0  ;;  %v10154_v36 = vpop.f32.mrf.mxu1  ;;  %vm5056_vm14 = vcmp.eq.s32.totalorder %v5010_v45, %v8866_v25  ;;  %vm5055_vm11 = vcmp.eq.s32.totalorder %v5010_v45, %v8862_v19  ;;  %v11565_v45 = vmov 0 }
 0x21f   :  { %7467 = vmatprep.mubr.msk.bf16.mxu0 %vm9919_vm13, %v11455_v20  ;;  %11548 = vst [vmem:[#allocation22_spill] sm:$0xff] %v10152_v28  ;;  %11549 = vst [vmem:[#allocation23_spill] sm:$0xff] %v10154_v36  ;;  %7499 = vmatprep.mubr.msk.bf16.mxu1 %vm9919_vm13, %v11455_v20 }
 0x220   :  { %5644 = vmatprep.subr.bf16.mxu0 %v8474_v42  ;;  %5757 = vmatprep.subr.bf16.mxu1 %v8477_v57  ;;  %v10159_v24 = vpop.f32.mrf.mxu0  ;;  %v10161_v11 = vpop.f32.mrf.mxu1  ;;  %v8486_v42 = vld [vmem:[#allocation5 + $0x704] ss:$16 sps:$4 sm:$0xff]   ;;  %vm10176_vm10 = vmpackc.low %vm5056_vm14, %vm5054_vm3 }
 0x221   :  { %11550 = vst [vmem:[#allocation24_spill] sm:$0xff] %v10159_v24  ;;  %11551 = vst [vmem:[#allocation25_spill] sm:$0xff] %v10161_v11  ;;  %v11556_v11 = vmov 0 }
 0x222   :  { %5645 = vmatpush2.bf16.msra.mxu0 %v8472_v26  ;;  %5758 = vmatpush2.bf16.msra.mxu1 %v8475_v8  ;;  %v10165_v36 = vpop.f32.mrf.mxu0  ;;  %v10167_v28 = vpop.f32.mrf.mxu1  ;;  %v8489_v26 = vld [vmem:[#allocation5 + $0x70c] ss:$16 sps:$4 sm:$0xff]   ;;  %v11557_v11 = vsel %vm10176_vm10, 4294967295, %v11556_v11  ;;  %vm10211_vm4 = vmpackc.low %vm5055_vm11, %vm5053_vm8 }
 0x223   :  { %11552 = vst [vmem:[#allocation26_spill] sm:$0xff] %v10165_v36  ;;  %11553 = vst [vmem:[#allocation27_spill] sm:$0xff] %v10167_v28  ;;  %5646 = vmatprep.subr.bf16.mxu0 %v8480_v60  ;;  %5759 = vmatprep.subr.bf16.mxu1 %v8483_v40  ;;  %v8484_v60 = vld [vmem:[#allocation5 + $0x700] ss:$16 sps:$4 sm:$0xff]   ;;  %v10190_v28 = vpop.permute.xlu1 %5015  ;;  %v10192_v36 = vpop.permute.xlu0 %5012  ;;  %v11566_v45 = vsel %vm10211_vm4, 4294967295, %v11565_v45 }
 0x224   :  { %v10169_v57 = vpop.f32.mrf.mxu0  ;;  %v10171_v24 = vpop.f32.mrf.mxu1  ;;  %11558 = vst [vmem:[#allocation30_spill] sm:$0xff] %v11557_v11  ;;  %vm5060_vm2 = vcmp.eq.s32.totalorder %v10190_v28, %v8866_v25  ;;  %vm5058_vm6 = vcmp.eq.s32.totalorder %v10192_v36, %v8866_v25  ;;  %11567 = vst [vmem:[#allocation37_spill] sm:$0xff] %v11566_v45  ;;  %v3202_v11 = vld [vmem:[#allocation8] sm:$0xff]  ;;  %v8507_v45 = vld [vmem:[#allocation2 + $0x6ac] ss:$16 sps:$4 sm:$0xff]   ;;  %vm5059_vm9 = vcmp.eq.s32.totalorder %v10190_v28, %v8862_v19 }
 0x225   :  { %11554 = vst [vmem:[#allocation28_spill] sm:$0xff] %v10169_v57  ;;  %11555 = vst [vmem:[#allocation29_spill] sm:$0xff] %v10171_v24  ;;  %7469 = vmatmul.mubr.msk.bf16.gmra.mxu0 %vm9945_vm15, %v11455_v20  ;;  %7501 = vmatmul.mubr.msk.bf16.gmra.mxu1 %vm9945_vm15, %v11455_v20  ;;  %v8487_v24 = vld [vmem:[#allocation5 + $0x708] ss:$16 sps:$4 sm:$0xff]   ;;  %v8492_v57 = vld [vmem:[#allocation2 + $0x6e4] ss:$16 sps:$4 sm:$0xff]   ;;  %vm5057_vm13 = vcmp.eq.s32.totalorder %v10192_v36, %v8862_v19 }
 0x226   :  { %5647 = vmatpush2.bf16.msra.mxu0 %v8478_v61  ;;  %5760 = vmatpush2.bf16.msra.mxu1 %v8481_v46  ;;  %v10186_v8 = vpop.f32.mrf.mxu0  ;;  %v10188_v40 = vpop.f32.mrf.mxu1  ;;  %vm10218_vm0 = vmpackc.low %vm5060_vm2, %vm5058_vm6  ;;  %v8513_v28 = vld [vmem:[#allocation2 + $0x68c] ss:$16 sps:$4 sm:$0xff]  }
 0x227   :  { %7615 = vmatprep.mubr.msk.bf16.mxu0 %vm10176_vm10, %v11455_v20  ;;  %11559 = vst [vmem:[#allocation31_spill] sm:$0xff] %v10186_v8  ;;  %11560 = vst [vmem:[#allocation32_spill] sm:$0xff] %v10188_v40  ;;  %7647 = vmatprep.mubr.msk.bf16.mxu1 %vm10176_vm10, %v11455_v20  ;;  %v8490_v40 = vld [vmem:[#allocation2 + $0x6e0] ss:$16 sps:$4 sm:$0xff]  }
 0x228   :  { %5648 = vmatprep.subr.bf16.mxu0 %v8486_v42  ;;  %5761 = vmatprep.subr.bf16.mxu1 %v8489_v26  ;;  %v10199_v61 = vpop.f32.mrf.mxu0  ;;  %v10201_v46 = vpop.f32.mrf.mxu1  ;;  %vm10255_vm15 = vmpackc.low %vm5059_vm9, %vm5057_vm13 }
 0x229   :  { %11561 = vst [vmem:[#allocation33_spill] sm:$0xff] %v10199_v61  ;;  %11562 = vst [vmem:[#allocation34_spill] sm:$0xff] %v10201_v46  ;;  %v8498_v46 = vld [vmem:[#allocation2 + $0x6c4] ss:$16 sps:$4 sm:$0xff]   ;;  %v8501_v61 = vld [vmem:[#allocation2 + $0x6cc] ss:$16 sps:$4 sm:$0xff]  }
 0x22a   :  { %5649 = vmatpush2.bf16.msra.mxu0 %v8484_v60  ;;  %5762 = vmatpush2.bf16.msra.mxu1 %v8487_v24  ;;  %v10207_v42 = vpop.f32.mrf.mxu0  ;;  %v10209_v8 = vpop.f32.mrf.mxu1 }
 0x22b   :  { %11563 = vst [vmem:[#allocation35_spill] sm:$0xff] %v10207_v42  ;;  %11564 = vst [vmem:[#allocation36_spill] sm:$0xff] %v10209_v8  ;;  %6164 = vmatprep.subr.bf16.mxu0 %v8492_v57  ;;  %6277 = vmatprep.subr.bf16.mxu1 %v8495_v4  ;;  %v8496_v4 = vld [vmem:[#allocation2 + $0x6c0] ss:$16 sps:$4 sm:$0xff]   ;;  %v8499_v42 = vld [vmem:[#allocation2 + $0x6c8] ss:$16 sps:$4 sm:$0xff]  }
 0x22c   :  { %v3010_v26 = vpop.f32.mrf.mxu0  ;;  %v3123_v60 = vpop.f32.mrf.mxu1 }
 0x22d   :  { %7617 = vmatmul.mubr.msk.bf16.vlgmr.msra.gmra.mxu0 %vm10211_vm4, %v11455_v20  ;;  %v3011_v57 = vadd.f32 %v3010_v26, %v9971_v59  ;;  %v3124_v8 = vadd.f32 %v3123_v60, %v9973_v12  ;;  %7649 = vmatmul.mubr.msk.bf16.vlgmr.msra.gmra.mxu1 %vm10211_vm4, %v11455_v20  ;;  %v10230_v59 = vpop.permute.xlu1 %5021  ;;  %v10232_v12 = vpop.permute.xlu0 %5018 }
 0x22e   :  { %6165 = vmatpush1.bf16.msra.mxu0 %v8490_v40  ;;  %6278 = vmatpush1.bf16.msra.mxu1 %v8493_v2  ;;  %v3012_v47 = vpop.f32.mrf.mxu0  ;;  %v3125_v3 = vpop.f32.mrf.mxu1  ;;  %vm5064_vm5 = vcmp.eq.s32.totalorder %v10230_v59, %v8866_v25  ;;  %vm5062_vm7 = vcmp.eq.s32.totalorder %v10232_v12, %v8866_v25  ;;  %vm5063_vm1 = vcmp.eq.s32.totalorder %v10230_v59, %v8862_v19  ;;  %v8525_v59 = vld [vmem:[#allocation2 + $0x64c] ss:$16 sps:$4 sm:$0xff]  }
 0x22f   :  { %7619 = vmatprep.mubr.msk.bf16.mxu0 %vm10218_vm0, %v11455_v20  ;;  %v3266_v26 = vadd.f32 %v3202_v11, %v3011_v57  ;;  %v3268_v60 = vadd.f32 %v3204_v55, %v3124_v8  ;;  %7651 = vmatprep.mubr.msk.bf16.mxu1 %vm10218_vm0, %v11455_v20  ;;  %v3013_v40 = vadd.f32 %v3012_v47, %v9984_v35  ;;  %v3206_v47 = vld [vmem:[#allocation8 + $0x20] sm:$0xff]  ;;  %vm10270_vm12 = vmpackc.low %vm5064_vm5, %vm5062_vm7 }
 0x230   :  { %v3126_v2 = vadd.f32 %v3125_v3, %v9986_v17  ;;  %6166 = vmatprep.subr.bf16.mxu0 %v8498_v46  ;;  %6279 = vmatprep.subr.bf16.mxu1 %v8501_v61  ;;  %v3014_v55 = vpop.f32.mrf.mxu0  ;;  %v3127_v11 = vpop.f32.mrf.mxu1  ;;  %v8502_v3 = vld [vmem:[#allocation2 + $0x6a0] ss:$16 sps:$4 sm:$0xff]   ;;  %vm5061_vm14 = vcmp.eq.s32.totalorder %v10232_v12, %v8862_v19 }
 0x231   :  { %3330 = vst [vmem:[#allocation8] sm:$0xff] %v3266_v26  ;;  %3332 = vst [vmem:[#allocation8 + $0x10] sm:$0xff] %v3268_v60  ;;  %v3267_v8 = vadd.f32 %v3203_v39, %v3013_v40  ;;  %v3015_v35 = vadd.f32 %v3014_v55, %v9991_v63  ;;  %v3128_v17 = vadd.f32 %v3127_v11, %v9993_v32  ;;  %v3208_v61 = vld [vmem:[#allocation8 + $0x30] sm:$0xff]  ;;  %v8505_v39 = vld [vmem:[#allocation2 + $0x6a8] ss:$16 sps:$4 sm:$0xff]  }
 0x232   :  { %v3269_v57 = vadd.f32 %v3205_v16, %v3126_v2  ;;  %6167 = vmatpush1.bf16.msra.mxu0 %v8496_v4  ;;  %6280 = vmatpush1.bf16.msra.mxu1 %v8499_v42  ;;  %v3016_v46 = vpop.f32.mrf.mxu0  ;;  %v3129_v26 = vpop.f32.mrf.mxu1  ;;  %v3207_v60 = vld [vmem:[#allocation8 + $0x28] sm:$0xff]  ;;  %v3209_v40 = vld [vmem:[#allocation8 + $0x38] sm:$0xff]  ;;  %vm10307_vm8 = vmpackc.low %vm5063_vm1, %vm5061_vm14 }
 0x233   :  { %6168 = vmatprep.subr.bf16.mxu0 %v8504_v44  ;;  %3331 = vst [vmem:[#allocation8 + $0x8] sm:$0xff] %v3267_v8  ;;  %v3270_v32 = vadd.f32 %v3206_v47, %v3015_v35  ;;  %v3272_v16 = vadd.f32 %v3208_v61, %v3128_v17  ;;  %v3017_v42 = vadd.f32 %v3016_v46, %v9995_v9  ;;  %v8510_v44 = vld [vmem:[#allocation2 + $0x684] ss:$16 sps:$4 sm:$0xff]   ;;  %v8508_v8 = vld [vmem:[#allocation2 + $0x680] ss:$16 sps:$4 sm:$0xff]   ;;  %v10279_v46 = vpop.permute.xlu1 %5027 }
 0x234   :  { %3333 = vst [vmem:[#allocation8 + $0x18] sm:$0xff] %v3269_v57  ;;  %v3130_v4 = vadd.f32 %v3129_v26, %v9997_v62  ;;  %6281 = vmatprep.subr.bf16.mxu1 %v8507_v45  ;;  %v3020_v36 = vpop.f32.mrf.mxu0  ;;  %v3133_v2 = vpop.f32.mrf.mxu1  ;;  %v3210_v57 = vld [vmem:[#allocation8 + $0x40] sm:$0xff]  ;;  %v3212_v35 = vld [vmem:[#allocation8 + $0x50] sm:$0xff]  ;;  %v8511_v61 = vld [vmem:[#allocation2 + $0x688] ss:$16 sps:$4 sm:$0xff]   ;;  %vm5068_vm3 = vcmp.eq.s32.totalorder %v10279_v46, %v8866_v25  ;;  %vm5067_vm6 = vcmp.eq.s32.totalorder %v10279_v46, %v8862_v19 }
 0x235   :  { %7621 = vmatmul.mubr.msk.bf16.gmra.mxu0 %vm10255_vm15, %v11455_v20  ;;  %3334 = vst [vmem:[#allocation8 + $0x20] sm:$0xff] %v3270_v32  ;;  %3336 = vst [vmem:[#allocation8 + $0x30] sm:$0xff] %v3272_v16  ;;  %v3271_v62 = vadd.f32 %v3207_v60, %v3017_v42  ;;  %v3021_v55 = vadd.f32 %v3020_v36, %v9999_v54  ;;  %v3134_v11 = vadd.f32 %v3133_v2, %v10001_v15  ;;  %v10281_v26 = vpop.permute.xlu0 %5024  ;;  %v3211_v32 = vld [vmem:[#allocation8 + $0x48] sm:$0xff]  ;;  %v3213_v36 = vld [vmem:[#allocation8 + $0x58] sm:$0xff] }
 0x236   :  { %v3273_v45 = vadd.f32 %v3209_v40, %v3130_v4  ;;  %7653 = vmatmul.mubr.msk.bf16.gmra.mxu1 %vm10255_vm15, %v11455_v20  ;;  %6169 = vmatpush1.bf16.msra.mxu0 %v8502_v3  ;;  %v3022_v17 = vpop.f32.mrf.mxu0  ;;  %v3135_v47 = vpop.f32.mrf.mxu1  ;;  %v8519_v60 = vld [vmem:[#allocation2 + $0x66c] ss:$16 sps:$4 sm:$0xff]   ;;  %vm5066_vm11 = vcmp.eq.s32.totalorder %v10281_v26, %v8866_v25  ;;  %vm5065_vm9 = vcmp.eq.s32.totalorder %v10281_v26, %v8862_v19 }
 0x237   :  { %6282 = vmatpush1.bf16.msra.mxu1 %v8505_v39  ;;  %3335 = vst [vmem:[#allocation8 + $0x28] sm:$0xff] %v3271_v62  ;;  %v3274_v54 = vadd.f32 %v3210_v57, %v3021_v55  ;;  %v3276_v15 = vadd.f32 %v3212_v35, %v3134_v11  ;;  %7623 = vmatprep.mubr.msk.bf16.mxu0 %vm10270_vm12, %v11455_v20  ;;  %v8516_v39 = vld [vmem:[#allocation2 + $0x664] ss:$16 sps:$4 sm:$0xff]   ;;  %v8514_v62 = vld [vmem:[#allocation2 + $0x660] ss:$16 sps:$4 sm:$0xff]   ;;  %vm10322_vm2 = vmpackc.low %vm5068_vm3, %vm5066_vm11 }
 0x238   :  { %3337 = vst [vmem:[#allocation8 + $0x38] sm:$0xff] %v3273_v45  ;;  %7655 = vmatprep.mubr.msk.bf16.mxu1 %vm10270_vm12, %v11455_v20  ;;  %v3023_v3 = vadd.f32 %v3022_v17, %v10012_v53  ;;  %v3136_v16 = vadd.f32 %v3135_v47, %v10014_v29  ;;  %6170 = vmatprep.subr.bf16.mxu0 %v8510_v44  ;;  %v3024_v42 = vpop.f32.mrf.mxu0  ;;  %v3137_v4 = vpop.f32.mrf.mxu1  ;;  %v3214_v44 = vld [vmem:[#allocation8 + $0x60] sm:$0xff]  ;;  %v8517_v11 = vld [vmem:[#allocation2 + $0x668] ss:$16 sps:$4 sm:$0xff]   ;;  %vm10359_vm7 = vmpackc.low %vm5067_vm6, %vm5065_vm9 }
 0x239   :  { %6283 = vmatprep.subr.bf16.mxu1 %v8513_v28  ;;  %3338 = vst [vmem:[#allocation8 + $0x40] sm:$0xff] %v3274_v54  ;;  %3340 = vst [vmem:[#allocation8 + $0x50] sm:$0xff] %v3276_v15  ;;  %v3025_v53 = vadd.f32 %v3024_v42, %v10019_v37  ;;  %v3138_v2 = vadd.f32 %v3137_v4, %v10021_v58  ;;  %v3216_v28 = vld [vmem:[#allocation8 + $0x70] sm:$0xff]  ;;  %v3215_v47 = vld [vmem:[#allocation8 + $0x68] sm:$0xff] }
 0x23a   :  { %v3275_v40 = vadd.f32 %v3211_v32, %v3023_v3  ;;  %v3277_v29 = vadd.f32 %v3213_v36, %v3136_v16  ;;  %6171 = vmatpush1.bf16.msra.mxu0 %v8508_v8  ;;  %v3026_v45 = vpop.f32.mrf.mxu0  ;;  %v3139_v55 = vpop.f32.mrf.mxu1  ;;  %v8522_v17 = vld [vmem:[#allocation2 + $0x644] ss:$16 sps:$4 sm:$0xff]   ;;  %v8520_v32 = vld [vmem:[#allocation2 + $0x640] ss:$16 sps:$4 sm:$0xff]   ;;  %v8537_v46 = vld [vmem:[#allocation2 + $0x60c] ss:$16 sps:$4 sm:$0xff]  }
 0x23b   :  { %6284 = vmatpush1.bf16.msra.mxu1 %v8511_v61  ;;  %v3278_v58 = vadd.f32 %v3214_v44, %v3025_v53  ;;  %v3280_v57 = vadd.f32 %v3216_v28, %v3138_v2  ;;  %v3027_v35 = vadd.f32 %v3026_v45, %v10023_v10  ;;  %v3140_v8 = vadd.f32 %v3139_v55, %v10025_v43  ;;  %v3217_v61 = vld [vmem:[#allocation8 + $0x78] sm:$0xff]  ;;  %v3218_v16 = vld [vmem:[#allocation8 + $0x80] sm:$0xff]  ;;  %v3220_v42 = vld [vmem:[#allocation8 + $0x90] sm:$0xff]  ;;  %v10331_v36 = vpop.permute.xlu1 %5033  ;;  %v10333_v53 = vpop.permute.xlu0 %5030 }
 0x23c   :  { %3339 = vst [vmem:[#allocation8 + $0x48] sm:$0xff] %v3275_v40  ;;  %6172 = vmatprep.subr.bf16.mxu0 %v8516_v39  ;;  %3341 = vst [vmem:[#allocation8 + $0x58] sm:$0xff] %v3277_v29  ;;  %6285 = vmatprep.subr.bf16.mxu1 %v8519_v60  ;;  %v3030_v12 = vpop.f32.mrf.mxu0  ;;  %v3143_v54 = vpop.f32.mrf.mxu1  ;;  %v8523_v40 = vld [vmem:[#allocation2 + $0x648] ss:$16 sps:$4 sm:$0xff]   ;;  %v8531_v55 = vld [vmem:[#allocation2 + $0x62c] ss:$16 sps:$4 sm:$0xff]   ;;  %vm5072_vm13 = vcmp.eq.s32.totalorder %v10331_v36, %v8866_v25  ;;  %vm5070_vm5 = vcmp.eq.s32.totalorder %v10333_v53, %v8866_v25 }
 0x23d   :  { %7625 = vmatmul.mubr.msk.bf16.gmra.mxu0 %vm10307_vm8, %v11455_v20  ;;  %3342 = vst [vmem:[#allocation8 + $0x60] sm:$0xff] %v3278_v58  ;;  %3344 = vst [vmem:[#allocation8 + $0x70] sm:$0xff] %v3280_v57  ;;  %v3279_v43 = vadd.f32 %v3215_v47, %v3027_v35  ;;  %v3281_v15 = vadd.f32 %v3217_v61, %v3140_v8  ;;  %v3031_v3 = vadd.f32 %v3030_v12, %v10027_v23  ;;  %v3219_v29 = vld [vmem:[#allocation8 + $0x88] sm:$0xff]  ;;  %v3221_v58 = vld [vmem:[#allocation8 + $0x98] sm:$0xff] }
 0x23e   :  { %v3144_v39 = vadd.f32 %v3143_v54, %v10029_v33  ;;  %7657 = vmatmul.mubr.msk.bf16.gmra.mxu1 %vm10307_vm8, %v11455_v20  ;;  %6173 = vmatpush1.bf16.msra.mxu0 %v8514_v62  ;;  %v3032_v4 = vpop.f32.mrf.mxu0  ;;  %v3145_v60 = vpop.f32.mrf.mxu1  ;;  %v8528_v62 = vld [vmem:[#allocation2 + $0x624] ss:$16 sps:$4 sm:$0xff]   ;;  %v8526_v35 = vld [vmem:[#allocation2 + $0x620] ss:$16 sps:$4 sm:$0xff]   ;;  %v8529_v12 = vld [vmem:[#allocation2 + $0x628] ss:$16 sps:$4 sm:$0xff]   ;;  %vm5071_vm14 = vcmp.eq.s32.totalorder %v10331_v36, %v8862_v19  ;;  %vm5069_vm3 = vcmp.eq.s32.totalorder %v10333_v53, %v8862_v19 }
 0x23f   :  { %6286 = vmatpush1.bf16.msra.mxu1 %v8517_v11  ;;  %3343 = vst [vmem:[#allocation8 + $0x68] sm:$0xff] %v3279_v43  ;;  %3345 = vst [vmem:[#allocation8 + $0x78] sm:$0xff] %v3281_v15  ;;  %v3282_v23 = vadd.f32 %v3218_v16, %v3031_v3  ;;  %7627 = vmatprep.mubr.msk.bf16.mxu0 %vm10322_vm2, %v11455_v20  ;;  %v3033_v2 = vadd.f32 %v3032_v4, %v10040_v0  ;;  %v3222_v8 = vld [vmem:[#allocation8 + $0xa0] sm:$0xff]  ;;  %v3223_v3 = vld [vmem:[#allocation8 + $0xa8] sm:$0xff] }
 0x240   :  { %v3284_v33 = vadd.f32 %v3220_v42, %v3144_v39  ;;  %7659 = vmatprep.mubr.msk.bf16.mxu1 %vm10322_vm2, %v11455_v20  ;;  %v3146_v44 = vadd.f32 %v3145_v60, %v10042_v41  ;;  %6174 = vmatprep.subr.bf16.mxu0 %v8522_v17  ;;  %v3034_v28 = vpop.f32.mrf.mxu0  ;;  %v3147_v45 = vpop.f32.mrf.mxu1  ;;  %v3224_v17 = vld [vmem:[#allocation8 + $0xb0] sm:$0xff]  ;;  %v3225_v39 = vld [vmem:[#allocation8 + $0xb8] sm:$0xff]  ;;  %vm10374_vm1 = vmpackc.low %vm5072_vm13, %vm5070_vm5 }
 0x241   :  { %6287 = vmatprep.subr.bf16.mxu1 %v8525_v59  ;;  %3346 = vst [vmem:[#allocation8 + $0x80] sm:$0xff] %v3282_v23  ;;  %v3283_v11 = vadd.f32 %v3219_v29, %v3033_v2  ;;  %v3035_v0 = vadd.f32 %v3034_v28, %v10047_v14  ;;  %v3148_v57 = vadd.f32 %v3147_v45, %v10049_v51  ;;  %v8534_v15 = vld [vmem:[#allocation2 + $0x604] ss:$16 sps:$4 sm:$0xff]   ;;  %v8532_v60 = vld [vmem:[#allocation2 + $0x600] ss:$16 sps:$4 sm:$0xff]   ;;  %v10383_v29 = vpop.permute.xlu1 %5039  ;;  %vm10411_vm9 = vmpackc.low %vm5071_vm14, %vm5069_vm3 }
 0x242   :  { %3348 = vst [vmem:[#allocation8 + $0x90] sm:$0xff] %v3284_v33  ;;  %v3285_v41 = vadd.f32 %v3221_v58, %v3146_v44  ;;  %6175 = vmatpush1.bf16.msra.mxu0 %v8520_v32  ;;  %v3036_v47 = vpop.f32.mrf.mxu0  ;;  %v3149_v61 = vpop.f32.mrf.mxu1  ;;  %v3228_v23 = vld [vmem:[#allocation8 + $0xd0] sm:$0xff]  ;;  %vm5076_vm11 = vcmp.eq.s32.totalorder %v10383_v29, %v8866_v25  ;;  %v8549_v36 = vld [vmem:[#allocation2 + $0x7cc] ss:$16 sps:$4 sm:$0xff]   ;;  %vm5075_vm5 = vcmp.eq.s32.totalorder %v10383_v29, %v8862_v19 }
 0x243   :  { %6288 = vmatpush1.bf16.msra.mxu1 %v8523_v40  ;;  %3347 = vst [vmem:[#allocation8 + $0x88] sm:$0xff] %v3283_v11  ;;  %v3286_v51 = vadd.f32 %v3222_v8, %v3035_v0  ;;  %v3288_v54 = vadd.f32 %v3224_v17, %v3148_v57  ;;  %v3037_v59 = vadd.f32 %v3036_v47, %v10051_v34  ;;  %v3226_v40 = vld [vmem:[#allocation8 + $0xc0] sm:$0xff]  ;;  %v10385_v44 = vpop.permute.xlu0 %5036  ;;  %v8543_v57 = vld [vmem:[#allocation2 + $0x7ec] ss:$16 sps:$4 sm:$0xff]  }
 0x244   :  { %v3150_v43 = vadd.f32 %v3149_v61, %v10053_v30  ;;  %6176 = vmatprep.subr.bf16.mxu0 %v8528_v62  ;;  %3349 = vst [vmem:[#allocation8 + $0x98] sm:$0xff] %v3285_v41  ;;  %6289 = vmatprep.subr.bf16.mxu1 %v8531_v55  ;;  %v3040_v26 = vpop.f32.mrf.mxu0  ;;  %v3153_v32 = vpop.f32.mrf.mxu1  ;;  %v8535_v62 = vld [vmem:[#allocation2 + $0x608] ss:$16 sps:$4 sm:$0xff]   ;;  %v8540_v45 = vld [vmem:[#allocation2 + $0x7e4] ss:$16 sps:$4 sm:$0xff]   ;;  %vm5074_vm6 = vcmp.eq.s32.totalorder %v10385_v44, %v8866_v25 }
 0x245   :  { %7629 = vmatmul.mubr.msk.bf16.gmra.mxu0 %vm10359_vm7, %v11455_v20  ;;  %3350 = vst [vmem:[#allocation8 + $0xa0] sm:$0xff] %v3286_v51  ;;  %3352 = vst [vmem:[#allocation8 + $0xb0] sm:$0xff] %v3288_v54  ;;  %v3287_v30 = vadd.f32 %v3223_v3, %v3037_v59  ;;  %v3041_v42 = vadd.f32 %v3040_v26, %v10055_v22  ;;  %v3154_v4 = vadd.f32 %v3153_v32, %v10057_v50  ;;  %v3227_v55 = vld [vmem:[#allocation8 + $0xc8] sm:$0xff]  ;;  %v3229_v41 = vld [vmem:[#allocation8 + $0xd8] sm:$0xff] }
 0x246   :  { %v3289_v16 = vadd.f32 %v3225_v39, %v3150_v43  ;;  %7661 = vmatmul.mubr.msk.bf16.gmra.mxu1 %vm10359_vm7, %v11455_v20  ;;  %6177 = vmatpush1.bf16.msra.mxu0 %v8526_v35  ;;  %v3042_v33 = vpop.f32.mrf.mxu0  ;;  %v3155_v2 = vpop.f32.mrf.mxu1  ;;  %v8538_v17 = vld [vmem:[#allocation2 + $0x7e0] ss:$16 sps:$4 sm:$0xff]   ;;  %v8541_v54 = vld [vmem:[#allocation2 + $0x7e8] ss:$16 sps:$4 sm:$0xff]   ;;  %v8546_v3 = vld [vmem:[#allocation2 + $0x7c4] ss:$16 sps:$4 sm:$0xff]   ;;  %vm5073_vm14 = vcmp.eq.s32.totalorder %v10385_v44, %v8862_v19 }
 0x247   :  { %6290 = vmatpush1.bf16.msra.mxu1 %v8529_v12  ;;  %3351 = vst [vmem:[#allocation8 + $0xa8] sm:$0xff] %v3287_v30  ;;  %v3290_v22 = vadd.f32 %v3226_v40, %v3041_v42  ;;  %v3292_v50 = vadd.f32 %v3228_v23, %v3154_v4  ;;  %7631 = vmatprep.mubr.msk.bf16.mxu0 %vm10374_vm1, %v11455_v20  ;;  %v3230_v47 = vld [vmem:[#allocation8 + $0xe0] sm:$0xff]  ;;  %v3232_v61 = vld [vmem:[#allocation8 + $0xf0] sm:$0xff]  ;;  %v3231_v39 = vld [vmem:[#allocation8 + $0xe8] sm:$0xff] }
 0x248   :  { %3353 = vst [vmem:[#allocation8 + $0xb8] sm:$0xff] %v3289_v16  ;;  %7663 = vmatprep.mubr.msk.bf16.mxu1 %vm10374_vm1, %v11455_v20  ;;  %v3043_v28 = vadd.f32 %v3042_v33, %v10068_v7  ;;  %v3156_v11 = vadd.f32 %v3155_v2, %v10070_v18  ;;  %6178 = vmatprep.subr.bf16.mxu0 %v8534_v15  ;;  %v3044_v58 = vpop.f32.mrf.mxu0  ;;  %v3157_v0 = vpop.f32.mrf.mxu1  ;;  %v3233_v26 = vld [vmem:[#allocation8 + $0xf8] sm:$0xff]  ;;  %vm10426_vm13 = vmpackc.low %vm5076_vm11, %vm5074_vm6  ;;  %v8544_v42 = vld [vmem:[#allocation2 + $0x7c0] ss:$16 sps:$4 sm:$0xff]  }
 0x249   :  { %6291 = vmatprep.subr.bf16.mxu1 %v8537_v46  ;;  %3354 = vst [vmem:[#allocation8 + $0xc0] sm:$0xff] %v3290_v22  ;;  %3356 = vst [vmem:[#allocation8 + $0xd0] sm:$0xff] %v3292_v50  ;;  %v3045_v7 = vadd.f32 %v3044_v58, %v10075_v5  ;;  %v3158_v8 = vadd.f32 %v3157_v0, %v10077_v49  ;;  %v3234_v4 = vld [vmem:[#allocation8 + $0x100] sm:$0xff]  ;;  %v8547_v33 = vld [vmem:[#allocation2 + $0x7c8] ss:$16 sps:$4 sm:$0xff]   ;;  %v10435_v2 = vpop.permute.xlu1 %5045 }
 0x24a   :  { %v3291_v35 = vadd.f32 %v3227_v55, %v3043_v28  ;;  %v3293_v18 = vadd.f32 %v3229_v41, %v3156_v11  ;;  %6179 = vmatpush1.bf16.msra.mxu0 %v8532_v60  ;;  %v3046_v12 = vpop.f32.mrf.mxu0  ;;  %v3159_v51 = vpop.f32.mrf.mxu1  ;;  %v3236_v60 = vld [vmem:[#allocation8 + $0x110] sm:$0xff]  ;;  %v8555_v11 = vld [vmem:[#allocation2 + $0x7ac] ss:$16 sps:$4 sm:$0xff]   ;;  %vm10467_vm3 = vmpackc.low %vm5075_vm5, %vm5073_vm14  ;;  %v11586_v41 = vmov 0  ;;  %vm5080_vm11 = vcmp.eq.s32.totalorder %v10435_v2, %v8866_v25 }
 0x24b   :  { %6292 = vmatpush1.bf16.msra.mxu1 %v8535_v62  ;;  %v3294_v49 = vadd.f32 %v3230_v47, %v3045_v7  ;;  %v3296_v59 = vadd.f32 %v3232_v61, %v3158_v8  ;;  %v3047_v43 = vadd.f32 %v3046_v12, %v10079_v1  ;;  %v3160_v15 = vadd.f32 %v3159_v51, %v10081_v31  ;;  %v10437_v62 = vpop.permute.xlu0 %5042  ;;  %v8552_v50 = vld [vmem:[#allocation2 + $0x7a4] ss:$16 sps:$4 sm:$0xff]   ;;  %v8561_v8 = vld [vmem:[#allocation2 + $0x78c] ss:$16 sps:$4 sm:$0xff]   ;;  %v8556_v51 = vld [vmem:[#allocation2 + $0x780] ss:$16 sps:$4 sm:$0xff]  }
 0x24c   :  { %3355 = vst [vmem:[#allocation8 + $0xc8] sm:$0xff] %v3291_v35  ;;  %6180 = vmatprep.subr.bf16.mxu0 %v8540_v45  ;;  %3357 = vst [vmem:[#allocation8 + $0xd8] sm:$0xff] %v3293_v18  ;;  %6293 = vmatprep.subr.bf16.mxu1 %v8543_v57  ;;  %v3050_v53 = vpop.f32.mrf.mxu0  ;;  %v3163_v32 = vpop.f32.mrf.mxu1  ;;  %v8550_v35 = vld [vmem:[#allocation2 + $0x7a0] ss:$16 sps:$4 sm:$0xff]   ;;  %v11587_v41 = vsel %vm10467_vm3, 4294967295, %v11586_v41  ;;  %vm5078_vm6 = vcmp.eq.s32.totalorder %v10437_v62, %v8866_v25  ;;  %v11589_v47 = vld [vmem:[#allocation13_spill] sm:$0xff]  ;;  %vm5079_vm14 = vcmp.eq.s32.totalorder %v10435_v2, %v8862_v19 }
 0x24d   :  { %7633 = vmatmul.mubr.msk.bf16.gmra.mxu0 %vm10411_vm9, %v11455_v20  ;;  %3358 = vst [vmem:[#allocation8 + $0xe0] sm:$0xff] %v3294_v49  ;;  %3360 = vst [vmem:[#allocation8 + $0xf0] sm:$0xff] %v3296_v59  ;;  %v3295_v31 = vadd.f32 %v3231_v39, %v3047_v43  ;;  %v3297_v46 = vadd.f32 %v3233_v26, %v3160_v15  ;;  %v3051_v30 = vadd.f32 %v3050_v53, %v10083_v48  ;;  %v8558_v7 = vld [vmem:[#allocation2 + $0x784] ss:$16 sps:$4 sm:$0xff]   ;;  %v10497_v49 = vpop.permute.xlu1 %5051  ;;  %v11593_v39 = vld [vmem:[#allocation15_spill] sm:$0xff] }
 0x24e   :  { %v3164_v16 = vadd.f32 %v3163_v32, %v10085_v13  ;;  %7665 = vmatmul.mubr.msk.bf16.gmra.mxu1 %vm10411_vm9, %v11455_v20  ;;  %6181 = vmatpush2.bf16.msra.mxu0 %v8538_v17  ;;  %v3052_v40 = vpop.f32.mrf.mxu0  ;;  %v3165_v23 = vpop.f32.mrf.mxu1  ;;  %v11588_v17 = vld [vmem:[#allocation12_spill] sm:$0xff]  ;;  %vm10493_vm5 = vmpackc.low %vm5080_vm11, %vm5078_vm6  ;;  %v11592_v43 = vld [vmem:[#allocation14_spill] sm:$0xff]  ;;  %vm5077_vm11 = vcmp.eq.s32.totalorder %v10437_v62, %v8862_v19 }
 0x24f   :  { %6294 = vmatpush2.bf16.msra.mxu1 %v8541_v54  ;;  %3359 = vst [vmem:[#allocation8 + $0xe8] sm:$0xff] %v3295_v31  ;;  %3361 = vst [vmem:[#allocation8 + $0xf8] sm:$0xff] %v3297_v46  ;;  %v3298_v48 = vadd.f32 %v3234_v4, %v3051_v30  ;;  %7635 = vmatprep.mubr.msk.bf16.mxu0 %vm10426_vm13, %v11455_v20  ;;  %v10446_v22 = vadd.f32 %v3052_v40, %v10096_v52  ;;  %v8559_v54 = vld [vmem:[#allocation2 + $0x788] ss:$16 sps:$4 sm:$0xff]   ;;  %v10499_v59 = vpop.permute.xlu0 %5048  ;;  %v11595_v31 = vld [vmem:[#allocation16_spill] sm:$0xff] }
 0x250   :  { %v3300_v13 = vadd.f32 %v3236_v60, %v3164_v16  ;;  %7667 = vmatprep.mubr.msk.bf16.mxu1 %vm10426_vm13, %v11455_v20  ;;  %v10453_v28 = vadd.f32 %v3165_v23, %v10098_v38  ;;  %6182 = vmatprep.subr.bf16.mxu0 %v8546_v3  ;;  %v3054_v45 = vpop.f32.mrf.mxu0  ;;  %v3167_v55 = vpop.f32.mrf.mxu1  ;;  %v8553_v38 = vld [vmem:[#allocation2 + $0x7a8] ss:$16 sps:$4 sm:$0xff]   ;;  %v8564_v3 = vld [vmem:[#allocation2 + $0x764] ss:$16 sps:$4 sm:$0xff]   ;;  %v8562_v60 = vld [vmem:[#allocation2 + $0x760] ss:$16 sps:$4 sm:$0xff]  }
 0x251   :  { %6295 = vmatprep.subr.bf16.mxu1 %v8549_v36  ;;  %3362 = vst [vmem:[#allocation8 + $0x100] sm:$0xff] %v3298_v48  ;;  %v10456_v52 = vadd.f32 %v3054_v45, %v10103_v56  ;;  %v10459_v58 = vadd.f32 %v3167_v55, %v10105_v21  ;;  %v8567_v36 = vld [vmem:[#allocation2 + $0x76c] ss:$16 sps:$4 sm:$0xff]   ;;  %v8565_v40 = vld [vmem:[#allocation2 + $0x768] ss:$16 sps:$4 sm:$0xff]   ;;  %vm10529_vm6 = vmpackc.low %vm5079_vm14, %vm5077_vm11 }
 0x252   :  { %3364 = vst [vmem:[#allocation8 + $0x110] sm:$0xff] %v3300_v13  ;;  %6183 = vmatpush2.bf16.msra.mxu0 %v8544_v42  ;;  %v3056_v0 = vpop.f32.mrf.mxu0  ;;  %v3169_v57 = vpop.f32.mrf.mxu1  ;;  %v11597_v30 = vld [vmem:[#allocation17_spill] sm:$0xff]  ;;  %v11603_v13 = vld [vmem:[#allocation19_spill] sm:$0xff]  ;;  %v8570_v45 = vld [vmem:[#allocation2 + $0x744] ss:$16 sps:$4 sm:$0xff]  }
 0x253   :  { %6296 = vmatpush2.bf16.msra.mxu1 %v8547_v33  ;;  %v10476_v56 = vadd.f32 %v3056_v0, %v10107_v6  ;;  %v10479_v21 = vadd.f32 %v3169_v57, %v10109_v27  ;;  %6184 = vmatprep.subr.bf16.mxu0 %v8552_v50  ;;  %v11590_v6 = vmov 0  ;;  %v11601_v33 = vld [vmem:[#allocation18_spill] sm:$0xff]  ;;  %v8573_v55 = vld [vmem:[#allocation2 + $0x74c] ss:$16 sps:$4 sm:$0xff]  }
 0x254   :  { %6297 = vmatprep.subr.bf16.mxu1 %v8555_v11  ;;  %v3060_v44 = vpop.f32.mrf.mxu0  ;;  %v3173_v29 = vpop.f32.mrf.mxu1  ;;  %v11591_v6 = vsel %vm10493_vm5, 4294967295, %v11590_v6  ;;  %v11605_v11 = vld [vmem:[#allocation20_spill] sm:$0xff] }
 0x255   :  { %7637 = vmatmul.mubr.msk.bf16.gmra.mxu0 %vm10467_vm3, %v11455_v20  ;;  %v10485_v18 = vadd.f32 %v3060_v44, %v11588_v17  ;;  %v10488_v61 = vadd.f32 %v3173_v29, %v11589_v47  ;;  %v8568_v29 = vld [vmem:[#allocation2 + $0x740] ss:$16 sps:$4 sm:$0xff]   ;;  %v8576_v47 = vld [vmem:[#allocation2 + $0x724] ss:$16 sps:$4 sm:$0xff]  }
 0x256   :  { %7669 = vmatmul.mubr.msk.bf16.gmra.mxu1 %vm10467_vm3, %v11455_v20  ;;  %6185 = vmatpush2.bf16.msra.mxu0 %v8550_v35  ;;  %v3062_v27 = vpop.f32.mrf.mxu0  ;;  %v3175_v12 = vpop.f32.mrf.mxu1  ;;  %vm5082_vm3 = vcmp.eq.s32.totalorder %v10499_v59, %v8866_v25 }
 0x257   :  { %6298 = vmatpush2.bf16.msra.mxu1 %v8553_v38  ;;  %7639 = vmatprep.mubr.msk.bf16.mxu0 %vm10493_vm5, %v11455_v20  ;;  %v10508_v15 = vadd.f32 %v3062_v27, %v11592_v43  ;;  %v10515_v26 = vadd.f32 %v3175_v12, %v11593_v39  ;;  %v11613_v27 = vld [vmem:[#allocation23_spill] sm:$0xff] }
 0x258   :  { %7671 = vmatprep.mubr.msk.bf16.mxu1 %vm10493_vm5, %v11455_v20  ;;  %6186 = vmatprep.subr.bf16.mxu0 %v8558_v7  ;;  %v3064_v53 = vpop.f32.mrf.mxu0  ;;  %v3177_v32 = vpop.f32.mrf.mxu1  ;;  %vm5084_vm5 = vcmp.eq.s32.totalorder %v10497_v49, %v8866_v25  ;;  %v11607_v25 = vld [vmem:[#allocation21_spill] sm:$0xff] }
 0x259   :  { %11594 = vst [vmem:[#allocation38_spill] sm:$0xff] %v10515_v26  ;;  %6299 = vmatprep.subr.bf16.mxu1 %v8561_v8  ;;  %v10518_v46 = vadd.f32 %v3064_v53, %v11595_v31  ;;  %v10521_v16 = vadd.f32 %v3177_v32, %v11597_v30  ;;  %vm10555_vm14 = vmpackc.low %vm5084_vm5, %vm5082_vm3  ;;  %v8571_v7 = vld [vmem:[#allocation2 + $0x748] ss:$16 sps:$4 sm:$0xff]   ;;  %v11611_v8 = vld [vmem:[#allocation22_spill] sm:$0xff]  ;;  %vm5083_vm3 = vcmp.eq.s32.totalorder %v10497_v49, %v8862_v19 }
 0x25a   :  { %6187 = vmatpush2.bf16.msra.mxu0 %v8556_v51  ;;  %v3066_v42 = vpop.f32.mrf.mxu0  ;;  %v3179_v4 = vpop.f32.mrf.mxu1  ;;  %vm5081_vm5 = vcmp.eq.s32.totalorder %v10499_v59, %v8862_v19  ;;  %v8579_v43 = vld [vmem:[#allocation2 + $0x72c] ss:$16 sps:$4 sm:$0xff]   ;;  %v8574_v30 = vld [vmem:[#allocation2 + $0x720] ss:$16 sps:$4 sm:$0xff]   ;;  %v8582_v59 = vld [vmem:[#allocation2 + $0x704] ss:$16 sps:$4 sm:$0xff]  }
 0x25b   :  { %11596 = vst [vmem:[#allocation39_spill] sm:$0xff] %v10518_v46  ;;  %11598 = vst [vmem:[#allocation40_spill] sm:$0xff] %v10521_v16  ;;  %6300 = vmatpush2.bf16.msra.mxu1 %v8559_v54  ;;  %v10538_v48 = vadd.f32 %v3066_v42, %v11601_v33  ;;  %v10541_v50 = vadd.f32 %v3179_v4, %v11603_v13  ;;  %6188 = vmatprep.subr.bf16.mxu0 %v8564_v3  ;;  %v11615_v3 = vld [vmem:[#allocation24_spill] sm:$0xff]  ;;  %v11617_v53 = vld [vmem:[#allocation25_spill] sm:$0xff] }
 0x25c   :  { %6301 = vmatprep.subr.bf16.mxu1 %v8567_v36  ;;  %v3070_v62 = vpop.f32.mrf.mxu0  ;;  %v3183_v2 = vpop.f32.mrf.mxu1  ;;  %v8577_v42 = vld [vmem:[#allocation2 + $0x728] ss:$16 sps:$4 sm:$0xff]   ;;  %vm10587_vm11 = vmpackc.low %vm5083_vm3, %vm5081_vm5  ;;  %v8585_v19 = vld [vmem:[#allocation2 + $0x70c] ss:$16 sps:$4 sm:$0xff]  }
 0x25d   :  { %11602 = vst [vmem:[#allocation41_spill] sm:$0xff] %v10538_v48  ;;  %11604 = vst [vmem:[#allocation12_spill] sm:$0xff] %v10541_v50  ;;  %7641 = vmatmul.mubr.msk.bf16.gmra.mxu0 %vm10529_vm6, %v11455_v20  ;;  %v10547_v0 = vadd.f32 %v3070_v62, %v11605_v11  ;;  %v10550_v57 = vadd.f32 %v3183_v2, %v11607_v25  ;;  %v11623_v33 = vld [vmem:[#allocation27_spill] sm:$0xff]  ;;  %v11625_v49 = vld [vmem:[#allocation28_spill] sm:$0xff] }
 0x25e   :  { %7673 = vmatmul.mubr.msk.bf16.gmra.mxu1 %vm10529_vm6, %v11455_v20  ;;  %6189 = vmatpush2.bf16.msra.mxu0 %v8562_v60  ;;  %v3072_v38 = vpop.f32.mrf.mxu0  ;;  %v3185_v44 = vpop.f32.mrf.mxu1  ;;  %v11621_v60 = vld [vmem:[#allocation26_spill] sm:$0xff] }
 0x25f   :  { %11606 = vst [vmem:[#allocation13_spill] sm:$0xff] %v10547_v0  ;;  %11608 = vst [vmem:[#allocation14_spill] sm:$0xff] %v10550_v57  ;;  %6302 = vmatpush2.bf16.msra.mxu1 %v8565_v40  ;;  %7643 = vmatprep.mubr.msk.bf16.mxu0 %vm10555_vm14, %v11455_v20  ;;  %v10566_v17 = vadd.f32 %v3072_v38, %v11611_v8  ;;  %v10573_v12 = vadd.f32 %v3185_v44, %v11613_v27  ;;  %v8580_v44 = vld [vmem:[#allocation2 + $0x700] ss:$16 sps:$4 sm:$0xff]   ;;  %v11630_v8 = vld [vmem:[#allocation31_spill] sm:$0xff] }
 0x260   :  { %7675 = vmatprep.mubr.msk.bf16.mxu1 %vm10555_vm14, %v11455_v20  ;;  %6190 = vmatprep.subr.bf16.mxu0 %v8570_v45  ;;  %v3074_v51 = vpop.f32.mrf.mxu0  ;;  %v3187_v54 = vpop.f32.mrf.mxu1  ;;  %v11632_v27 = vld [vmem:[#allocation32_spill] sm:$0xff] }
 0x261   :  { %11612 = vst [vmem:[#allocation15_spill] sm:$0xff] %v10566_v17  ;;  %11614 = vst [vmem:[#allocation16_spill] sm:$0xff] %v10573_v12  ;;  %6303 = vmatprep.subr.bf16.mxu1 %v8573_v55  ;;  %v10576_v39 = vadd.f32 %v3074_v51, %v11615_v3  ;;  %v10579_v32 = vadd.f32 %v3187_v54, %v11617_v53  ;;  %v11627_v55 = vld [vmem:[#allocation29_spill] sm:$0xff] }
 0x262   :  { %6191 = vmatpush2.bf16.msra.mxu0 %v8568_v29  ;;  %v3076_v36 = vpop.f32.mrf.mxu0  ;;  %v3189_v31 = vpop.f32.mrf.mxu1  ;;  %v8583_v29 = vld [vmem:[#allocation2 + $0x708] ss:$16 sps:$4 sm:$0xff]  }
 0x263   :  { %11616 = vst [vmem:[#allocation17_spill] sm:$0xff] %v10576_v39  ;;  %11618 = vst [vmem:[#allocation18_spill] sm:$0xff] %v10579_v32  ;;  %6304 = vmatpush2.bf16.msra.mxu1 %v8571_v7  ;;  %v10592_v40 = vadd.f32 %v3076_v36, %v11621_v60  ;;  %v10595_v13 = vadd.f32 %v3189_v31, %v11623_v33  ;;  %6192 = vmatprep.subr.bf16.mxu0 %v8576_v47  ;;  %v11634_v3 = vld [vmem:[#allocation33_spill] sm:$0xff]  ;;  %v11636_v36 = vld [vmem:[#allocation34_spill] sm:$0xff] }
 0x264   :  { %6305 = vmatprep.subr.bf16.mxu1 %v8579_v43  ;;  %v3080_v62 = vpop.f32.mrf.mxu0  ;;  %v3193_v2 = vpop.f32.mrf.mxu1  ;;  %v11638_v60 = vld [vmem:[#allocation35_spill] sm:$0xff] }
 0x265   :  { %11622 = vst [vmem:[#allocation19_spill] sm:$0xff] %v10592_v40  ;;  %11624 = vst [vmem:[#allocation20_spill] sm:$0xff] %v10595_v13  ;;  %7645 = vmatmul.mubr.msk.bf16.gmra.mxu0 %vm10587_vm11, %v11455_v20  ;;  %v10601_v45 = vadd.f32 %v3080_v62, %v11625_v49  ;;  %v10604_v11 = vadd.f32 %v3193_v2, %v11627_v55  ;;  %v11640_v62 = vld [vmem:[#allocation36_spill] sm:$0xff] }
 0x266   :  { %7677 = vmatmul.mubr.msk.bf16.gmra.mxu1 %vm10587_vm11, %v11455_v20  ;;  %6193 = vmatpush2.bf16.msra.mxu0 %v8574_v30  ;;  %v3082_v25 = vpop.f32.mrf.mxu0  ;;  %v3195_v38 = vpop.f32.mrf.mxu1 }
 0x267   :  { %11626 = vst [vmem:[#allocation21_spill] sm:$0xff] %v10601_v45  ;;  %11628 = vst [vmem:[#allocation22_spill] sm:$0xff] %v10604_v11  ;;  %6306 = vmatpush2.bf16.msra.mxu1 %v8577_v42  ;;  %7743 = vmatprep.mubr.msk.bf16.mxu0 %vm10176_vm10, %v11455_v20  ;;  %v10616_v47 = vadd.f32 %v3082_v25, %v11630_v8  ;;  %v10619_v51 = vadd.f32 %v3195_v38, %v11632_v27 }
 0x268   :  { %7775 = vmatprep.mubr.msk.bf16.mxu1 %vm10176_vm10, %v11455_v20  ;;  %6194 = vmatprep.subr.bf16.mxu0 %v8582_v59  ;;  %v3084_v54 = vpop.f32.mrf.mxu0  ;;  %v3197_v43 = vpop.f32.mrf.mxu1  ;;  %vm11643_vm10 = vnez %v11587_v41 }
 0x269   :  { %11631 = vst [vmem:[#allocation23_spill] sm:$0xff] %v10616_v47  ;;  %11633 = vst [vmem:[#allocation24_spill] sm:$0xff] %v10619_v51  ;;  %6307 = vmatprep.subr.bf16.mxu1 %v8585_v19  ;;  %v10622_v53 = vadd.f32 %v3084_v54, %v11634_v3  ;;  %v10625_v31 = vadd.f32 %v3197_v43, %v11636_v36 }
 0x26a   :  { %6195 = vmatpush2.bf16.msra.mxu0 %v8580_v44  ;;  %v3086_v30 = vpop.f32.mrf.mxu0  ;;  %v3199_v42 = vpop.f32.mrf.mxu1 }
 0x26b   :  { %11635 = vst [vmem:[#allocation25_spill] sm:$0xff] %v10622_v53  ;;  %11637 = vst [vmem:[#allocation26_spill] sm:$0xff] %v10625_v31  ;;  %6308 = vmatpush2.bf16.msra.mxu1 %v8583_v29  ;;  %v10628_v33 = vadd.f32 %v3086_v30, %v11638_v60  ;;  %v10631_v2 = vadd.f32 %v3199_v42, %v11640_v62 }
 0x26c   :  { %v10633_v59 = vpop.f32.mrf.mxu0  ;;  %v10635_v19 = vpop.f32.mrf.mxu1 }
 0x26d   :  { %11639 = vst [vmem:[#allocation27_spill] sm:$0xff] %v10628_v33  ;;  %11641 = vst [vmem:[#allocation28_spill] sm:$0xff] %v10631_v2  ;;  %7745 = vmatmul.mubr.msk.bf16.vlgmr.msra.gmra.mxu0 %vm10211_vm4, %v11455_v20 }
 0x26e   :  { %7777 = vmatmul.mubr.msk.bf16.vlgmr.msra.gmra.mxu1 %vm10211_vm4, %v11455_v20  ;;  %7747 = vmatprep.mubr.msk.bf16.mxu0 %vm10218_vm0, %v11455_v20  ;;  %v10649_v55 = vpop.f32.mrf.mxu0  ;;  %v10651_v25 = vpop.f32.mrf.mxu1  ;;  %vm11644_vm4 = vnez %v11591_v6 }
 0x26f   :  { %7779 = vmatprep.mubr.msk.bf16.mxu1 %vm10218_vm0, %v11455_v20 }
 0x270   :  { %v10653_v38 = vpop.f32.mrf.mxu0  ;;  %v10655_v44 = vpop.f32.mrf.mxu1 }
 0x272   :  { %v10657_v29 = vpop.f32.mrf.mxu0  ;;  %v10659_v7 = vpop.f32.mrf.mxu1 }
 0x274   :  { %v10661_v8 = vpop.f32.mrf.mxu0  ;;  %v10663_v27 = vpop.f32.mrf.mxu1 }
 0x275   :  { %7749 = vmatmul.mubr.msk.bf16.gmra.mxu0 %vm10255_vm15, %v11455_v20 }
 0x276   :  { %7781 = vmatmul.mubr.msk.bf16.gmra.mxu1 %vm10255_vm15, %v11455_v20  ;;  %7751 = vmatprep.mubr.msk.bf16.mxu0 %vm10270_vm12, %v11455_v20  ;;  %v10677_v24 = vpop.f32.mrf.mxu0  ;;  %v10679_v54 = vpop.f32.mrf.mxu1 }
 0x277   :  { %7783 = vmatprep.mubr.msk.bf16.mxu1 %vm10270_vm12, %v11455_v20 }
 0x278   :  { %v10681_v43 = vpop.f32.mrf.mxu0  ;;  %v10683_v3 = vpop.f32.mrf.mxu1 }
 0x27a   :  { %v10685_v36 = vpop.f32.mrf.mxu0  ;;  %v10687_v63 = vpop.f32.mrf.mxu1 }
 0x27c   :  { %v10689_v30 = vpop.f32.mrf.mxu0 }
 0x27d   :  { %v10691_v42 = vpop.f32.mrf.mxu1  ;;  %7753 = vmatmul.mubr.msk.bf16.gmra.mxu0 %vm10307_vm8, %v11455_v20 }
 0x27e   :  { %7785 = vmatmul.mubr.msk.bf16.gmra.mxu1 %vm10307_vm8, %v11455_v20  ;;  %7755 = vmatprep.mubr.msk.bf16.mxu0 %vm10322_vm2, %v11455_v20  ;;  %v10705_v9 = vpop.f32.mrf.mxu0 }
 0x27f   :  { %7787 = vmatprep.mubr.msk.bf16.mxu1 %vm10322_vm2, %v11455_v20  ;;  %v10707_v60 = vpop.f32.mrf.mxu1 }
 0x280   :  { %v10709_v62 = vpop.f32.mrf.mxu0 }
 0x281   :  { %v10711_v49 = vpop.f32.mrf.mxu1 }
 0x282   :  { %v10713_v2 = vpop.f32.mrf.mxu0 }
 0x283   :  { %v10715_v37 = vpop.f32.mrf.mxu1 }
 0x284   :  { %v10717_v33 = vpop.f32.mrf.mxu0 }
 0x285   :  { %v10719_v31 = vpop.f32.mrf.mxu1  ;;  %7757 = vmatmul.mubr.msk.bf16.gmra.mxu0 %vm10359_vm7, %v11455_v20 }
 0x286   :  { %7789 = vmatmul.mubr.msk.bf16.gmra.mxu1 %vm10359_vm7, %v11455_v20  ;;  %7759 = vmatprep.mubr.msk.bf16.mxu0 %vm10374_vm1, %v11455_v20  ;;  %v10733_v10 = vpop.f32.mrf.mxu0 }
 0x287   :  { %7791 = vmatprep.mubr.msk.bf16.mxu1 %vm10374_vm1, %v11455_v20  ;;  %v10735_v53 = vpop.f32.mrf.mxu1 }
 0x288   :  { %v10737_v51 = vpop.f32.mrf.mxu0 }
 0x289   :  { %v10739_v47 = vpop.f32.mrf.mxu1 }
 0x28a   :  { %v10741_v11 = vpop.f32.mrf.mxu0 }
 0x28b   :  { %v10743_v14 = vpop.f32.mrf.mxu1 }
 0x28c   :  { %v10745_v45 = vpop.f32.mrf.mxu0 }
 0x28d   :  { %v10747_v13 = vpop.f32.mrf.mxu1  ;;  %7761 = vmatmul.mubr.msk.bf16.gmra.mxu0 %vm10411_vm9, %v11455_v20 }
 0x28e   :  { %7793 = vmatmul.mubr.msk.bf16.gmra.mxu1 %vm10411_vm9, %v11455_v20  ;;  %7763 = vmatprep.mubr.msk.bf16.mxu0 %vm10426_vm13, %v11455_v20  ;;  %v10761_v34 = vpop.f32.mrf.mxu0 }
 0x28f   :  { %7795 = vmatprep.mubr.msk.bf16.mxu1 %vm10426_vm13, %v11455_v20  ;;  %v10763_v40 = vpop.f32.mrf.mxu1 }
 0x290   :  { %v10765_v32 = vpop.f32.mrf.mxu0 }
 0x291   :  { %v10767_v39 = vpop.f32.mrf.mxu1 }
 0x292   :  { %v10769_v12 = vpop.f32.mrf.mxu0 }
 0x293   :  { %v10771_v5 = vpop.f32.mrf.mxu1 }
 0x294   :  { %v10773_v17 = vpop.f32.mrf.mxu0 }
 0x295   :  { %v10775_v57 = vpop.f32.mrf.mxu1  ;;  %7765 = vmatmul.mubr.msk.bf16.gmra.mxu0 %vm11643_vm10, %v11455_v20 }
 0x296   :  { %7797 = vmatmul.mubr.msk.bf16.gmra.mxu1 %vm11643_vm10, %v11455_v20  ;;  %7767 = vmatprep.mubr.msk.bf16.mxu0 %vm11644_vm4, %v11455_v20  ;;  %v10789_v1 = vpop.f32.mrf.mxu0 }
 0x297   :  { %7799 = vmatprep.mubr.msk.bf16.mxu1 %vm11644_vm4, %v11455_v20  ;;  %v10791_v0 = vpop.f32.mrf.mxu1 }
 0x298   :  { %v10793_v50 = vpop.f32.mrf.mxu0 }
 0x299   :  { %11645 = vst [vmem:[#allocation29_spill] sm:$0xff] %v10793_v50  ;;  %v10795_v48 = vpop.f32.mrf.mxu1 }
 0x29a   :  { %11646 = vst [vmem:[#allocation30_spill] sm:$0xff] %v10795_v48  ;;  %v10797_v16 = vpop.f32.mrf.mxu0 }
 0x29b   :  { %11647 = vst [vmem:[#allocation31_spill] sm:$0xff] %v10797_v16  ;;  %v10799_v41 = vpop.f32.mrf.mxu1 }
 0x29c   :  { %11648 = vst [vmem:[#allocation32_spill] sm:$0xff] %v10799_v41  ;;  %v10801_v46 = vpop.f32.mrf.mxu0 }
 0x29d   :  { %11649 = vst [vmem:[#allocation33_spill] sm:$0xff] %v10801_v46  ;;  %v10803_v26 = vpop.f32.mrf.mxu1  ;;  %7769 = vmatmul.mubr.msk.bf16.gmra.mxu0 %vm10529_vm6, %v11455_v20 }
 0x29e   :  { %11650 = vst [vmem:[#allocation34_spill] sm:$0xff] %v10803_v26  ;;  %7801 = vmatmul.mubr.msk.bf16.gmra.mxu1 %vm10529_vm6, %v11455_v20  ;;  %7771 = vmatprep.mubr.msk.bf16.mxu0 %vm10555_vm14, %v11455_v20  ;;  %v10817_v6 = vpop.f32.mrf.mxu0 }
 0x29f   :  { %7803 = vmatprep.mubr.msk.bf16.mxu1 %vm10555_vm14, %v11455_v20  ;;  %11651 = vst [vmem:[#allocation35_spill] sm:$0xff] %v10817_v6  ;;  %v10819_v46 = vpop.f32.mrf.mxu1 }
 0x2a0   :  { %11652 = vst [vmem:[#allocation36_spill] sm:$0xff] %v10819_v46  ;;  %v10821_v26 = vpop.f32.mrf.mxu0 }
 0x2a1   :  { %11653 = vst [vmem:[#allocation37_spill] sm:$0xff] %v10821_v26  ;;  %v10823_v41 = vpop.f32.mrf.mxu1 }
 0x2a2   :  { %11654 = vst [vmem:[#allocation42_spill] sm:$0xff] %v10823_v41  ;;  %v10825_v16 = vpop.f32.mrf.mxu0 }
 0x2a3   :  { %11655 = vst [vmem:[#allocation43_spill] sm:$0xff] %v10825_v16  ;;  %v10827_v23 = vpop.f32.mrf.mxu1 }
 0x2a4   :  { %11656 = vst [vmem:[#allocation44_spill] sm:$0xff] %v10827_v23  ;;  %v10829_v48 = vpop.f32.mrf.mxu0 }
 0x2a5   :  { %11657 = vst [vmem:[#allocation45_spill] sm:$0xff] %v10829_v48  ;;  %v10831_v50 = vpop.f32.mrf.mxu1  ;;  %7773 = vmatmul.mubr.msk.bf16.gmra.mxu0 %vm10587_vm11, %v11455_v20 }
 0x2a6   :  { %11658 = vst [vmem:[#allocation46_spill] sm:$0xff] %v10831_v50  ;;  %7805 = vmatmul.mubr.msk.bf16.gmra.mxu1 %vm10587_vm11, %v11455_v20  ;;  %v10839_v35 = vpop.f32.mrf.mxu0 }
 0x2a7   :  { %11659 = vst [vmem:[#allocation47_spill] sm:$0xff] %v10839_v35  ;;  %v10841_v26 = vpop.f32.mrf.mxu1 }
 0x2a8   :  { %11660 = vst [vmem:[#allocation48_spill] sm:$0xff] %v10841_v26  ;;  %v10843_v41 = vpop.f32.mrf.mxu0 }
 0x2a9   :  { %11661 = vst [vmem:[#allocation49_spill] sm:$0xff] %v10843_v41  ;;  %v10845_v16 = vpop.f32.mrf.mxu1 }
 0x2aa   :  { %11662 = vst [vmem:[#allocation50_spill] sm:$0xff] %v10845_v16  ;;  %v10847_v23 = vpop.f32.mrf.mxu0 }
 0x2ab   :  { %11663 = vst [vmem:[#allocation51_spill] sm:$0xff] %v10847_v23  ;;  %v10849_v48 = vpop.f32.mrf.mxu1 }
 0x2ac   :  { %11664 = vst [vmem:[#allocation52_spill] sm:$0xff] %v10849_v48 }
 0x2ad   :  { %v4604_v50 = vpop.f32.mrf.mxu0  ;;  %v4717_v6 = vpop.f32.mrf.mxu1 }
 0x2ae   :  { %v10852_v46 = vadd.f32 %v4604_v50, %v10633_v59  ;;  %v10855_v4 = vadd.f32 %v4717_v6, %v10635_v19 }
 0x2af   :  { %v4606_v20 = vpop.f32.mrf.mxu0  ;;  %v4719_v26 = vpop.f32.mrf.mxu1 }
 0x2b0   :  { %v10858_v35 = vadd.f32 %v4606_v20, %v10649_v55  ;;  %v10861_v41 = vadd.f32 %v4719_v26, %v10651_v25 }
 0x2b1   :  { %v4608_v16 = vpop.f32.mrf.mxu0  ;;  %v4721_v48 = vpop.f32.mrf.mxu1 }
 0x2b2   :  { %v10864_v23 = vadd.f32 %v4608_v16, %v10653_v38  ;;  %v10867_v50 = vadd.f32 %v4721_v48, %v10655_v44 }
 0x2b3   :  { %v4610_v59 = vpop.f32.mrf.mxu0  ;;  %v4723_v6 = vpop.f32.mrf.mxu1 }
 0x2b4   :  { %v10870_v19 = vadd.f32 %v4610_v59, %v10657_v29  ;;  %v10873_v55 = vadd.f32 %v4723_v6, %v10659_v7 }
 0x2b5   :  { %v4614_v20 = vpop.f32.mrf.mxu0  ;;  %v4727_v25 = vpop.f32.mrf.mxu1 }
 0x2b6   :  { %v10876_v26 = vadd.f32 %v4614_v20, %v10661_v8  ;;  %v10879_v16 = vadd.f32 %v4727_v25, %v10663_v27 }
 0x2b7   :  { %v4616_v38 = vpop.f32.mrf.mxu0  ;;  %v4729_v44 = vpop.f32.mrf.mxu1 }
 0x2b8   :  { %v10882_v48 = vadd.f32 %v4616_v38, %v10677_v24  ;;  %v10885_v29 = vadd.f32 %v4729_v44, %v10679_v54 }
 0x2b9   :  { %v4618_v59 = vpop.f32.mrf.mxu0  ;;  %v4731_v6 = vpop.f32.mrf.mxu1 }
 0x2ba   :  { %v10888_v7 = vadd.f32 %v4618_v59, %v10681_v43  ;;  %v10891_v8 = vadd.f32 %v4731_v6, %v10683_v3 }
 0x2bb   :  { %v4620_v20 = vpop.f32.mrf.mxu0  ;;  %v4733_v25 = vpop.f32.mrf.mxu1 }
 0x2bc   :  { %v10894_v27 = vadd.f32 %v4620_v20, %v10685_v36  ;;  %v10897_v24 = vadd.f32 %v4733_v25, %v10687_v63 }
 0x2bd   :  { %v4624_v38 = vpop.f32.mrf.mxu0  ;;  %v4737_v44 = vpop.f32.mrf.mxu1 }
 0x2be   :  { %v10900_v54 = vadd.f32 %v4624_v38, %v10689_v30  ;;  %v10903_v43 = vadd.f32 %v4737_v44, %v10691_v42 }
 0x2bf   :  { %v4626_v59 = vpop.f32.mrf.mxu0  ;;  %v4739_v6 = vpop.f32.mrf.mxu1 }
 0x2c0   :  { %v10906_v3 = vadd.f32 %v4626_v59, %v10705_v9  ;;  %v10909_v36 = vadd.f32 %v4739_v6, %v10707_v60 }
 0x2c1   :  { %v4628_v20 = vpop.f32.mrf.mxu0  ;;  %v4741_v25 = vpop.f32.mrf.mxu1 }
 0x2c2   :  { %v10912_v63 = vadd.f32 %v4628_v20, %v10709_v62  ;;  %v10915_v30 = vadd.f32 %v4741_v25, %v10711_v49 }
 0x2c3   :  { %v4630_v38 = vpop.f32.mrf.mxu0  ;;  %v4743_v44 = vpop.f32.mrf.mxu1 }
 0x2c4   :  { %v10918_v42 = vadd.f32 %v4630_v38, %v10713_v2  ;;  %v10921_v9 = vadd.f32 %v4743_v44, %v10715_v37 }
 0x2c5   :  { %v4634_v59 = vpop.f32.mrf.mxu0  ;;  %v4747_v6 = vpop.f32.mrf.mxu1 }
 0x2c6   :  { %v10924_v60 = vadd.f32 %v4634_v59, %v10717_v33  ;;  %v10927_v62 = vadd.f32 %v4747_v6, %v10719_v31 }
 0x2c7   :  { %v4636_v20 = vpop.f32.mrf.mxu0  ;;  %v4749_v25 = vpop.f32.mrf.mxu1 }
 0x2c8   :  { %11665 = vst [vmem:[#allocation53_spill] sm:$0xff] %v10924_v60  ;;  %11666 = vst [vmem:[#allocation54_spill] sm:$0xff] %v10927_v62  ;;  %v10930_v49 = vadd.f32 %v4636_v20, %v10733_v10  ;;  %v10933_v2 = vadd.f32 %v4749_v25, %v10735_v53  ;;  %v4800_v62 = vld [vmem:[#allocation8 + $0x20] sm:$0xff]  ;;  %v4802_v60 = vld [vmem:[#allocation8 + $0x30] sm:$0xff] }
 0x2c9   :  { %v4638_v38 = vpop.f32.mrf.mxu0  ;;  %v4751_v44 = vpop.f32.mrf.mxu1 }
 0x2ca   :  { %11667 = vst [vmem:[#allocation55_spill] sm:$0xff] %v10930_v49  ;;  %11668 = vst [vmem:[#allocation56_spill] sm:$0xff] %v10933_v2  ;;  %v10936_v37 = vadd.f32 %v4638_v38, %v10737_v51  ;;  %v10939_v33 = vadd.f32 %v4751_v44, %v10739_v47  ;;  %v3235_v2 = vld [vmem:[#allocation8 + $0x108] sm:$0xff]  ;;  %v3237_v44 = vld [vmem:[#allocation8 + $0x118] sm:$0xff] }
 0x2cb   :  { %v4640_v59 = vpop.f32.mrf.mxu0  ;;  %v4753_v6 = vpop.f32.mrf.mxu1  ;;  %v3299_v47 = vadd.f32 %v3235_v2, %v10446_v22  ;;  %v3239_v2 = vld [vmem:[#allocation8 + $0x128] sm:$0xff] }
 0x2cc   :  { %11669 = vst [vmem:[#allocation57_spill] sm:$0xff] %v10936_v37  ;;  %11670 = vst [vmem:[#allocation58_spill] sm:$0xff] %v10939_v33  ;;  %v10942_v31 = vadd.f32 %v4640_v59, %v10741_v11  ;;  %v10945_v10 = vadd.f32 %v4753_v6, %v10743_v14  ;;  %v3238_v14 = vld [vmem:[#allocation8 + $0x120] sm:$0xff] }
 0x2cd   :  { %v4644_v20 = vpop.f32.mrf.mxu0  ;;  %v4757_v25 = vpop.f32.mrf.mxu1 }
 0x2ce   :  { %11671 = vst [vmem:[#allocation59_spill] sm:$0xff] %v10942_v31  ;;  %11672 = vst [vmem:[#allocation60_spill] sm:$0xff] %v10945_v10  ;;  %v10948_v53 = vadd.f32 %v4644_v20, %v10745_v45  ;;  %v10951_v51 = vadd.f32 %v4757_v25, %v10747_v13  ;;  %v3301_v31 = vadd.f32 %v3237_v44, %v10453_v28  ;;  %v3240_v20 = vld [vmem:[#allocation8 + $0x130] sm:$0xff] }
 0x2cf   :  { %v4646_v38 = vpop.f32.mrf.mxu0  ;;  %v4759_v59 = vpop.f32.mrf.mxu1  ;;  %v3302_v45 = vadd.f32 %v3238_v14, %v10456_v52  ;;  %v3304_v22 = vadd.f32 %v3240_v20, %v10459_v58 }
 0x2d0   :  { %11673 = vst [vmem:[#allocation61_spill] sm:$0xff] %v10948_v53  ;;  %11674 = vst [vmem:[#allocation62_spill] sm:$0xff] %v10951_v51  ;;  %v4647_v11 = vadd.f32 %v4646_v38, %v10761_v34  ;;  %v4760_v6 = vadd.f32 %v4759_v59, %v10763_v40  ;;  %v3303_v38 = vadd.f32 %v3239_v2, %v10476_v56  ;;  %v3241_v40 = vld [vmem:[#allocation8 + $0x138] sm:$0xff] }
 0x2d1   :  { %v4648_v10 = vpop.f32.mrf.mxu0  ;;  %v4761_v25 = vpop.f32.mrf.mxu1 }
 0x2d2   :  { %v10958_v53 = vadd.f32 %v4647_v11, %v3299_v47  ;;  %v4649_v13 = vadd.f32 %v4648_v10, %v10765_v32  ;;  %v10962_v51 = vadd.f32 %v4760_v6, %v3301_v31  ;;  %v4762_v34 = vadd.f32 %v4761_v25, %v10767_v39  ;;  %v3242_v32 = vld [vmem:[#allocation8 + $0x140] sm:$0xff]  ;;  %v3244_v39 = vld [vmem:[#allocation8 + $0x150] sm:$0xff] }
 0x2d3   :  { %v4650_v28 = vpop.f32.mrf.mxu0  ;;  %v4763_v47 = vpop.f32.mrf.mxu1  ;;  %v3305_v11 = vadd.f32 %v3241_v40, %v10479_v21  ;;  %v3306_v59 = vadd.f32 %v3242_v32, %v10485_v18 }
 0x2d4   :  { %11675 = vst [vmem:[#allocation63_spill] sm:$0xff] %v10958_v53  ;;  %11676 = vst [vmem:[#allocation64_spill] sm:$0xff] %v10962_v51  ;;  %v10966_v44 = vadd.f32 %v4649_v13, %v3302_v45  ;;  %v4651_v52 = vadd.f32 %v4650_v28, %v10769_v12  ;;  %v10970_v10 = vadd.f32 %v4762_v34, %v3304_v22  ;;  %v3243_v12 = vld [vmem:[#allocation8 + $0x148] sm:$0xff]  ;;  %v11682_v34 = vld [vmem:[#allocation38_spill] sm:$0xff] }
 0x2d5   :  { %v4764_v58 = vadd.f32 %v4763_v47, %v10771_v5  ;;  %v4654_v31 = vpop.f32.mrf.mxu0  ;;  %v4767_v6 = vpop.f32.mrf.mxu1  ;;  %v3308_v45 = vadd.f32 %v3244_v39, %v10488_v61  ;;  %v3307_v25 = vadd.f32 %v3243_v12, %v10508_v15  ;;  %v3245_v5 = vld [vmem:[#allocation8 + $0x158] sm:$0xff]  ;;  %v11686_v15 = vld [vmem:[#allocation29_spill] sm:$0xff] }
 0x2d6   :  { %11677 = vst [vmem:[#allocation65_spill] sm:$0xff] %v10966_v44  ;;  %11678 = vst [vmem:[#allocation66_spill] sm:$0xff] %v10970_v10  ;;  %v10974_v14 = vadd.f32 %v4651_v52, %v3303_v38  ;;  %v4655_v56 = vadd.f32 %v4654_v31, %v10773_v17  ;;  %v4768_v21 = vadd.f32 %v4767_v6, %v10775_v57  ;;  %v3246_v17 = vld [vmem:[#allocation8 + $0x160] sm:$0xff]  ;;  %v11684_v52 = vld [vmem:[#allocation39_spill] sm:$0xff] }
 0x2d7   :  { %v10978_v20 = vadd.f32 %v4764_v58, %v3305_v11  ;;  %v4656_v13 = vpop.f32.mrf.mxu0  ;;  %v4769_v2 = vpop.f32.mrf.mxu1  ;;  %v3309_v28 = vadd.f32 %v3245_v5, %v11682_v34  ;;  %v3310_v47 = vadd.f32 %v3246_v17, %v11684_v52  ;;  %v3248_v57 = vld [vmem:[#allocation8 + $0x170] sm:$0xff]  ;;  %v11687_v31 = vld [vmem:[#allocation40_spill] sm:$0xff]  ;;  %v11690_v12 = vld [vmem:[#allocation41_spill] sm:$0xff] }
 0x2d8   :  { %11679 = vst [vmem:[#allocation67_spill] sm:$0xff] %v10974_v14  ;;  %v10982_v22 = vadd.f32 %v4655_v56, %v3306_v59  ;;  %v4657_v18 = vadd.f32 %v4656_v13, %v10789_v1  ;;  %v10986_v38 = vadd.f32 %v4768_v21, %v3308_v45  ;;  %v4770_v61 = vadd.f32 %v4769_v2, %v10791_v0  ;;  %v3247_v1 = vld [vmem:[#allocation8 + $0x168] sm:$0xff]  ;;  %v11689_v56 = vld [vmem:[#allocation30_spill] sm:$0xff]  ;;  %v3249_v0 = vld [vmem:[#allocation8 + $0x178] sm:$0xff] }
 0x2d9   :  { %11680 = vst [vmem:[#allocation68_spill] sm:$0xff] %v10978_v20  ;;  %v4658_v40 = vpop.f32.mrf.mxu0  ;;  %v4771_v58 = vpop.f32.mrf.mxu1  ;;  %v3312_v59 = vadd.f32 %v3248_v57, %v11687_v31  ;;  %v3311_v21 = vadd.f32 %v3247_v1, %v11690_v12  ;;  %v11692_v5 = vld [vmem:[#allocation31_spill] sm:$0xff]  ;;  %v3250_v17 = vld [vmem:[#allocation8 + $0x180] sm:$0xff]  ;;  %v11698_v1 = vld [vmem:[#allocation33_spill] sm:$0xff] }
 0x2da   :  { %11681 = vst [vmem:[#allocation69_spill] sm:$0xff] %v10982_v22  ;;  %11683 = vst [vmem:[#allocation38_spill] sm:$0xff] %v10986_v38  ;;  %v10990_v11 = vadd.f32 %v4657_v18, %v3307_v25  ;;  %v4659_v32 = vadd.f32 %v4658_v40, %v11686_v15  ;;  %v10994_v39 = vadd.f32 %v4770_v61, %v3309_v28  ;;  %v11693_v18 = vld [vmem:[#allocation12_spill] sm:$0xff]  ;;  %v11696_v61 = vld [vmem:[#allocation13_spill] sm:$0xff] }
 0x2db   :  { %v4772_v6 = vadd.f32 %v4771_v58, %v11689_v56  ;;  %v4660_v45 = vpop.f32.mrf.mxu0  ;;  %v4773_v25 = vpop.f32.mrf.mxu1  ;;  %v3313_v34 = vadd.f32 %v3249_v0, %v11693_v18  ;;  %v11695_v52 = vld [vmem:[#allocation32_spill] sm:$0xff]  ;;  %v3314_v15 = vadd.f32 %v3250_v17, %v11696_v61  ;;  %v3252_v58 = vld [vmem:[#allocation8 + $0x190] sm:$0xff]  ;;  %v11704_v17 = vld [vmem:[#allocation35_spill] sm:$0xff] }
 0x2dc   :  { %11685 = vst [vmem:[#allocation39_spill] sm:$0xff] %v10990_v11  ;;  %11688 = vst [vmem:[#allocation29_spill] sm:$0xff] %v10994_v39  ;;  %v10998_v13 = vadd.f32 %v4659_v32, %v3310_v47  ;;  %v4661_v2 = vadd.f32 %v4660_v45, %v11692_v5  ;;  %v4774_v57 = vadd.f32 %v4773_v25, %v11695_v52  ;;  %v11699_v32 = vld [vmem:[#allocation14_spill] sm:$0xff]  ;;  %v3251_v45 = vld [vmem:[#allocation8 + $0x188] sm:$0xff] }
 0x2dd   :  { %v11002_v40 = vadd.f32 %v4772_v6, %v3312_v59  ;;  %v4664_v28 = vpop.f32.mrf.mxu0  ;;  %v4777_v47 = vpop.f32.mrf.mxu1  ;;  %v3316_v12 = vadd.f32 %v3252_v58, %v11699_v32  ;;  %v11701_v0 = vld [vmem:[#allocation34_spill] sm:$0xff]  ;;  %v11702_v6 = vld [vmem:[#allocation15_spill] sm:$0xff]  ;;  %v11707_v58 = vld [vmem:[#allocation36_spill] sm:$0xff] }
 0x2de   :  { %11691 = vst [vmem:[#allocation40_spill] sm:$0xff] %v10998_v13  ;;  %v11006_v31 = vadd.f32 %v4661_v2, %v3311_v21  ;;  %v4665_v56 = vadd.f32 %v4664_v28, %v11698_v1  ;;  %v11010_v5 = vadd.f32 %v4774_v57, %v3313_v34  ;;  %v4778_v18 = vadd.f32 %v4777_v47, %v11701_v0  ;;  %v3253_v25 = vld [vmem:[#allocation8 + $0x198] sm:$0xff]  ;;  %v11705_v2 = vld [vmem:[#allocation16_spill] sm:$0xff]  ;;  %v11708_v57 = vld [vmem:[#allocation17_spill] sm:$0xff] }
 0x2df   :  { %11694 = vst [vmem:[#allocation30_spill] sm:$0xff] %v11002_v40  ;;  %v4666_v59 = vpop.f32.mrf.mxu0  ;;  %v3315_v40 = vadd.f32 %v3251_v45, %v11702_v6  ;;  %v4779_v21 = vpop.f32.mrf.mxu1  ;;  %v3254_v28 = vld [vmem:[#allocation8 + $0x1a0] sm:$0xff]  ;;  %v3256_v47 = vld [vmem:[#allocation8 + $0x1b0] sm:$0xff]  ;;  %v11710_v45 = vld [vmem:[#allocation37_spill] sm:$0xff] }
 0x2e0   :  { %11697 = vst [vmem:[#allocation41_spill] sm:$0xff] %v11006_v31  ;;  %11700 = vst [vmem:[#allocation31_spill] sm:$0xff] %v11010_v5  ;;  %v11014_v52 = vadd.f32 %v4665_v56, %v3314_v15  ;;  %v4667_v61 = vadd.f32 %v4666_v59, %v11704_v17  ;;  %v3317_v31 = vadd.f32 %v3253_v25, %v11705_v2  ;;  %v11711_v56 = vld [vmem:[#allocation18_spill] sm:$0xff]  ;;  %v3255_v59 = vld [vmem:[#allocation8 + $0x1a8] sm:$0xff] }
 0x2e1   :  { %v11018_v1 = vadd.f32 %v4778_v18, %v3316_v12  ;;  %v4780_v32 = vadd.f32 %v4779_v21, %v11707_v58  ;;  %v4668_v34 = vpop.f32.mrf.mxu0  ;;  %v3318_v5 = vadd.f32 %v3254_v28, %v11708_v57  ;;  %v4781_v15 = vpop.f32.mrf.mxu1  ;;  %v11713_v25 = vld [vmem:[#allocation42_spill] sm:$0xff]  ;;  %v11714_v18 = vld [vmem:[#allocation19_spill] sm:$0xff] }
 0x2e2   :  { %11703 = vst [vmem:[#allocation12_spill] sm:$0xff] %v11014_v52  ;;  %v11022_v0 = vadd.f32 %v4667_v61, %v3315_v40  ;;  %v4669_v6 = vadd.f32 %v4668_v34, %v11710_v45  ;;  %v3320_v52 = vadd.f32 %v3256_v47, %v11711_v56  ;;  %v4782_v2 = vadd.f32 %v4781_v15, %v11713_v25  ;;  %v3257_v21 = vld [vmem:[#allocation8 + $0x1b8] sm:$0xff]  ;;  %v11717_v61 = vld [vmem:[#allocation20_spill] sm:$0xff]  ;;  %v3260_v15 = vld [vmem:[#allocation8 + $0x1d0] sm:$0xff] }
 0x2e3   :  { %11706 = vst [vmem:[#allocation32_spill] sm:$0xff] %v11018_v1  ;;  %v11026_v17 = vadd.f32 %v4780_v32, %v3317_v31  ;;  %v4670_v12 = vpop.f32.mrf.mxu0  ;;  %v3319_v1 = vadd.f32 %v3255_v59, %v11714_v18  ;;  %v11716_v28 = vld [vmem:[#allocation43_spill] sm:$0xff]  ;;  %v4783_v40 = vpop.f32.mrf.mxu1  ;;  %v3258_v34 = vld [vmem:[#allocation8 + $0x1c0] sm:$0xff]  ;;  %v11720_v32 = vld [vmem:[#allocation21_spill] sm:$0xff] }
 0x2e4   :  { %11709 = vst [vmem:[#allocation13_spill] sm:$0xff] %v11022_v0  ;;  %v11030_v58 = vadd.f32 %v4669_v6, %v3318_v5  ;;  %v4671_v57 = vadd.f32 %v4670_v12, %v11716_v28  ;;  %v3321_v0 = vadd.f32 %v3257_v21, %v11717_v61  ;;  %v11034_v45 = vadd.f32 %v4782_v2, %v3320_v52  ;;  %v11719_v47 = vld [vmem:[#allocation44_spill] sm:$0xff]  ;;  %v11722_v59 = vld [vmem:[#allocation45_spill] sm:$0xff]  ;;  %v11723_v6 = vld [vmem:[#allocation22_spill] sm:$0xff] }
 0x2e5   :  { %11712 = vst [vmem:[#allocation33_spill] sm:$0xff] %v11026_v17  ;;  %v4784_v56 = vadd.f32 %v4783_v40, %v11719_v47  ;;  %v4674_v31 = vpop.f32.mrf.mxu0  ;;  %v3322_v17 = vadd.f32 %v3258_v34, %v11720_v32  ;;  %v4787_v5 = vpop.f32.mrf.mxu1  ;;  %v3259_v12 = vld [vmem:[#allocation8 + $0x1c8] sm:$0xff]  ;;  %v11725_v21 = vld [vmem:[#allocation46_spill] sm:$0xff]  ;;  %v11726_v2 = vld [vmem:[#allocation23_spill] sm:$0xff] }
 0x2e6   :  { %11715 = vst [vmem:[#allocation14_spill] sm:$0xff] %v11030_v58  ;;  %11718 = vst [vmem:[#allocation34_spill] sm:$0xff] %v11034_v45  ;;  %v11038_v25 = vadd.f32 %v4671_v57, %v3319_v1  ;;  %v4675_v18 = vadd.f32 %v4674_v31, %v11722_v59  ;;  %v3324_v58 = vadd.f32 %v3260_v15, %v11723_v6  ;;  %v3261_v40 = vld [vmem:[#allocation8 + $0x1d8] sm:$0xff]  ;;  %v11729_v57 = vld [vmem:[#allocation24_spill] sm:$0xff] }
 0x2e7   :  { %v11042_v28 = vadd.f32 %v4784_v56, %v3321_v0  ;;  %v4788_v61 = vadd.f32 %v4787_v5, %v11725_v21  ;;  %v4676_v52 = vpop.f32.mrf.mxu0  ;;  %v3323_v45 = vadd.f32 %v3259_v12, %v11726_v2  ;;  %v11728_v34 = vld [vmem:[#allocation47_spill] sm:$0xff]  ;;  %v4789_v1 = vpop.f32.mrf.mxu1  ;;  %v3262_v31 = vld [vmem:[#allocation8 + $0x1e0] sm:$0xff]  ;;  %v11732_v56 = vld [vmem:[#allocation25_spill] sm:$0xff] }
 0x2e8   :  { %11721 = vst [vmem:[#allocation15_spill] sm:$0xff] %v11038_v25  ;;  %v11046_v47 = vadd.f32 %v4675_v18, %v3322_v17  ;;  %v4677_v32 = vadd.f32 %v4676_v52, %v11728_v34  ;;  %v3325_v25 = vadd.f32 %v3261_v40, %v11729_v57  ;;  %v11731_v15 = vld [vmem:[#allocation48_spill] sm:$0xff]  ;;  %v3264_v5 = vld [vmem:[#allocation8 + $0x1f0] sm:$0xff]  ;;  %v11734_v12 = vld [vmem:[#allocation49_spill] sm:$0xff] }
 0x2e9   :  { %11724 = vst [vmem:[#allocation35_spill] sm:$0xff] %v11042_v28  ;;  %v11050_v59 = vadd.f32 %v4788_v61, %v3324_v58  ;;  %v4790_v6 = vadd.f32 %v4789_v1, %v11731_v15  ;;  %v4678_v0 = vpop.f32.mrf.mxu0  ;;  %v3326_v28 = vadd.f32 %v3262_v31, %v11732_v56  ;;  %v4791_v17 = vpop.f32.mrf.mxu1  ;;  %v11735_v18 = vld [vmem:[#allocation26_spill] sm:$0xff]  ;;  %v3263_v52 = vld [vmem:[#allocation8 + $0x1e8] sm:$0xff]  ;;  %v11738_v61 = vld [vmem:[#allocation27_spill] sm:$0xff] }
 0x2ea   :  { %11727 = vst [vmem:[#allocation16_spill] sm:$0xff] %v11046_v47  ;;  %v11054_v21 = vadd.f32 %v4677_v32, %v3323_v45  ;;  %v4679_v2 = vadd.f32 %v4678_v0, %v11734_v12  ;;  %v3328_v47 = vadd.f32 %v3264_v5, %v11735_v18  ;;  %v11737_v40 = vld [vmem:[#allocation50_spill] sm:$0xff]  ;;  %v3265_v1 = vld [vmem:[#allocation8 + $0x1f8] sm:$0xff]  ;;  %v11741_v32 = vld [vmem:[#allocation28_spill] sm:$0xff] }
 0x2eb   :  { %11730 = vst [vmem:[#allocation36_spill] sm:$0xff] %v11050_v59  ;;  %v11058_v34 = vadd.f32 %v4790_v6, %v3325_v25  ;;  %v4792_v57 = vadd.f32 %v4791_v17, %v11737_v40  ;;  %v4680_v58 = vpop.f32.mrf.mxu0  ;;  %v3327_v59 = vadd.f32 %v3263_v52, %v11738_v61  ;;  %v11740_v31 = vld [vmem:[#allocation51_spill] sm:$0xff]  ;;  %v4793_v45 = vpop.f32.mrf.mxu1  ;;  %v11743_v12 = vld [vmem:[#allocation52_spill] sm:$0xff] }
 0x2ec   :  { %11733 = vst [vmem:[#allocation17_spill] sm:$0xff] %v11054_v21  ;;  %v11062_v15 = vadd.f32 %v4679_v2, %v3326_v28  ;;  %v4681_v56 = vadd.f32 %v4680_v58, %v11740_v31  ;;  %v3329_v21 = vadd.f32 %v3265_v1, %v11741_v32  ;;  %v4794_v5 = vadd.f32 %v4793_v45, %v11743_v12 }
 0x2ed   :  { %11736 = vst [vmem:[#allocation37_spill] sm:$0xff] %v11058_v34  ;;  %v11066_v0 = vadd.f32 %v4792_v57, %v3328_v47  ;;  %v11069_v18 = vpop.f32.mrf.mxu0  ;;  %v11073_v6 = vpop.f32.mrf.mxu1 }
 0x2ee   :  { %11739 = vst [vmem:[#allocation18_spill] sm:$0xff] %v11062_v15  ;;  %v11071_v25 = vadd.f32 %v4681_v56, %v3327_v59  ;;  %v11075_v17 = vadd.f32 %v4794_v5, %v3329_v21 }
 0x2ef   :  { %11742 = vst [vmem:[#allocation42_spill] sm:$0xff] %v11066_v0  ;;  %v11077_v52 = vpop.f32.mrf.mxu0  ;;  %v11079_v28 = vpop.f32.mrf.mxu1 }
 0x2f0   :  { %11744 = vst [vmem:[#allocation19_spill] sm:$0xff] %v11071_v25  ;;  %11745 = vst [vmem:[#allocation43_spill] sm:$0xff] %v11075_v17 }
 0x2f1   :  { %v11081_v2 = vpop.f32.mrf.mxu0  ;;  %v11083_v40 = vpop.f32.mrf.mxu1 }
 0x2f3   :  { %v11085_v47 = vpop.f32.mrf.mxu0  ;;  %v11087_v57 = vpop.f32.mrf.mxu1 }
 0x2f5   :  { %v11089_v58 = vpop.f32.mrf.mxu0 }
 0x2f6   :  { %v11091_v59 = vpop.f32.mrf.mxu1 }
 0x2f7   :  { %v11093_v61 = vpop.f32.mrf.mxu0 }
 0x2f8   :  { %v11095_v21 = vpop.f32.mrf.mxu1 }
 0x2f9   :  { %v11097_v1 = vpop.f32.mrf.mxu0 }
 0x2fa   :  { %v11099_v31 = vpop.f32.mrf.mxu1 }
 0x2fb   :  { %v11101_v56 = vpop.f32.mrf.mxu0 }
 0x2fc   :  { %v11103_v45 = vpop.f32.mrf.mxu1 }
 0x2fd   :  { %v11105_v32 = vpop.f32.mrf.mxu0 }
 0x2fe   :  { %v11107_v12 = vpop.f32.mrf.mxu1 }
 0x2ff   :  { %v11109_v5 = vpop.f32.mrf.mxu0 }
 0x300   :  { %v11111_v17 = vpop.f32.mrf.mxu1 }
 0x301   :  { %v11113_v25 = vpop.f32.mrf.mxu0 }
 0x302   :  { %v11115_v0 = vpop.f32.mrf.mxu1 }
 0x303   :  { %v11117_v15 = vpop.f32.mrf.mxu0 }
 0x304   :  { %11746 = vst [vmem:[#allocation20_spill] sm:$0xff] %v11117_v15  ;;  %v11119_v34 = vpop.f32.mrf.mxu1 }
 0x305   :  { %11747 = vst [vmem:[#allocation44_spill] sm:$0xff] %v11119_v34  ;;  %v11121_v13 = vpop.f32.mrf.mxu0 }
 0x306   :  { %11748 = vst [vmem:[#allocation21_spill] sm:$0xff] %v11121_v13  ;;  %v11123_v39 = vpop.f32.mrf.mxu1 }
 0x307   :  { %11749 = vst [vmem:[#allocation45_spill] sm:$0xff] %v11123_v39  ;;  %v11125_v11 = vpop.f32.mrf.mxu0  ;;  %v4797_v39 = vld [vmem:[#allocation8 + $0x8] sm:$0xff] }
 0x308   :  { %11750 = vst [vmem:[#allocation22_spill] sm:$0xff] %v11125_v11  ;;  %v11127_v38 = vpop.f32.mrf.mxu1 }
 0x309   :  { %11751 = vst [vmem:[#allocation46_spill] sm:$0xff] %v11127_v38  ;;  %v11129_v22 = vpop.f32.mrf.mxu0 }
 0x30a   :  { %11752 = vst [vmem:[#allocation23_spill] sm:$0xff] %v11129_v22  ;;  %v11131_v20 = vpop.f32.mrf.mxu1 }
 0x30b   :  { %11753 = vst [vmem:[#allocation47_spill] sm:$0xff] %v11131_v20  ;;  %v11133_v14 = vpop.f32.mrf.mxu0 }
 0x30c   :  { %11754 = vst [vmem:[#allocation24_spill] sm:$0xff] %v11133_v14  ;;  %v11135_v10 = vpop.f32.mrf.mxu1 }
 0x30d   :  { %11755 = vst [vmem:[#allocation48_spill] sm:$0xff] %v11135_v10  ;;  %v11137_v44 = vpop.f32.mrf.mxu0 }
 0x30e   :  { %11756 = vst [vmem:[#allocation25_spill] sm:$0xff] %v11137_v44  ;;  %v11139_v51 = vpop.f32.mrf.mxu1 }
 0x30f   :  { %11757 = vst [vmem:[#allocation49_spill] sm:$0xff] %v11139_v51  ;;  %v11141_v53 = vpop.f32.mrf.mxu0 }
 0x310   :  { %11758 = vst [vmem:[#allocation26_spill] sm:$0xff] %v11141_v53  ;;  %v11143_v33 = vpop.f32.mrf.mxu1 }
 0x311   :  { %11759 = vst [vmem:[#allocation50_spill] sm:$0xff] %v11143_v33  ;;  %v11145_v37 = vpop.f32.mrf.mxu0 }
 0x312   :  { %11760 = vst [vmem:[#allocation27_spill] sm:$0xff] %v11145_v37  ;;  %v11147_v11 = vpop.f32.mrf.mxu1 }
 0x313   :  { %11761 = vst [vmem:[#allocation51_spill] sm:$0xff] %v11147_v11  ;;  %v11149_v38 = vpop.f32.mrf.mxu0 }
 0x314   :  { %11762 = vst [vmem:[#allocation28_spill] sm:$0xff] %v11149_v38  ;;  %v11151_v22 = vpop.f32.mrf.mxu1 }
 0x315   :  { %11763 = vst [vmem:[#allocation52_spill] sm:$0xff] %v11151_v22  ;;  %v11153_v20 = vpop.f32.mrf.mxu0 }
 0x316   :  { %11764 = vst [vmem:[#allocation70_spill] sm:$0xff] %v11153_v20  ;;  %v11155_v14 = vpop.f32.mrf.mxu1 }
 0x317   :  { %11765 = vst [vmem:[#allocation71_spill] sm:$0xff] %v11155_v14  ;;  %v11157_v10 = vpop.f32.mrf.mxu0 }
 0x318   :  { %11766 = vst [vmem:[#allocation72_spill] sm:$0xff] %v11157_v10  ;;  %v11159_v44 = vpop.f32.mrf.mxu1 }
 0x319   :  { %11767 = vst [vmem:[#allocation73_spill] sm:$0xff] %v11159_v44  ;;  %v11161_v51 = vpop.f32.mrf.mxu0 }
 0x31a   :  { %11768 = vst [vmem:[#allocation74_spill] sm:$0xff] %v11161_v51  ;;  %v11163_v53 = vpop.f32.mrf.mxu1 }
 0x31b   :  { %11769 = vst [vmem:[#allocation75_spill] sm:$0xff] %v11163_v53  ;;  %v11165_v33 = vpop.f32.mrf.mxu0 }
 0x31c   :  { %11770 = vst [vmem:[#allocation76_spill] sm:$0xff] %v11165_v33  ;;  %v11167_v37 = vpop.f32.mrf.mxu1 }
 0x31d   :  { %11771 = vst [vmem:[#allocation77_spill] sm:$0xff] %v11167_v37  ;;  %v11169_v11 = vpop.f32.mrf.mxu0 }
 0x31e   :  { %11772 = vst [vmem:[#allocation78_spill] sm:$0xff] %v11169_v11  ;;  %v11171_v38 = vpop.f32.mrf.mxu1 }
 0x31f   :  { %11773 = vst [vmem:[#allocation79_spill] sm:$0xff] %v11171_v38  ;;  %v11173_v22 = vpop.f32.mrf.mxu0 }
 0x320   :  { %11774 = vst [vmem:[#allocation80_spill] sm:$0xff] %v11173_v22  ;;  %v11175_v20 = vpop.f32.mrf.mxu1 }
 0x321   :  { %11775 = vst [vmem:[#allocation81_spill] sm:$0xff] %v11175_v20  ;;  %v11177_v14 = vpop.f32.mrf.mxu0 }
 0x322   :  { %11776 = vst [vmem:[#allocation82_spill] sm:$0xff] %v11177_v14  ;;  %v11179_v10 = vpop.f32.mrf.mxu1 }
 0x323   :  { %11777 = vst [vmem:[#allocation83_spill] sm:$0xff] %v11179_v10  ;;  %v11181_v44 = vpop.f32.mrf.mxu0  ;;  %v4796_v10 = vld [vmem:[#allocation8] sm:$0xff] }
 0x324   :  { %11778 = vst [vmem:[#allocation84_spill] sm:$0xff] %v11181_v44  ;;  %v11183_v51 = vpop.f32.mrf.mxu1  ;;  %v4798_v44 = vld [vmem:[#allocation8 + $0x10] sm:$0xff] }
 0x325   :  { %11779 = vst [vmem:[#allocation85_spill] sm:$0xff] %v11183_v51  ;;  %v11185_v53 = vpop.f32.mrf.mxu0 }
 0x326   :  { %11780 = vst [vmem:[#allocation86_spill] sm:$0xff] %v11185_v53  ;;  %v11187_v33 = vpop.f32.mrf.mxu1  ;;  %v4860_v53 = vadd.f32 %v4796_v10, %v10852_v46 }
 0x327   :  { %11781 = vst [vmem:[#allocation87_spill] sm:$0xff] %v11187_v33  ;;  %v11189_v37 = vpop.f32.mrf.mxu0  ;;  %v4862_v33 = vadd.f32 %v4798_v44, %v10855_v4  ;;  %v4864_v44 = vadd.f32 %v4800_v62, %v10864_v23  ;;  %v4804_v62 = vld [vmem:[#allocation8 + $0x40] sm:$0xff] }
 0x328   :  { %11782 = vst [vmem:[#allocation88_spill] sm:$0xff] %v11189_v37  ;;  %v11191_v11 = vpop.f32.mrf.mxu1  ;;  %v4799_v37 = vld [vmem:[#allocation8 + $0x18] sm:$0xff] }
 0x329   :  { %11783 = vst [vmem:[#allocation89_spill] sm:$0xff] %v11191_v11  ;;  %v11193_v38 = vpop.f32.mrf.mxu0 }
 0x32a   :  { %11784 = vst [vmem:[#allocation90_spill] sm:$0xff] %v11193_v38  ;;  %v11195_v22 = vpop.f32.mrf.mxu1 }
 0x32b   :  { %11785 = vst [vmem:[#allocation91_spill] sm:$0xff] %v11195_v22  ;;  %v11197_v20 = vpop.f32.mrf.mxu0  ;;  %v4861_v22 = vadd.f32 %v4797_v39, %v10858_v35  ;;  %v4803_v35 = vld [vmem:[#allocation8 + $0x38] sm:$0xff] }
 0x32c   :  { %11786 = vst [vmem:[#allocation92_spill] sm:$0xff] %v11197_v20  ;;  %v11199_v14 = vpop.f32.mrf.mxu1  ;;  %v4863_v20 = vadd.f32 %v4799_v37, %v10861_v41 }
 0x32d   :  { %11787 = vst [vmem:[#allocation93_spill] sm:$0xff] %v11199_v14  ;;  %v6198_v49 = vpop.f32.mrf.mxu0 }
 0x32e   :  { %v6311_v51 = vpop.f32.mrf.mxu1  ;;  %v6199_v11 = vadd.f32 %v6198_v49, %v11069_v18  ;;  %v4866_v49 = vadd.f32 %v4802_v60, %v10867_v50  ;;  %v4801_v18 = vld [vmem:[#allocation8 + $0x28] sm:$0xff]  ;;  %v4806_v50 = vld [vmem:[#allocation8 + $0x50] sm:$0xff] }
 0x32f   :  { %v6312_v38 = vadd.f32 %v6311_v51, %v11073_v6  ;;  %v6200_v13 = vpop.f32.mrf.mxu0  ;;  %v4805_v6 = vld [vmem:[#allocation8 + $0x48] sm:$0xff] }
 0x330   :  { %v6313_v14 = vpop.f32.mrf.mxu1  ;;  %v6454_v34 = vadd.f32 %v6199_v11, %v4860_v53  ;;  %v6201_v46 = vadd.f32 %v6200_v13, %v11077_v52  ;;  %v4865_v53 = vadd.f32 %v4801_v18, %v10870_v19 }
 0x331   :  { %v6456_v15 = vadd.f32 %v6312_v38, %v4862_v33  ;;  %v6314_v4 = vadd.f32 %v6313_v14, %v11079_v28  ;;  %v6202_v10 = vpop.f32.mrf.mxu0  ;;  %v4867_v14 = vadd.f32 %v4803_v35, %v10873_v55  ;;  %v4807_v55 = vld [vmem:[#allocation8 + $0x58] sm:$0xff]  ;;  %v4809_v35 = vld [vmem:[#allocation8 + $0x68] sm:$0xff] }
 0x332   :  { %v6315_v51 = vpop.f32.mrf.mxu1  ;;  %6518 = vst [vmem:[#allocation8] sm:$0xff] %v6454_v34  ;;  %v6455_v41 = vadd.f32 %v6201_v46, %v4861_v22  ;;  %v6203_v39 = vadd.f32 %v6202_v10, %v11081_v2  ;;  %v4868_v22 = vadd.f32 %v4804_v62, %v10876_v26  ;;  %v4870_v34 = vadd.f32 %v4806_v50, %v10879_v16  ;;  %v4810_v16 = vld [vmem:[#allocation8 + $0x70] sm:$0xff] }
 0x333   :  { %6520 = vst [vmem:[#allocation8 + $0x10] sm:$0xff] %v6456_v15  ;;  %v6457_v37 = vadd.f32 %v6314_v4, %v4863_v20  ;;  %v6316_v33 = vadd.f32 %v6315_v51, %v11083_v40  ;;  %v6204_v38 = vpop.f32.mrf.mxu0  ;;  %v4808_v4 = vld [vmem:[#allocation8 + $0x60] sm:$0xff] }
 0x334   :  { %v6317_v23 = vpop.f32.mrf.mxu1  ;;  %6519 = vst [vmem:[#allocation8 + $0x8] sm:$0xff] %v6455_v41  ;;  %v6458_v60 = vadd.f32 %v6203_v39, %v4864_v44  ;;  %v6205_v13 = vadd.f32 %v6204_v38, %v11085_v47  ;;  %v4869_v47 = vadd.f32 %v4805_v6, %v10882_v48 }
 0x335   :  { %6521 = vst [vmem:[#allocation8 + $0x18] sm:$0xff] %v6457_v37  ;;  %v6460_v11 = vadd.f32 %v6316_v33, %v4866_v49  ;;  %v6318_v20 = vadd.f32 %v6317_v23, %v11087_v57  ;;  %v6208_v15 = vpop.f32.mrf.mxu0  ;;  %v4871_v57 = vadd.f32 %v4807_v55, %v10885_v29  ;;  %v4811_v29 = vld [vmem:[#allocation8 + $0x78] sm:$0xff] }
 0x336   :  { %v6321_v19 = vpop.f32.mrf.mxu1  ;;  %6522 = vst [vmem:[#allocation8 + $0x20] sm:$0xff] %v6458_v60  ;;  %v6459_v52 = vadd.f32 %v6205_v13, %v4865_v53  ;;  %v6209_v2 = vadd.f32 %v6208_v15, %v11089_v58  ;;  %v4872_v58 = vadd.f32 %v4808_v4, %v10888_v7 }
 0x337   :  { %6524 = vst [vmem:[#allocation8 + $0x30] sm:$0xff] %v6460_v11  ;;  %v6461_v28 = vadd.f32 %v6318_v20, %v4867_v14  ;;  %v6322_v40 = vadd.f32 %v6321_v19, %v11091_v59  ;;  %v6210_v46 = vpop.f32.mrf.mxu0  ;;  %v4874_v59 = vadd.f32 %v4810_v16, %v10891_v8  ;;  %v4812_v14 = vld [vmem:[#allocation8 + $0x80] sm:$0xff]  ;;  %v4814_v8 = vld [vmem:[#allocation8 + $0x90] sm:$0xff]  ;;  %v4813_v11 = vld [vmem:[#allocation8 + $0x88] sm:$0xff] }
 0x338   :  { %v6323_v26 = vpop.f32.mrf.mxu1  ;;  %6523 = vst [vmem:[#allocation8 + $0x28] sm:$0xff] %v6459_v52  ;;  %v6462_v44 = vadd.f32 %v6209_v2, %v4868_v22  ;;  %v6211_v10 = vadd.f32 %v6210_v46, %v11093_v61  ;;  %v4873_v61 = vadd.f32 %v4809_v35, %v10894_v27  ;;  %v4816_v19 = vld [vmem:[#allocation8 + $0xa0] sm:$0xff] }
 0x339   :  { %6525 = vst [vmem:[#allocation8 + $0x38] sm:$0xff] %v6461_v28  ;;  %v6464_v49 = vadd.f32 %v6322_v40, %v4870_v34  ;;  %v6324_v51 = vadd.f32 %v6323_v26, %v11095_v21  ;;  %v6212_v18 = vpop.f32.mrf.mxu0  ;;  %v4875_v21 = vadd.f32 %v4811_v29, %v10897_v24  ;;  %v4815_v24 = vld [vmem:[#allocation8 + $0x98] sm:$0xff]  ;;  %v4817_v40 = vld [vmem:[#allocation8 + $0xa8] sm:$0xff]  ;;  %v4820_v16 = vld [vmem:[#allocation8 + $0xc0] sm:$0xff] }
 0x33a   :  { %v6325_v48 = vpop.f32.mrf.mxu1  ;;  %6526 = vst [vmem:[#allocation8 + $0x40] sm:$0xff] %v6462_v44  ;;  %v6463_v41 = vadd.f32 %v6211_v10, %v4869_v47  ;;  %v6213_v39 = vadd.f32 %v6212_v18, %v11097_v1  ;;  %v4876_v1 = vadd.f32 %v4812_v14, %v10900_v54  ;;  %v11788_v10 = vld [vmem:[#allocation20_spill] sm:$0xff]  ;;  %v11790_v18 = vld [vmem:[#allocation53_spill] sm:$0xff] }
 0x33b   :  { %6528 = vst [vmem:[#allocation8 + $0x50] sm:$0xff] %v6464_v49  ;;  %v6465_v37 = vadd.f32 %v6324_v51, %v4871_v57  ;;  %v6326_v33 = vadd.f32 %v6325_v48, %v11099_v31  ;;  %v6214_v53 = vpop.f32.mrf.mxu0  ;;  %v4878_v31 = vadd.f32 %v4814_v8, %v10903_v43  ;;  %v4818_v43 = vld [vmem:[#allocation8 + $0xb0] sm:$0xff]  ;;  %v4821_v29 = vld [vmem:[#allocation8 + $0xc8] sm:$0xff]  ;;  %v11795_v14 = vld [vmem:[#allocation56_spill] sm:$0xff] }
 0x33c   :  { %v6327_v7 = vpop.f32.mrf.mxu1  ;;  %6527 = vst [vmem:[#allocation8 + $0x48] sm:$0xff] %v6463_v41  ;;  %v6466_v38 = vadd.f32 %v6213_v39, %v4872_v58  ;;  %v6215_v62 = vadd.f32 %v6214_v53, %v11101_v56  ;;  %v4877_v56 = vadd.f32 %v4813_v11, %v10906_v3  ;;  %v11789_v58 = vld [vmem:[#allocation44_spill] sm:$0xff]  ;;  %v11791_v48 = vld [vmem:[#allocation54_spill] sm:$0xff]  ;;  %v11792_v39 = vld [vmem:[#allocation21_spill] sm:$0xff] }
 0x33d   :  { %6529 = vst [vmem:[#allocation8 + $0x58] sm:$0xff] %v6465_v37  ;;  %v6468_v23 = vadd.f32 %v6326_v33, %v4874_v59  ;;  %v6328_v50 = vadd.f32 %v6327_v7, %v11103_v45  ;;  %v6218_v60 = vpop.f32.mrf.mxu0  ;;  %v4879_v45 = vadd.f32 %v4815_v24, %v10909_v36  ;;  %v4819_v36 = vld [vmem:[#allocation8 + $0xb8] sm:$0xff]  ;;  %v11797_v11 = vld [vmem:[#allocation46_spill] sm:$0xff] }
 0x33e   :  { %v6331_v27 = vpop.f32.mrf.mxu1  ;;  %6530 = vst [vmem:[#allocation8 + $0x60] sm:$0xff] %v6466_v38  ;;  %v6467_v13 = vadd.f32 %v6215_v62, %v4873_v61  ;;  %v6219_v22 = vadd.f32 %v6218_v60, %v11105_v32  ;;  %v4880_v32 = vadd.f32 %v4816_v19, %v10912_v63  ;;  %v11793_v61 = vld [vmem:[#allocation45_spill] sm:$0xff]  ;;  %v11794_v53 = vld [vmem:[#allocation55_spill] sm:$0xff]  ;;  %v4824_v62 = vld [vmem:[#allocation8 + $0xe0] sm:$0xff] }
 0x33f   :  { %6532 = vst [vmem:[#allocation8 + $0x70] sm:$0xff] %v6468_v23  ;;  %v6469_v20 = vadd.f32 %v6328_v50, %v4875_v21  ;;  %v6332_v34 = vadd.f32 %v6331_v27, %v11107_v12  ;;  %v6220_v15 = vpop.f32.mrf.mxu0  ;;  %v4882_v12 = vadd.f32 %v4818_v43, %v10915_v30  ;;  %v4822_v30 = vld [vmem:[#allocation8 + $0xd0] sm:$0xff]  ;;  %v4885_v7 = vadd.f32 %v4821_v29, %v11794_v53  ;;  %v11812_v53 = vld [vmem:[#allocation63_spill] sm:$0xff] }
 0x340   :  { %v6333_v54 = vpop.f32.mrf.mxu1  ;;  %6531 = vst [vmem:[#allocation8 + $0x68] sm:$0xff] %v6467_v13  ;;  %v6470_v6 = vadd.f32 %v6219_v22, %v4876_v1  ;;  %v6221_v52 = vadd.f32 %v6220_v15, %v11109_v5  ;;  %v4881_v5 = vadd.f32 %v4817_v40, %v10918_v42  ;;  %v4826_v50 = vld [vmem:[#allocation8 + $0xf0] sm:$0xff]  ;;  %v11798_v13 = vld [vmem:[#allocation57_spill] sm:$0xff] }
 0x341   :  { %6533 = vst [vmem:[#allocation8 + $0x78] sm:$0xff] %v6469_v20  ;;  %v6472_v55 = vadd.f32 %v6332_v34, %v4878_v31  ;;  %v6334_v28 = vadd.f32 %v6333_v54, %v11111_v17  ;;  %v6222_v2 = vpop.f32.mrf.mxu0  ;;  %v4883_v17 = vadd.f32 %v4819_v36, %v10921_v9  ;;  %v4823_v9 = vld [vmem:[#allocation8 + $0xd8] sm:$0xff]  ;;  %v11796_v60 = vld [vmem:[#allocation22_spill] sm:$0xff]  ;;  %v4888_v20 = vadd.f32 %v4824_v62, %v11798_v13  ;;  %v4825_v15 = vld [vmem:[#allocation8 + $0xe8] sm:$0xff] }
 0x342   :  { %v6335_v3 = vpop.f32.mrf.mxu1  ;;  %6534 = vst [vmem:[#allocation8 + $0x80] sm:$0xff] %v6470_v6  ;;  %v6471_v47 = vadd.f32 %v6221_v52, %v4877_v56  ;;  %v6223_v46 = vadd.f32 %v6222_v2, %v11113_v25  ;;  %v4884_v25 = vadd.f32 %v4820_v16, %v11790_v18  ;;  %v4887_v8 = vadd.f32 %v4823_v9, %v11795_v14  ;;  %v11799_v22 = vld [vmem:[#allocation58_spill] sm:$0xff]  ;;  %v4827_v54 = vld [vmem:[#allocation8 + $0xf8] sm:$0xff]  ;;  %v11803_v2 = vld [vmem:[#allocation60_spill] sm:$0xff] }
 0x343   :  { %6536 = vst [vmem:[#allocation8 + $0x90] sm:$0xff] %v6472_v55  ;;  %v6473_v57 = vadd.f32 %v6334_v28, %v4879_v45  ;;  %v6336_v26 = vadd.f32 %v6335_v3, %v11115_v0  ;;  %v6224_v4 = vpop.f32.mrf.mxu0  ;;  %v4886_v0 = vadd.f32 %v4822_v30, %v11791_v48  ;;  %v4890_v34 = vadd.f32 %v4826_v50, %v11799_v22  ;;  %v11800_v6 = vld [vmem:[#allocation23_spill] sm:$0xff]  ;;  %v11806_v16 = vld [vmem:[#allocation61_spill] sm:$0xff]  ;;  %v11813_v14 = vld [vmem:[#allocation64_spill] sm:$0xff] }
 0x344   :  { %v6337_v63 = vpop.f32.mrf.mxu1  ;;  %6535 = vst [vmem:[#allocation8 + $0x88] sm:$0xff] %v6471_v47  ;;  %v6474_v44 = vadd.f32 %v6223_v46, %v4880_v32  ;;  %v6225_v51 = vadd.f32 %v6224_v4, %v11788_v10  ;;  %v11801_v52 = vld [vmem:[#allocation47_spill] sm:$0xff]  ;;  %v4891_v3 = vadd.f32 %v4827_v54, %v11803_v2  ;;  %v4828_v47 = vld [vmem:[#allocation8 + $0x100] sm:$0xff]  ;;  %v11808_v18 = vld [vmem:[#allocation25_spill] sm:$0xff] }
 0x345   :  { %6537 = vst [vmem:[#allocation8 + $0x98] sm:$0xff] %v6473_v57  ;;  %v6476_v49 = vadd.f32 %v6336_v26, %v4882_v12  ;;  %v6338_v59 = vadd.f32 %v6337_v63, %v11789_v58  ;;  %v6228_v35 = vpop.f32.mrf.mxu0  ;;  %v11802_v32 = vld [vmem:[#allocation59_spill] sm:$0xff]  ;;  %v4830_v57 = vld [vmem:[#allocation8 + $0x110] sm:$0xff]  ;;  %v11805_v4 = vld [vmem:[#allocation48_spill] sm:$0xff]  ;;  %v4892_v30 = vadd.f32 %v4828_v47, %v11806_v16 }
 0x346   :  { %v6341_v42 = vpop.f32.mrf.mxu1  ;;  %6538 = vst [vmem:[#allocation8 + $0xa0] sm:$0xff] %v6474_v44  ;;  %v6475_v41 = vadd.f32 %v6225_v51, %v4881_v5  ;;  %v6229_v33 = vadd.f32 %v6228_v35, %v11792_v39  ;;  %v4889_v12 = vadd.f32 %v4825_v15, %v11802_v32  ;;  %v11804_v5 = vld [vmem:[#allocation24_spill] sm:$0xff]  ;;  %v11807_v44 = vld [vmem:[#allocation62_spill] sm:$0xff]  ;;  %v11809_v48 = vld [vmem:[#allocation49_spill] sm:$0xff] }
 0x347   :  { %6540 = vst [vmem:[#allocation8 + $0xb0] sm:$0xff] %v6476_v49  ;;  %v6477_v37 = vadd.f32 %v6338_v59, %v4883_v17  ;;  %v6342_v21 = vadd.f32 %v6341_v42, %v11793_v61  ;;  %v6230_v38 = vpop.f32.mrf.mxu0  ;;  %v4894_v49 = vadd.f32 %v4830_v57, %v11807_v44  ;;  %v11811_v39 = vld [vmem:[#allocation50_spill] sm:$0xff]  ;;  %v11815_v62 = vld [vmem:[#allocation51_spill] sm:$0xff]  ;;  %v11818_v13 = vld [vmem:[#allocation28_spill] sm:$0xff] }
 0x348   :  { %v6343_v23 = vpop.f32.mrf.mxu1  ;;  %6539 = vst [vmem:[#allocation8 + $0xa8] sm:$0xff] %v6475_v41  ;;  %v6478_v1 = vadd.f32 %v6229_v33, %v4884_v25  ;;  %v6231_v27 = vadd.f32 %v6230_v38, %v11796_v60  ;;  %v11810_v41 = vld [vmem:[#allocation26_spill] sm:$0xff]  ;;  %v11814_v38 = vld [vmem:[#allocation27_spill] sm:$0xff]  ;;  %v11816_v60 = vld [vmem:[#allocation65_spill] sm:$0xff] }
 0x349   :  { %6541 = vst [vmem:[#allocation8 + $0xb8] sm:$0xff] %v6477_v37  ;;  %v6480_v31 = vadd.f32 %v6342_v21, %v4886_v0  ;;  %v6344_v24 = vadd.f32 %v6343_v23, %v11797_v11  ;;  %v6232_v56 = vpop.f32.mrf.mxu0  ;;  %v11817_v11 = vld [vmem:[#allocation66_spill] sm:$0xff]  ;;  %v11819_v22 = vld [vmem:[#allocation52_spill] sm:$0xff]  ;;  %v11820_v15 = vld [vmem:[#allocation67_spill] sm:$0xff] }
 0x34a   :  { %v6345_v45 = vpop.f32.mrf.mxu1  ;;  %6542 = vst [vmem:[#allocation8 + $0xc0] sm:$0xff] %v6478_v1  ;;  %v6479_v19 = vadd.f32 %v6231_v27, %v4885_v7  ;;  %v6233_v55 = vadd.f32 %v6232_v56, %v11800_v6  ;;  %v11822_v6 = vld [vmem:[#allocation70_spill] sm:$0xff]  ;;  %v11824_v2 = vld [vmem:[#allocation69_spill] sm:$0xff]  ;;  %v11826_v47 = vld [vmem:[#allocation72_spill] sm:$0xff] }
 0x34b   :  { %6544 = vst [vmem:[#allocation8 + $0xd0] sm:$0xff] %v6480_v31  ;;  %v6481_v43 = vadd.f32 %v6344_v24, %v4887_v8  ;;  %v6346_v28 = vadd.f32 %v6345_v45, %v11801_v52  ;;  %v6234_v40 = vpop.f32.mrf.mxu0  ;;  %v11823_v52 = vld [vmem:[#allocation71_spill] sm:$0xff]  ;;  %v11829_v16 = vld [vmem:[#allocation29_spill] sm:$0xff]  ;;  %v11830_v44 = vld [vmem:[#allocation74_spill] sm:$0xff] }
 0x34c   :  { %v6347_v36 = vpop.f32.mrf.mxu1  ;;  %6543 = vst [vmem:[#allocation8 + $0xc8] sm:$0xff] %v6479_v19  ;;  %v6482_v46 = vadd.f32 %v6233_v55, %v4888_v20  ;;  %v6235_v17 = vadd.f32 %v6234_v40, %v11804_v5  ;;  %v11821_v19 = vld [vmem:[#allocation68_spill] sm:$0xff]  ;;  %v11825_v40 = vld [vmem:[#allocation38_spill] sm:$0xff] }
 0x34d   :  { %6545 = vst [vmem:[#allocation8 + $0xd8] sm:$0xff] %v6481_v43  ;;  %v6484_v26 = vadd.f32 %v6346_v28, %v4890_v34  ;;  %v6348_v63 = vadd.f32 %v6347_v36, %v11805_v4  ;;  %v6238_v10 = vpop.f32.mrf.mxu0  ;;  %v11828_v4 = vld [vmem:[#allocation39_spill] sm:$0xff] }
 0x34e   :  { %v6351_v51 = vpop.f32.mrf.mxu1  ;;  %6546 = vst [vmem:[#allocation8 + $0xe0] sm:$0xff] %v6482_v46  ;;  %v6483_v58 = vadd.f32 %v6235_v17, %v4889_v12  ;;  %v6239_v25 = vadd.f32 %v6238_v10, %v11808_v18  ;;  %v11827_v46 = vld [vmem:[#allocation73_spill] sm:$0xff]  ;;  %v11831_v10 = vld [vmem:[#allocation75_spill] sm:$0xff]  ;;  %v11832_v18 = vld [vmem:[#allocation40_spill] sm:$0xff] }
 0x34f   :  { %6548 = vst [vmem:[#allocation8 + $0xf0] sm:$0xff] %v6484_v26  ;;  %v6485_v59 = vadd.f32 %v6348_v63, %v4891_v3  ;;  %v6352_v0 = vadd.f32 %v6351_v51, %v11809_v48  ;;  %v6240_v35 = vpop.f32.mrf.mxu0  ;;  %v11833_v48 = vld [vmem:[#allocation30_spill] sm:$0xff] }
 0x350   :  { %v6353_v42 = vpop.f32.mrf.mxu1  ;;  %6547 = vst [vmem:[#allocation8 + $0xe8] sm:$0xff] %v6483_v58  ;;  %v6486_v29 = vadd.f32 %v6239_v25, %v4892_v30  ;;  %v6241_v37 = vadd.f32 %v6240_v35, %v11810_v41  ;;  %v11834_v35 = vld [vmem:[#allocation76_spill] sm:$0xff] }
 0x351   :  { %6549 = vst [vmem:[#allocation8 + $0xf8] sm:$0xff] %v6485_v59  ;;  %v6488_v9 = vadd.f32 %v6352_v0, %v4894_v49  ;;  %v6354_v33 = vadd.f32 %v6353_v42, %v11811_v39  ;;  %v6242_v61 = vpop.f32.mrf.mxu0  ;;  %v11836_v39 = vld [vmem:[#allocation41_spill] sm:$0xff] }
 0x352   :  { %v6355_v21 = vpop.f32.mrf.mxu1  ;;  %6550 = vst [vmem:[#allocation8 + $0x100] sm:$0xff] %v6486_v29  ;;  %v6487_v7 = vadd.f32 %v6241_v37, %v11812_v53  ;;  %v6243_v23 = vadd.f32 %v6242_v61, %v11814_v38  ;;  %v11835_v29 = vld [vmem:[#allocation77_spill] sm:$0xff]  ;;  %v11837_v61 = vld [vmem:[#allocation31_spill] sm:$0xff]  ;;  %v11838_v53 = vld [vmem:[#allocation78_spill] sm:$0xff] }
 0x353   :  { %6552 = vst [vmem:[#allocation8 + $0x110] sm:$0xff] %v6488_v9  ;;  %v6489_v8 = vadd.f32 %v6354_v33, %v11813_v14  ;;  %v6356_v50 = vadd.f32 %v6355_v21, %v11815_v62  ;;  %v6244_v1 = vpop.f32.mrf.mxu0  ;;  %v11839_v14 = vld [vmem:[#allocation79_spill] sm:$0xff]  ;;  %v11840_v62 = vld [vmem:[#allocation12_spill] sm:$0xff] }
 0x354   :  { %v6357_v31 = vpop.f32.mrf.mxu1  ;;  %6551 = vst [vmem:[#allocation8 + $0x108] sm:$0xff] %v6487_v7  ;;  %v6490_v27 = vadd.f32 %v6243_v23, %v11816_v60  ;;  %v6245_v20 = vadd.f32 %v6244_v1, %v11818_v13  ;;  %v11841_v1 = vld [vmem:[#allocation32_spill] sm:$0xff] }
 0x355   :  { %6553 = vst [vmem:[#allocation8 + $0x118] sm:$0xff] %v6489_v8  ;;  %v6492_v24 = vadd.f32 %v6356_v50, %v11817_v11  ;;  %v6358_v34 = vadd.f32 %v6357_v31, %v11819_v22  ;;  %v6248_v56 = vpop.f32.mrf.mxu0  ;;  %v11842_v60 = vld [vmem:[#allocation80_spill] sm:$0xff]  ;;  %v11843_v11 = vld [vmem:[#allocation81_spill] sm:$0xff] }
 0x356   :  { %v6361_v45 = vpop.f32.mrf.mxu1  ;;  %6554 = vst [vmem:[#allocation8 + $0x120] sm:$0xff] %v6490_v27  ;;  %v6491_v54 = vadd.f32 %v6245_v20, %v11820_v15  ;;  %v6249_v55 = vadd.f32 %v6248_v56, %v11822_v6  ;;  %v11844_v22 = vld [vmem:[#allocation13_spill] sm:$0xff]  ;;  %v11846_v15 = vld [vmem:[#allocation82_spill] sm:$0xff] }
 0x357   :  { %6556 = vst [vmem:[#allocation8 + $0x130] sm:$0xff] %v6492_v24  ;;  %v6493_v43 = vadd.f32 %v6358_v34, %v11821_v19  ;;  %v6362_v28 = vadd.f32 %v6361_v45, %v11823_v52  ;;  %v6250_v32 = vpop.f32.mrf.mxu0  ;;  %v11845_v56 = vld [vmem:[#allocation33_spill] sm:$0xff]  ;;  %v11847_v19 = vld [vmem:[#allocation83_spill] sm:$0xff]  ;;  %v11848_v52 = vld [vmem:[#allocation14_spill] sm:$0xff] }
 0x358   :  { %v6363_v12 = vpop.f32.mrf.mxu1  ;;  %6555 = vst [vmem:[#allocation8 + $0x128] sm:$0xff] %v6491_v54  ;;  %v6494_v3 = vadd.f32 %v6249_v55, %v11824_v2  ;;  %v6251_v57 = vadd.f32 %v6250_v32, %v11826_v47  ;;  %v11849_v32 = vld [vmem:[#allocation34_spill] sm:$0xff]  ;;  %v11850_v2 = vld [vmem:[#allocation84_spill] sm:$0xff] }
 0x359   :  { %6557 = vst [vmem:[#allocation8 + $0x138] sm:$0xff] %v6493_v43  ;;  %v6496_v36 = vadd.f32 %v6362_v28, %v11825_v40  ;;  %v6364_v26 = vadd.f32 %v6363_v12, %v11827_v46  ;;  %v6252_v5 = vpop.f32.mrf.mxu0  ;;  %v11851_v40 = vld [vmem:[#allocation85_spill] sm:$0xff]  ;;  %v11852_v46 = vld [vmem:[#allocation15_spill] sm:$0xff] }
 0x35a   :  { %v6365_v17 = vpop.f32.mrf.mxu1  ;;  %6558 = vst [vmem:[#allocation8 + $0x140] sm:$0xff] %v6494_v3  ;;  %v6495_v63 = vadd.f32 %v6251_v57, %v11828_v4  ;;  %v6253_v49 = vadd.f32 %v6252_v5, %v11830_v44  ;;  %v11853_v5 = vld [vmem:[#allocation35_spill] sm:$0xff]  ;;  %v11854_v4 = vld [vmem:[#allocation86_spill] sm:$0xff] }
 0x35b   :  { %6560 = vst [vmem:[#allocation8 + $0x150] sm:$0xff] %v6496_v36  ;;  %v6497_v30 = vadd.f32 %v6364_v26, %v11829_v16  ;;  %v6366_v51 = vadd.f32 %v6365_v17, %v11831_v10  ;;  %v6254_v58 = vpop.f32.mrf.mxu0  ;;  %v11855_v16 = vld [vmem:[#allocation87_spill] sm:$0xff]  ;;  %v11856_v10 = vld [vmem:[#allocation16_spill] sm:$0xff] }
 0x35c   :  { %v6367_v59 = vpop.f32.mrf.mxu1  ;;  %6559 = vst [vmem:[#allocation8 + $0x148] sm:$0xff] %v6495_v63  ;;  %v6498_v25 = vadd.f32 %v6253_v49, %v11832_v18  ;;  %v6255_v42 = vadd.f32 %v6254_v58, %v11834_v35  ;;  %v11857_v58 = vld [vmem:[#allocation36_spill] sm:$0xff] }
 0x35d   :  { %6561 = vst [vmem:[#allocation8 + $0x158] sm:$0xff] %v6497_v30  ;;  %v6500_v0 = vadd.f32 %v6366_v51, %v11833_v48  ;;  %v6368_v9 = vadd.f32 %v6367_v59, %v11835_v29  ;;  %v6258_v41 = vpop.f32.mrf.mxu0  ;;  %v11858_v18 = vld [vmem:[#allocation88_spill] sm:$0xff]  ;;  %v11859_v48 = vld [vmem:[#allocation89_spill] sm:$0xff] }
 0x35e   :  { %v6371_v37 = vpop.f32.mrf.mxu1  ;;  %6562 = vst [vmem:[#allocation8 + $0x160] sm:$0xff] %v6498_v25  ;;  %v6499_v33 = vadd.f32 %v6255_v42, %v11836_v39  ;;  %v6259_v7 = vadd.f32 %v6258_v41, %v11838_v53  ;;  %v11860_v29 = vld [vmem:[#allocation17_spill] sm:$0xff]  ;;  %v11862_v39 = vld [vmem:[#allocation90_spill] sm:$0xff] }
 0x35f   :  { %6564 = vst [vmem:[#allocation8 + $0x170] sm:$0xff] %v6500_v0  ;;  %v6501_v21 = vadd.f32 %v6368_v9, %v11837_v61  ;;  %v6372_v8 = vadd.f32 %v6371_v37, %v11839_v14  ;;  %v6260_v38 = vpop.f32.mrf.mxu0  ;;  %v11861_v41 = vld [vmem:[#allocation37_spill] sm:$0xff]  ;;  %v11863_v61 = vld [vmem:[#allocation91_spill] sm:$0xff]  ;;  %v11864_v14 = vld [vmem:[#allocation18_spill] sm:$0xff] }
 0x360   :  { %v6373_v23 = vpop.f32.mrf.mxu1  ;;  %6563 = vst [vmem:[#allocation8 + $0x168] sm:$0xff] %v6499_v33  ;;  %v6502_v50 = vadd.f32 %v6259_v7, %v11840_v62  ;;  %v6261_v27 = vadd.f32 %v6260_v38, %v11842_v60  ;;  %v11865_v38 = vld [vmem:[#allocation42_spill] sm:$0xff]  ;;  %v11866_v62 = vld [vmem:[#allocation92_spill] sm:$0xff]  ;;  %v11868_v60 = vld [vmem:[#allocation19_spill] sm:$0xff] }
 0x361   :  { %6565 = vst [vmem:[#allocation8 + $0x178] sm:$0xff] %v6501_v21  ;;  %v6504_v31 = vadd.f32 %v6372_v8, %v11841_v1  ;;  %v6374_v24 = vadd.f32 %v6373_v23, %v11843_v11  ;;  %v6262_v13 = vpop.f32.mrf.mxu0  ;;  %v11867_v1 = vld [vmem:[#allocation93_spill] sm:$0xff]  ;;  %v11869_v11 = vld [vmem:[#allocation43_spill] sm:$0xff] }
 0x362   :  { %v6375_v20 = vpop.f32.mrf.mxu1  ;;  %6566 = vst [vmem:[#allocation8 + $0x180] sm:$0xff] %v6502_v50  ;;  %v6503_v34 = vadd.f32 %v6261_v27, %v11844_v22  ;;  %v6263_v54 = vadd.f32 %v6262_v13, %v11846_v15 }
 0x363   :  { %6568 = vst [vmem:[#allocation8 + $0x190] sm:$0xff] %v6504_v31  ;;  %v6505_v45 = vadd.f32 %v6374_v24, %v11845_v56  ;;  %v6376_v43 = vadd.f32 %v6375_v20, %v11847_v19  ;;  %v6264_v6 = vpop.f32.mrf.mxu0 }
 0x364   :  { %v6377_v55 = vpop.f32.mrf.mxu1  ;;  %6567 = vst [vmem:[#allocation8 + $0x188] sm:$0xff] %v6503_v34  ;;  %v6506_v28 = vadd.f32 %v6263_v54, %v11848_v52  ;;  %v6265_v3 = vadd.f32 %v6264_v6, %v11850_v2 }
 0x365   :  { %6569 = vst [vmem:[#allocation8 + $0x198] sm:$0xff] %v6505_v45  ;;  %v6508_v12 = vadd.f32 %v6376_v43, %v11849_v32  ;;  %v6378_v36 = vadd.f32 %v6377_v55, %v11851_v40  ;;  %v6268_v47 = vpop.f32.mrf.mxu0 }
 0x366   :  { %v6381_v57 = vpop.f32.mrf.mxu1  ;;  %6570 = vst [vmem:[#allocation8 + $0x1a0] sm:$0xff] %v6506_v28  ;;  %v6507_v26 = vadd.f32 %v6265_v3, %v11852_v46  ;;  %v6269_v63 = vadd.f32 %v6268_v47, %v11854_v4 }
 0x367   :  { %6572 = vst [vmem:[#allocation8 + $0x1b0] sm:$0xff] %v6508_v12  ;;  %v6509_v17 = vadd.f32 %v6378_v36, %v11853_v5  ;;  %v6382_v30 = vadd.f32 %v6381_v57, %v11855_v16  ;;  %v6270_v44 = vpop.f32.mrf.mxu0 }
 0x368   :  { %v6383_v49 = vpop.f32.mrf.mxu1  ;;  %6571 = vst [vmem:[#allocation8 + $0x1a8] sm:$0xff] %v6507_v26  ;;  %v6510_v51 = vadd.f32 %v6269_v63, %v11856_v10  ;;  %v6271_v25 = vadd.f32 %v6270_v44, %v11858_v18 }
 0x369   :  { %6573 = vst [vmem:[#allocation8 + $0x1b8] sm:$0xff] %v6509_v17  ;;  %v6512_v59 = vadd.f32 %v6382_v30, %v11857_v58  ;;  %v6384_v0 = vadd.f32 %v6383_v49, %v11859_v48  ;;  %v6272_v35 = vpop.f32.mrf.mxu0 }
 0x36a   :  { %v6385_v42 = vpop.f32.mrf.mxu1  ;;  %6574 = vst [vmem:[#allocation8 + $0x1c0] sm:$0xff] %v6510_v51  ;;  %v6511_v9 = vadd.f32 %v6271_v25, %v11860_v29  ;;  %v6273_v33 = vadd.f32 %v6272_v35, %v11862_v39 }
 0x36b   :  { %6576 = vst [vmem:[#allocation8 + $0x1d0] sm:$0xff] %v6512_v59  ;;  %v6513_v37 = vadd.f32 %v6384_v0, %v11861_v41  ;;  %v6386_v21 = vadd.f32 %v6385_v42, %v11863_v61  ;;  %v6274_v53 = vpop.f32.mrf.mxu0 }
 0x36c   :  { %v6387_v7 = vpop.f32.mrf.mxu1  ;;  %6575 = vst [vmem:[#allocation8 + $0x1c8] sm:$0xff] %v6511_v9  ;;  %v6514_v8 = vadd.f32 %v6273_v33, %v11864_v14  ;;  %v6275_v50 = vadd.f32 %v6274_v53, %v11866_v62 }
 0x36d   :  { %6577 = vst [vmem:[#allocation8 + $0x1d8] sm:$0xff] %v6513_v37  ;;  %v6516_v23 = vadd.f32 %v6386_v21, %v11865_v38  ;;  %v6388_v31 = vadd.f32 %v6387_v7, %v11867_v1 }
 0x36e   :  { %6578 = vst [vmem:[#allocation8 + $0x1e0] sm:$0xff] %v6514_v8  ;;  %v6515_v27 = vadd.f32 %v6275_v50, %v11868_v60 }
 0x36f   :  { %6580 = vst [vmem:[#allocation8 + $0x1f0] sm:$0xff] %v6516_v23  ;;  %v6517_v24 = vadd.f32 %v6388_v31, %v11869_v11 }
 0x370   :  { %6579 = vst [vmem:[#allocation8 + $0x1e8] sm:$0xff] %v6515_v27 }
 0x371   :  { %6581 = vst [vmem:[#allocation8 + $0x1f8] sm:$0xff] %v6517_v24 }
 0x372   :  { %8657 = shalt.err (!%p8654_p5)
}
 0x373   :  { %6593 = dma.vmem_to_hbm [thread:$0]  %s6588_s10, 8192, %s11339_s4, [#allocation4], %s8677_s2, %s8677_s2, %s8678_s30  }
 0x374   :  { %8670 = dma.done.wait [#allocation4], 8192  }
 0x375   :  { %8671 = vsyncadd [#allocation4], 4294959104 }
 0x376   :  { %6597 = vsyncpa [#allocation3], 1 }
 0x377   :  { %6598 = vsyncpa [#allocation6], 1 }
 0x378   :  { %6599 = vsyncpa [#allocation4], 1 }

</bundles_post_ra>
